<compile_context>
chip_gen: v6e
topology: v6e:2x2x1
jax: 0.10.0
libtpu: 0.0.40
codegen_flags: <defaults>
</compile_context>

<pallas_src>
import math

import jax
import jax.numpy as jnp
from jax.experimental import pallas as pl
from jax.experimental.pallas import tpu as pltpu

# ----------------------------- config --------------------------------------
B = 2                  # batch size
S = 16                 # encoded sequence length
LQ = 8                 # decoder_input_len choice (learnable query length)
CARD_A, CARD_B = 5, 7  # categorical cardinalities
CAT_HIDDEN = 8         # embeddings_hidden
NUM_HIDDEN = 8         # num_embeddings_hidden
EMB = 2 * CAT_HIDDEN + 2 * NUM_HIDDEN          # 32
HIDDEN_SIZE = 32
# SeqNAS passes dim_qk = hidden_size per head (not emb/num_heads)
DIM_QK = HIDDEN_SIZE                           # 32
DIM_FF = HIDDEN_SIZE                           # 32
N_HEADS = 2
NUM_LAYERS = 2
OUTPUT_SIZE = 4
OUT_PAD = 128          # lane-dense padded output width (real logits in [:, :4])

HD = N_HEADS * DIM_QK  # 64  (stacked Q / K width)
HE = N_HEADS * EMB     # 64  (stacked folded V' = Wv@Wo width)

assert B == 2  # the in-kernel block-diagonal masks use a B==2 iota trick

# one-hot stem feature layout (padded to 32 feature columns)
STEM_F = 32
NUM_A_COL = CARD_A + CARD_B        # 12
NUM_B_COL = NUM_A_COL + 1          # 13
ONES_COL = NUM_B_COL + 1           # 14

# ----- packed 32-row weight blob column layout (contraction dim = 32 rows) --
W_KVX = 0                                    # cross K|V' both layers: 2*(64+64)=256
W_HEAD = W_KVX + NUM_LAYERS * (HD + HE)      # 256, width OUT_PAD
W_STEM = W_HEAD + OUT_PAD                    # 384, width EMB
W_LAYER0 = W_STEM + EMB                      # 416
L_SQKV = 0                                   # width 2*HD + HE = 192
L_QC = L_SQKV + 2 * HD + HE                  # 192, width HD = 64
L_W1 = L_QC + HD                             # 256, width DIM_FF = 32
L_W2 = L_W1 + DIM_FF                         # 288, width EMB = 32
L_STRIDE = L_W2 + EMB                        # 320
W_TOTAL = W_LAYER0 + NUM_LAYERS * L_STRIDE   # 1056

# ----- packed row-parameter blob layout ((32, 128) f32) ----------------------
R_QUERY = 0            # rows 0..7, lanes 0:EMB
R_PE_FREQ = 8          # lanes 0:EMB
R_PE_PHASE = 9
R_HEADB = 10           # lanes 0:OUT_PAD
R_LAYER0 = 11          # per layer: g1,b1,g2,b2,g3,b3,ffn_b1,ffn_b2
R_STRIDE = 8
ROWS_N = 32            # 11 + 2*8 = 27, padded to 32
ROWS_W = 128


# --------------------- fully fused forward kernel ---------------------------
def fused_kernel(data_ref, w32_ref, rows_ref, out_ref, xbuf):
    # TODO(synk): DecoderMHALayer / Head / Stem / SinTimeEncoding internals are
    # not in the spec; standard post-LN decoder layer (self-attn, cross-attn,
    # FFN w/ residual + LayerNorm), embedding-concat stem, sinusoidal PE, and
    # mean-pool + Linear head are assumed (same as the accepted previous version).
    f32 = jnp.float32
    BSS = B * S
    BLQ = B * LQ
    scale = 1.0 / math.sqrt(DIM_QK)

    def row(r):                                   # (1, EMB) parameter row
        return rows_ref[r:r + 1, 0:EMB]

    def layernorm(v, g, bta, eps=1e-5):
        mean = jnp.mean(v, axis=-1, keepdims=True)
        c = v - mean
        var = jnp.mean(c * c, axis=-1, keepdims=True)
        return c * jax.lax.rsqrt(var + eps) * g + bta

    def attn(q_all, k_all, vp_all, mask):
        """Block-diag batched MHA. q_all (nq, HD), k_all (nk, HD), vp_all (nk, HE).

        vp_all holds V' = x_kv @ (Wv_h @ Wo_h) (folded at pack time), so the
        per-head output is already in embedding space; heads accumulate."""
        out = None
        for h in range(N_HEADS):
            qh = q_all[:, h * DIM_QK:(h + 1) * DIM_QK]
            kh = k_all[:, h * DIM_QK:(h + 1) * DIM_QK]
            vh = vp_all[:, h * EMB:(h + 1) * EMB]
            s = jax.lax.dot_general(qh, kh, (((1,), (1,)), ((), ())),
                                    preferred_element_type=f32) * scale
            if mask is not None:
                s = s + mask
            s = s - jnp.max(s, axis=-1, keepdims=True)
            p = jnp.exp(s)
            p = p * pl.reciprocal(jnp.sum(p, axis=-1, keepdims=True), approx=True)
            oh = jnp.dot(p, vh, preferred_element_type=f32)        # (nq, EMB)
            out = oh if out is None else out + oh
        return out

    def bd_mask(nq, nk):
        # additive block-diagonal mask; B == 2 so ">= n" identifies the batch
        rq = jax.lax.broadcasted_iota(jnp.int32, (B * nq, B * nk), 0)
        ck = jax.lax.broadcasted_iota(jnp.int32, (B * nq, B * nk), 1)
        same = (rq >= nq) == (ck >= nk)
        return jnp.where(same, 0.0, -1e30)

    # ---------------- stem (one-hot matmul) + sinusoidal PE -----------------
    data = data_ref[...]                                  # (B*S, 5)
    idx_a, idx_b = data[:, 0:1], data[:, 1:2]
    num_a, num_b = data[:, 2:3], data[:, 3:4]
    t = data[:, 4:5]

    lane = jax.lax.broadcasted_iota(jnp.int32, (BSS, STEM_F), 1).astype(f32)
    feats = (jnp.where(lane == idx_a, 1.0, 0.0)
             + jnp.where(lane == idx_b + float(CARD_A), 1.0, 0.0)
             + jnp.where(lane == float(NUM_A_COL), num_a, 0.0)
             + jnp.where(lane == float(NUM_B_COL), num_b, 0.0)
             + jnp.where(lane == float(ONES_COL), 1.0, 0.0))       # (B*S, 32)
    pe = jnp.sin(t * rows_ref[R_PE_FREQ:R_PE_FREQ + 1, 0:EMB]
                 + rows_ref[R_PE_PHASE:R_PE_PHASE + 1, 0:EMB])     # (B*S, EMB)
    enc = jnp.dot(feats, w32_ref[:, W_STEM:W_STEM + EMB],
                  preferred_element_type=f32) + pe                 # (B*S, EMB)

    # ---- cross-attention K / V' for BOTH layers in one 256-lane matmul -----
    kvx = jnp.dot(enc, w32_ref[:, W_KVX:W_KVX + NUM_LAYERS * (HD + HE)],
                  preferred_element_type=f32)                      # (B*S, 256)

    self_mask = bd_mask(LQ, LQ)                                    # (B*LQ, B*LQ)
    cross_mask = bd_mask(LQ, S)                                    # (B*LQ, B*S)

    # ---- layer 0 self-attn + LN on the batch-invariant learnable query -----
    xq = rows_ref[R_QUERY:R_QUERY + LQ, 0:EMB]                     # (LQ, EMB)
    base = W_LAYER0
    qkv = jnp.dot(xq, w32_ref[:, base + L_SQKV:base + L_SQKV + 2 * HD + HE],
                  preferred_element_type=f32)                      # (LQ, 192)
    sa = attn(qkv[:, 0:HD], qkv[:, HD:2 * HD], qkv[:, 2 * HD:2 * HD + HE], None)
    xs = layernorm(xq + sa, row(R_LAYER0 + 0), row(R_LAYER0 + 1))  # (LQ, EMB)
    # broadcast across batch into VMEM scratch (no sublane concatenate)
    xbuf[0:LQ, :] = xs
    xbuf[LQ:BLQ, :] = xs
    x = xbuf[...]                                                  # (B*LQ, EMB)

    for l in range(NUM_LAYERS):                                    # unrolled
        base = W_LAYER0 + l * L_STRIDE
        rbase = R_LAYER0 + l * R_STRIDE

        if l > 0:
            # full block-diag batched self-attention
            qkv = jnp.dot(x, w32_ref[:, base + L_SQKV:base + L_SQKV + 2 * HD + HE],
                          preferred_element_type=f32)              # (B*LQ, 192)
            sa = attn(qkv[:, 0:HD], qkv[:, HD:2 * HD],
                      qkv[:, 2 * HD:2 * HD + HE], self_mask)
            x = layernorm(x + sa, row(rbase + 0), row(rbase + 1))

        # cross-attention against the encoded sequence
        qc = jnp.dot(x, w32_ref[:, base + L_QC:base + L_QC + HD],
                     preferred_element_type=f32)                   # (B*LQ, 64)
        kv = kvx[:, l * (HD + HE):(l + 1) * (HD + HE)]             # (B*S, 128)
        ca = attn(qc, kv[:, 0:HD], kv[:, HD:HD + HE], cross_mask)
        x = layernorm(x + ca, row(rbase + 2), row(rbase + 3))

        # feed-forward
        h1 = jnp.dot(x, w32_ref[:, base + L_W1:base + L_W1 + DIM_FF],
                     preferred_element_type=f32) + row(rbase + 6)
        h1 = jnp.maximum(h1, 0.0)
        ff = jnp.dot(h1, w32_ref[:, base + L_W2:base + L_W2 + EMB],
                     preferred_element_type=f32) + row(rbase + 7)
        x = layernorm(x + ff, row(rbase + 4), row(rbase + 5))

    # ---- head: mean-pool as a constant averaging matmul + padded linear ----
    rq = jax.lax.broadcasted_iota(jnp.int32, (B, BLQ), 0)
    cq = jax.lax.broadcasted_iota(jnp.int32, (B, BLQ), 1)
    pmat = jnp.where((rq == 1) == (cq >= LQ), 1.0 / LQ, 0.0)       # (B, B*LQ)
    pooled = jnp.dot(pmat, x, preferred_element_type=f32)          # (B, EMB)
    out_ref[...] = (jnp.dot(pooled, w32_ref[:, W_HEAD:W_HEAD + OUT_PAD],
                            preferred_element_type=f32)
                    + rows_ref[R_HEADB:R_HEADB + 1, :])            # (B, 128)


def fused_forward(data, w32, rows):
    vmem = pl.BlockSpec(memory_space=pltpu.MemorySpace.VMEM)
    return pl.pallas_call(
        fused_kernel,
        out_shape=jax.ShapeDtypeStruct((B, OUT_PAD), jnp.float32),
        in_specs=[vmem, vmem, vmem],
        out_specs=vmem,
        scratch_shapes=[pltpu.VMEM((B * LQ, EMB), jnp.float32)],
        cost_estimate=pl.CostEstimate(
            flops=1_600_000, transcendentals=5_000, bytes_accessed=160_000),
    )(data, w32, rows)


# -------------------------- full model forward -------------------------------
def flexible_transformer_decoder_forward(packed, batch, time):
    # only trivial per-call data packing happens outside the single kernel launch
    data = jnp.stack(
        [batch["cat_a"].astype(jnp.float32).reshape(-1),
         batch["cat_b"].astype(jnp.float32).reshape(-1),
         batch["num_a"].reshape(-1),
         batch["num_b"].reshape(-1),
         time.reshape(-1)], axis=1)                     # (B*S, 5)
    out_pad = fused_forward(data, packed["w32"], packed["rows"])
    return out_pad[:, :OUTPUT_SIZE]                     # (B, OUTPUT_SIZE)


# ------------------------------ parameters -----------------------------------
def init_params(key):
    keys = iter(jax.random.split(key, 64))

    def nrm(shape, scale):
        return scale * jax.random.normal(next(keys), shape, dtype=jnp.float32)

    def xav(shape):
        fan_in, fan_out = shape
        return nrm(shape, math.sqrt(2.0 / (fan_in + fan_out)))

    stem = {"cat_emb": {"cat_a": nrm((CARD_A, CAT_HIDDEN), 0.5),
                        "cat_b": nrm((CARD_B, CAT_HIDDEN), 0.5)},
            "num_w": {"num_a": nrm((1, NUM_HIDDEN), 0.5),
                      "num_b": nrm((1, NUM_HIDDEN), 0.5)},
            "num_b": {"num_a": nrm((NUM_HIDDEN,), 0.1),
                      "num_b": nrm((NUM_HIDDEN,), 0.1)}}

    layers = []
    for _ in range(NUM_LAYERS):
        layers.append({
            "wq_s": xav((EMB, HD)), "wk_s": xav((EMB, HD)), "wv_s": xav((EMB, HD)),
            "wo_s": xav((HD, EMB)),
            "wq_c": xav((EMB, HD)), "wk_c": xav((EMB, HD)), "wv_c": xav((EMB, HD)),
            "wo_c": xav((HD, EMB)),
            "ln_g1": jnp.ones((EMB,), jnp.float32), "ln_b1": jnp.zeros((EMB,), jnp.float32),
            "ln_g2": jnp.ones((EMB,), jnp.float32), "ln_b2": jnp.zeros((EMB,), jnp.float32),
            "ln_g3": jnp.ones((EMB,), jnp.float32), "ln_b3": jnp.zeros((EMB,), jnp.float32),
            "w1": xav((EMB, DIM_FF)), "b1": nrm((DIM_FF,), 0.01),
            "w2": xav((DIM_FF, EMB)), "b2": nrm((EMB,), 0.01),
        })

    return {"stem": stem,
            "query": nrm((1, LQ, EMB), 1.0),   # nn.Parameter(torch.randn(1, Lq, emb))
            "layers": layers,
            "head_w": xav((EMB, OUTPUT_SIZE)),
            "head_b": nrm((OUTPUT_SIZE,), 0.01)}


def pack_params(params):
    """One-time packing of module parameters into the kernel's VMEM blobs."""
    f32 = jnp.float32
    w32 = jnp.zeros((EMB, W_TOTAL), f32)
    rows = jnp.zeros((ROWS_N, ROWS_W), f32)

    def fold_vo(wv, wo):   # per-head Wv_h @ Wo_h, lane-stacked -> (EMB, H*EMB)
        parts = [wv[:, h * DIM_QK:(h + 1) * DIM_QK] @ wo[h * DIM_QK:(h + 1) * DIM_QK, :]
                 for h in range(N_HEADS)]
        return jnp.concatenate(parts, axis=1)

    # stem: one-hot feature matrix -> embedding, as a single (32, 32) weight
    st = params["stem"]
    stem_w = jnp.zeros((STEM_F, EMB), f32)
    stem_w = stem_w.at[0:CARD_A, 0:CAT_HIDDEN].set(st["cat_emb"]["cat_a"])
    stem_w = stem_w.at[CARD_A:CARD_A + CARD_B,
                       CAT_HIDDEN:2 * CAT_HIDDEN].set(st["cat_emb"]["cat_b"])
    stem_w = stem_w.at[NUM_A_COL, 2 * CAT_HIDDEN:2 * CAT_HIDDEN + NUM_HIDDEN].set(
        st["num_w"]["num_a"][0])
    stem_w = stem_w.at[NUM_B_COL, 2 * CAT_HIDDEN + NUM_HIDDEN:EMB].set(
        st["num_w"]["num_b"][0])
    stem_w = stem_w.at[ONES_COL, 2 * CAT_HIDDEN:2 * CAT_HIDDEN + NUM_HIDDEN].set(
        st["num_b"]["num_a"])
    stem_w = stem_w.at[ONES_COL, 2 * CAT_HIDDEN + NUM_HIDDEN:EMB].set(
        st["num_b"]["num_b"])
    w32 = w32.at[:, W_STEM:W_STEM + EMB].set(stem_w)

    # head (zero-padded to 128 lanes)
    w32 = w32.at[:, W_HEAD:W_HEAD + OUTPUT_SIZE].set(params["head_w"])
    rows = rows.at[R_HEADB, 0:OUTPUT_SIZE].set(params["head_b"])

    # sinusoidal PE as sin(t * freq + phase) with interleaved sin/cos layout
    half = EMB // 2
    div = jnp.exp(-jnp.log(jnp.float32(10000.0))
                  * (2.0 * jnp.arange(half, dtype=f32)) / EMB)        # (16,)
    rows = rows.at[R_PE_FREQ, 0:EMB].set(jnp.repeat(div, 2))
    rows = rows.at[R_PE_PHASE, 0:EMB].set(
        jnp.tile(jnp.array([0.0, math.pi / 2.0], f32), half))

    # learnable query
    rows = rows.at[R_QUERY:R_QUERY + LQ, 0:EMB].set(params["query"][0])

    # decoder layers
    for l, lp in enumerate(params["layers"]):
        base = W_LAYER0 + l * L_STRIDE
        rbase = R_LAYER0 + l * R_STRIDE
        vps = fold_vo(lp["wv_s"], lp["wo_s"])
        vpc = fold_vo(lp["wv_c"], lp["wo_c"])
        w32 = w32.at[:, base + L_SQKV:base + L_SQKV + HD].set(lp["wq_s"])
        w32 = w32.at[:, base + L_SQKV + HD:base + L_SQKV + 2 * HD].set(lp["wk_s"])
        w32 = w32.at[:, base + L_SQKV + 2 * HD:base + L_SQKV + 2 * HD + HE].set(vps)
        w32 = w32.at[:, base + L_QC:base + L_QC + HD].set(lp["wq_c"])
        kbase = W_KVX + l * (HD + HE)
        w32 = w32.at[:, kbase:kbase + HD].set(lp["wk_c"])
        w32 = w32.at[:, kbase + HD:kbase + HD + HE].set(vpc)
        w32 = w32.at[:, base + L_W1:base + L_W1 + DIM_FF].set(lp["w1"])
        w32 = w32.at[:, base + L_W2:base + L_W2 + EMB].set(lp["w2"])
        rows = rows.at[rbase + 0, 0:EMB].set(lp["ln_g1"])
        rows = rows.at[rbase + 1, 0:EMB].set(lp["ln_b1"])
        rows = rows.at[rbase + 2, 0:EMB].set(lp["ln_g2"])
        rows = rows.at[rbase + 3, 0:EMB].set(lp["ln_b2"])
        rows = rows.at[rbase + 4, 0:EMB].set(lp["ln_g3"])
        rows = rows.at[rbase + 5, 0:EMB].set(lp["ln_b3"])
        rows = rows.at[rbase + 6, 0:DIM_FF].set(lp["b1"])
        rows = rows.at[rbase + 7, 0:EMB].set(lp["b2"])

    return {"w32": w32, "rows": rows}


# ---------------------------------- main --------------------------------------
if __name__ == "__main__":
    key = jax.random.PRNGKey(0)
    pkey, dkey = jax.random.split(key)
    params = init_params(pkey)
    packed = pack_params(params)      # one-time packing, outside the jitted forward

    dk = jax.random.split(dkey, 4)
    batch = {
        "cat_a": jax.random.randint(dk[0], (B, S), 0, CARD_A),
        "cat_b": jax.random.randint(dk[1], (B, S), 0, CARD_B),
        "num_a": jax.random.normal(dk[2], (B, S), dtype=jnp.float32),
        "num_b": jax.random.normal(dk[3], (B, S), dtype=jnp.float32),
    }
    time = jnp.tile(jnp.arange(S, dtype=jnp.float32)[None, :], (B, 1))

    fwd = jax.jit(flexible_transformer_decoder_forward)
    out = fwd(packed, batch, time)
    out = jax.block_until_ready(out)
    assert out.shape == (B, OUTPUT_SIZE), out.shape
    assert bool(jnp.all(jnp.isfinite(out)))
    print("KERNEL_OK")
</pallas_src>

<mosaic_0001>
module attributes {stable_mosaic.version = 11 : i64} {
  func.func @fused_kernel(%arg0: memref<32x5xf32, #tpu.memory_space<vmem>>, %arg1: memref<32x1056xf32, #tpu.memory_space<vmem>>, %arg2: memref<32x128xf32, #tpu.memory_space<vmem>>, %arg3: memref<2x128xf32, #tpu.memory_space<vmem>>, %arg4: memref<16x32xf32, #tpu.memory_space<vmem>>) attributes {dimension_semantics = [], scalar_prefetch = 0 : i64, scratch_operands = 1 : i64, tpu.core_type = #tpu.core_type<tc>} {
    %c0 = arith.constant 0 : index
    %c0_0 = arith.constant 0 : index
    %0 = vector.load %arg0[%c0, %c0_0] : memref<32x5xf32, #tpu.memory_space<vmem>>, vector<32x5xf32>
    %1 = vector.extract_strided_slice %0 {offsets = [0, 0], sizes = [32, 1], strides = [1, 1]} : vector<32x5xf32> to vector<32x1xf32>
    %2 = vector.extract_strided_slice %0 {offsets = [0, 1], sizes = [32, 1], strides = [1, 1]} : vector<32x5xf32> to vector<32x1xf32>
    %3 = vector.extract_strided_slice %0 {offsets = [0, 2], sizes = [32, 1], strides = [1, 1]} : vector<32x5xf32> to vector<32x1xf32>
    %4 = vector.extract_strided_slice %0 {offsets = [0, 3], sizes = [32, 1], strides = [1, 1]} : vector<32x5xf32> to vector<32x1xf32>
    %5 = vector.extract_strided_slice %0 {offsets = [0, 4], sizes = [32, 1], strides = [1, 1]} : vector<32x5xf32> to vector<32x1xf32>
    %6 = tpu.iota {dimensions = array<i32: 1>} : vector<32x32xi32>
    %7 = arith.sitofp %6 : vector<32x32xi32> to vector<32x32xf32>
    %8 = vector.broadcast %1 : vector<32x1xf32> to vector<32x32xf32>
    %9 = arith.cmpf oeq, %7, %8 : vector<32x32xf32>
    %cst = arith.constant 1.000000e+00 : f32
    %cst_1 = arith.constant 0.000000e+00 : f32
    %10 = vector.broadcast %cst : f32 to vector<32x32xf32>
    %11 = vector.broadcast %cst_1 : f32 to vector<32x32xf32>
    %12 = arith.select %9, %10, %11 : vector<32x32xi1>, vector<32x32xf32>
    %cst_2 = arith.constant 5.000000e+00 : f32
    %13 = vector.broadcast %cst_2 : f32 to vector<32x1xf32>
    %14 = arith.addf %2, %13 : vector<32x1xf32>
    %15 = vector.broadcast %14 : vector<32x1xf32> to vector<32x32xf32>
    %16 = arith.cmpf oeq, %7, %15 : vector<32x32xf32>
    %cst_3 = arith.constant 1.000000e+00 : f32
    %cst_4 = arith.constant 0.000000e+00 : f32
    %17 = vector.broadcast %cst_3 : f32 to vector<32x32xf32>
    %18 = vector.broadcast %cst_4 : f32 to vector<32x32xf32>
    %19 = arith.select %16, %17, %18 : vector<32x32xi1>, vector<32x32xf32>
    %20 = arith.addf %12, %19 : vector<32x32xf32>
    %cst_5 = arith.constant 1.200000e+01 : f32
    %21 = vector.broadcast %cst_5 : f32 to vector<32x32xf32>
    %22 = arith.cmpf oeq, %7, %21 : vector<32x32xf32>
    %cst_6 = arith.constant 0.000000e+00 : f32
    %23 = vector.shape_cast %3 : vector<32x1xf32> to vector<32x1xf32>
    %24 = vector.broadcast %23 : vector<32x1xf32> to vector<32x32xf32>
    %25 = vector.broadcast %cst_6 : f32 to vector<32x32xf32>
    %26 = arith.select %22, %24, %25 : vector<32x32xi1>, vector<32x32xf32>
    %27 = arith.addf %20, %26 : vector<32x32xf32>
    %cst_7 = arith.constant 1.300000e+01 : f32
    %28 = vector.broadcast %cst_7 : f32 to vector<32x32xf32>
    %29 = arith.cmpf oeq, %7, %28 : vector<32x32xf32>
    %cst_8 = arith.constant 0.000000e+00 : f32
    %30 = vector.shape_cast %4 : vector<32x1xf32> to vector<32x1xf32>
    %31 = vector.broadcast %30 : vector<32x1xf32> to vector<32x32xf32>
    %32 = vector.broadcast %cst_8 : f32 to vector<32x32xf32>
    %33 = arith.select %29, %31, %32 : vector<32x32xi1>, vector<32x32xf32>
    %34 = arith.addf %27, %33 : vector<32x32xf32>
    %cst_9 = arith.constant 1.400000e+01 : f32
    %35 = vector.broadcast %cst_9 : f32 to vector<32x32xf32>
    %36 = arith.cmpf oeq, %7, %35 : vector<32x32xf32>
    %cst_10 = arith.constant 1.000000e+00 : f32
    %cst_11 = arith.constant 0.000000e+00 : f32
    %37 = vector.broadcast %cst_10 : f32 to vector<32x32xf32>
    %38 = vector.broadcast %cst_11 : f32 to vector<32x32xf32>
    %39 = arith.select %36, %37, %38 : vector<32x32xi1>, vector<32x32xf32>
    %40 = arith.addf %34, %39 : vector<32x32xf32>
    %c8 = arith.constant 8 : index
    %c0_12 = arith.constant 0 : index
    %41 = vector.load %arg2[%c8, %c0_12] : memref<32x128xf32, #tpu.memory_space<vmem>>, vector<1x32xf32>
    %42 = vector.broadcast %5 : vector<32x1xf32> to vector<32x32xf32>
    %43 = vector.broadcast %41 : vector<1x32xf32> to vector<32x32xf32>
    %44 = arith.mulf %42, %43 : vector<32x32xf32>
    %c9 = arith.constant 9 : index
    %c0_13 = arith.constant 0 : index
    %45 = vector.load %arg2[%c9, %c0_13] : memref<32x128xf32, #tpu.memory_space<vmem>>, vector<1x32xf32>
    %46 = vector.broadcast %45 : vector<1x32xf32> to vector<32x32xf32>
    %47 = arith.addf %44, %46 : vector<32x32xf32>
    %48 = math.sin %47 : vector<32x32xf32>
    %c0_14 = arith.constant 0 : index
    %c384 = arith.constant 384 : index
    %49 = vector.load %arg1[%c0_14, %c384] : memref<32x1056xf32, #tpu.memory_space<vmem>>, vector<32x32xf32>
    %cst_15 = arith.constant dense<0.000000e+00> : vector<32x32xf32>
    %50 = tpu.matmul %40, %49, %cst_15 {dimension_numbers = #tpu.dot_dimension_numbers<[1], [0], [0], [1], [0, 0, 1, 1], [], []>} : vector<32x32xf32>, vector<32x32xf32>, vector<32x32xf32> -> vector<32x32xf32>
    %51 = arith.addf %50, %48 : vector<32x32xf32>
    %c0_16 = arith.constant 0 : index
    %c0_17 = arith.constant 0 : index
    %52 = vector.load %arg1[%c0_16, %c0_17] : memref<32x1056xf32, #tpu.memory_space<vmem>>, vector<32x256xf32>
    %cst_18 = arith.constant dense<0.000000e+00> : vector<32x256xf32>
    %53 = tpu.matmul %51, %52, %cst_18 {dimension_numbers = #tpu.dot_dimension_numbers<[1], [0], [0], [1], [0, 0, 1, 1], [], []>} : vector<32x32xf32>, vector<32x256xf32>, vector<32x256xf32> -> vector<32x256xf32>
    %54 = tpu.iota {dimensions = array<i32: 0>} : vector<16x16xi32>
    %55 = tpu.iota {dimensions = array<i32: 1>} : vector<16x16xi32>
    %c8_i32 = arith.constant 8 : i32
    %56 = vector.broadcast %c8_i32 : i32 to vector<16x16xi32>
    %57 = arith.cmpi sge, %54, %56 : vector<16x16xi32>
    %c8_i32_19 = arith.constant 8 : i32
    %58 = vector.broadcast %c8_i32_19 : i32 to vector<16x16xi32>
    %59 = arith.cmpi sge, %55, %58 : vector<16x16xi32>
    %60 = arith.xori %57, %59 : vector<16x16xi1>
    %cst_20 = arith.constant dense<true> : vector<16x16xi1>
    %61 = arith.xori %60, %cst_20 : vector<16x16xi1>
    %cst_21 = arith.constant 0.000000e+00 : f32
    %cst_22 = arith.constant -1.000000e+30 : f32
    %62 = vector.broadcast %cst_21 : f32 to vector<16x16xf32>
    %63 = vector.broadcast %cst_22 : f32 to vector<16x16xf32>
    %64 = arith.select %61, %62, %63 : vector<16x16xi1>, vector<16x16xf32>
    %65 = tpu.iota {dimensions = array<i32: 0>} : vector<16x32xi32>
    %66 = tpu.iota {dimensions = array<i32: 1>} : vector<16x32xi32>
    %c8_i32_23 = arith.constant 8 : i32
    %67 = vector.broadcast %c8_i32_23 : i32 to vector<16x32xi32>
    %68 = arith.cmpi sge, %65, %67 : vector<16x32xi32>
    %c16_i32 = arith.constant 16 : i32
    %69 = vector.broadcast %c16_i32 : i32 to vector<16x32xi32>
    %70 = arith.cmpi sge, %66, %69 : vector<16x32xi32>
    %71 = arith.xori %68, %70 : vector<16x32xi1>
    %cst_24 = arith.constant dense<true> : vector<16x32xi1>
    %72 = arith.xori %71, %cst_24 : vector<16x32xi1>
    %cst_25 = arith.constant 0.000000e+00 : f32
    %cst_26 = arith.constant -1.000000e+30 : f32
    %73 = vector.broadcast %cst_25 : f32 to vector<16x32xf32>
    %74 = vector.broadcast %cst_26 : f32 to vector<16x32xf32>
    %75 = arith.select %72, %73, %74 : vector<16x32xi1>, vector<16x32xf32>
    %c0_27 = arith.constant 0 : index
    %c0_28 = arith.constant 0 : index
    %76 = vector.load %arg2[%c0_27, %c0_28] : memref<32x128xf32, #tpu.memory_space<vmem>>, vector<8x32xf32>
    %c0_29 = arith.constant 0 : index
    %c416 = arith.constant 416 : index
    %77 = vector.load %arg1[%c0_29, %c416] : memref<32x1056xf32, #tpu.memory_space<vmem>>, vector<32x192xf32>
    %cst_30 = arith.constant dense<0.000000e+00> : vector<8x192xf32>
    %78 = tpu.matmul %76, %77, %cst_30 {dimension_numbers = #tpu.dot_dimension_numbers<[1], [0], [0], [1], [0, 0, 1, 1], [], []>} : vector<8x32xf32>, vector<32x192xf32>, vector<8x192xf32> -> vector<8x192xf32>
    %79 = vector.extract_strided_slice %78 {offsets = [0, 0], sizes = [8, 64], strides = [1, 1]} : vector<8x192xf32> to vector<8x64xf32>
    %80 = vector.extract_strided_slice %78 {offsets = [0, 64], sizes = [8, 64], strides = [1, 1]} : vector<8x192xf32> to vector<8x64xf32>
    %81 = vector.extract_strided_slice %78 {offsets = [0, 128], sizes = [8, 64], strides = [1, 1]} : vector<8x192xf32> to vector<8x64xf32>
    %82 = vector.extract_strided_slice %79 {offsets = [0, 0], sizes = [8, 32], strides = [1, 1]} : vector<8x64xf32> to vector<8x32xf32>
    %83 = vector.extract_strided_slice %80 {offsets = [0, 0], sizes = [8, 32], strides = [1, 1]} : vector<8x64xf32> to vector<8x32xf32>
    %84 = vector.extract_strided_slice %81 {offsets = [0, 0], sizes = [8, 32], strides = [1, 1]} : vector<8x64xf32> to vector<8x32xf32>
    %cst_31 = arith.constant dense<0.000000e+00> : vector<8x8xf32>
    %85 = tpu.matmul %82, %83, %cst_31 {dimension_numbers = #tpu.dot_dimension_numbers<[1], [1], [0], [0], [0, 0, 1, 0], [], []>} : vector<8x32xf32>, vector<8x32xf32>, vector<8x8xf32> -> vector<8x8xf32>
    %cst_32 = arith.constant 0.176776692 : f32
    %86 = vector.broadcast %cst_32 : f32 to vector<8x8xf32>
    %87 = arith.mulf %85, %86 : vector<8x8xf32>
    %cst_33 = arith.constant dense<0xFF800000> : vector<8xf32>
    %88 = vector.multi_reduction <maximumf>, %87, %cst_33 [1] : vector<8x8xf32> to vector<8xf32>
    %89 = vector.shape_cast %88 : vector<8xf32> to vector<8x1xf32>
    %90 = vector.broadcast %89 : vector<8x1xf32> to vector<8x8xf32>
    %91 = arith.subf %87, %90 : vector<8x8xf32>
    %92 = math.exp %91 : vector<8x8xf32>
    %cst_34 = arith.constant dense<0.000000e+00> : vector<8xf32>
    %93 = vector.multi_reduction <add>, %92, %cst_34 [1] : vector<8x8xf32> to vector<8xf32>
    %94 = vector.shape_cast %93 : vector<8xf32> to vector<8x1xf32>
    %95 = tpu.reciprocal %94 {approx = true} : vector<8x1xf32> -> vector<8x1xf32>
    %96 = vector.broadcast %95 : vector<8x1xf32> to vector<8x8xf32>
    %97 = arith.mulf %92, %96 : vector<8x8xf32>
    %cst_35 = arith.constant dense<0.000000e+00> : vector<8x32xf32>
    %98 = tpu.matmul %97, %84, %cst_35 {dimension_numbers = #tpu.dot_dimension_numbers<[1], [0], [0], [1], [0, 0, 1, 1], [], []>} : vector<8x8xf32>, vector<8x32xf32>, vector<8x32xf32> -> vector<8x32xf32>
    %99 = vector.extract_strided_slice %79 {offsets = [0, 32], sizes = [8, 32], strides = [1, 1]} : vector<8x64xf32> to vector<8x32xf32>
    %100 = vector.extract_strided_slice %80 {offsets = [0, 32], sizes = [8, 32], strides = [1, 1]} : vector<8x64xf32> to vector<8x32xf32>
    %101 = vector.extract_strided_slice %81 {offsets = [0, 32], sizes = [8, 32], strides = [1, 1]} : vector<8x64xf32> to vector<8x32xf32>
    %cst_36 = arith.constant dense<0.000000e+00> : vector<8x8xf32>
    %102 = tpu.matmul %99, %100, %cst_36 {dimension_numbers = #tpu.dot_dimension_numbers<[1], [1], [0], [0], [0, 0, 1, 0], [], []>} : vector<8x32xf32>, vector<8x32xf32>, vector<8x8xf32> -> vector<8x8xf32>
    %cst_37 = arith.constant 0.176776692 : f32
    %103 = vector.broadcast %cst_37 : f32 to vector<8x8xf32>
    %104 = arith.mulf %102, %103 : vector<8x8xf32>
    %cst_38 = arith.constant dense<0xFF800000> : vector<8xf32>
    %105 = vector.multi_reduction <maximumf>, %104, %cst_38 [1] : vector<8x8xf32> to vector<8xf32>
    %106 = vector.shape_cast %105 : vector<8xf32> to vector<8x1xf32>
    %107 = vector.broadcast %106 : vector<8x1xf32> to vector<8x8xf32>
    %108 = arith.subf %104, %107 : vector<8x8xf32>
    %109 = math.exp %108 : vector<8x8xf32>
    %cst_39 = arith.constant dense<0.000000e+00> : vector<8xf32>
    %110 = vector.multi_reduction <add>, %109, %cst_39 [1] : vector<8x8xf32> to vector<8xf32>
    %111 = vector.shape_cast %110 : vector<8xf32> to vector<8x1xf32>
    %112 = tpu.reciprocal %111 {approx = true} : vector<8x1xf32> -> vector<8x1xf32>
    %113 = vector.broadcast %112 : vector<8x1xf32> to vector<8x8xf32>
    %114 = arith.mulf %109, %113 : vector<8x8xf32>
    %cst_40 = arith.constant dense<0.000000e+00> : vector<8x32xf32>
    %115 = tpu.matmul %114, %101, %cst_40 {dimension_numbers = #tpu.dot_dimension_numbers<[1], [0], [0], [1], [0, 0, 1, 1], [], []>} : vector<8x8xf32>, vector<8x32xf32>, vector<8x32xf32> -> vector<8x32xf32>
    %116 = arith.addf %98, %115 : vector<8x32xf32>
    %117 = arith.addf %76, %116 : vector<8x32xf32>
    %c11 = arith.constant 11 : index
    %c0_41 = arith.constant 0 : index
    %118 = vector.load %arg2[%c11, %c0_41] : memref<32x128xf32, #tpu.memory_space<vmem>>, vector<1x32xf32>
    %c12 = arith.constant 12 : index
    %c0_42 = arith.constant 0 : index
    %119 = vector.load %arg2[%c12, %c0_42] : memref<32x128xf32, #tpu.memory_space<vmem>>, vector<1x32xf32>
    %cst_43 = arith.constant dense<0.000000e+00> : vector<8xf32>
    %120 = vector.multi_reduction <add>, %117, %cst_43 [1] : vector<8x32xf32> to vector<8xf32>
    %121 = vector.shape_cast %120 : vector<8xf32> to vector<8x1xf32>
    %cst_44 = arith.constant 3.200000e+01 : f32
    %122 = vector.broadcast %cst_44 : f32 to vector<8x1xf32>
    %123 = arith.divf %121, %122 : vector<8x1xf32>
    %124 = vector.broadcast %123 : vector<8x1xf32> to vector<8x32xf32>
    %125 = arith.subf %117, %124 : vector<8x32xf32>
    %126 = arith.mulf %125, %125 : vector<8x32xf32>
    %cst_45 = arith.constant dense<0.000000e+00> : vector<8xf32>
    %127 = vector.multi_reduction <add>, %126, %cst_45 [1] : vector<8x32xf32> to vector<8xf32>
    %128 = vector.shape_cast %127 : vector<8xf32> to vector<8x1xf32>
    %cst_46 = arith.constant 3.200000e+01 : f32
    %129 = vector.broadcast %cst_46 : f32 to vector<8x1xf32>
    %130 = arith.divf %128, %129 : vector<8x1xf32>
    %cst_47 = arith.constant 9.99999974E-6 : f32
    %131 = vector.broadcast %cst_47 : f32 to vector<8x1xf32>
    %132 = arith.addf %130, %131 : vector<8x1xf32>
    %133 = math.rsqrt %132 : vector<8x1xf32>
    %134 = vector.broadcast %133 : vector<8x1xf32> to vector<8x32xf32>
    %135 = arith.mulf %125, %134 : vector<8x32xf32>
    %136 = vector.broadcast %118 : vector<1x32xf32> to vector<8x32xf32>
    %137 = arith.mulf %135, %136 : vector<8x32xf32>
    %138 = vector.broadcast %119 : vector<1x32xf32> to vector<8x32xf32>
    %139 = arith.addf %137, %138 : vector<8x32xf32>
    %c0_48 = arith.constant 0 : index
    %c0_49 = arith.constant 0 : index
    %140 = vector.load %arg4[%c0_48, %c0_49] : memref<16x32xf32, #tpu.memory_space<vmem>>, vector<8x32xf32>
    tpu.vector_store %arg4[%c0_48, %c0_49], %139 {strides = array<i32>} : memref<16x32xf32, #tpu.memory_space<vmem>>, vector<8x32xf32>,
    %c8_50 = arith.constant 8 : index
    %c0_51 = arith.constant 0 : index
    %141 = vector.load %arg4[%c8_50, %c0_51] : memref<16x32xf32, #tpu.memory_space<vmem>>, vector<8x32xf32>
    tpu.vector_store %arg4[%c8_50, %c0_51], %139 {strides = array<i32>} : memref<16x32xf32, #tpu.memory_space<vmem>>, vector<8x32xf32>,
    %c0_52 = arith.constant 0 : index
    %c0_53 = arith.constant 0 : index
    %142 = vector.load %arg4[%c0_52, %c0_53] : memref<16x32xf32, #tpu.memory_space<vmem>>, vector<16x32xf32>
    %c0_54 = arith.constant 0 : index
    %c608 = arith.constant 608 : index
    %143 = vector.load %arg1[%c0_54, %c608] : memref<32x1056xf32, #tpu.memory_space<vmem>>, vector<32x64xf32>
    %cst_55 = arith.constant dense<0.000000e+00> : vector<16x64xf32>
    %144 = tpu.matmul %142, %143, %cst_55 {dimension_numbers = #tpu.dot_dimension_numbers<[1], [0], [0], [1], [0, 0, 1, 1], [], []>} : vector<16x32xf32>, vector<32x64xf32>, vector<16x64xf32> -> vector<16x64xf32>
    %145 = vector.extract_strided_slice %53 {offsets = [0, 0], sizes = [32, 128], strides = [1, 1]} : vector<32x256xf32> to vector<32x128xf32>
    %146 = vector.extract_strided_slice %145 {offsets = [0, 0], sizes = [32, 64], strides = [1, 1]} : vector<32x128xf32> to vector<32x64xf32>
    %147 = vector.extract_strided_slice %145 {offsets = [0, 64], sizes = [32, 64], strides = [1, 1]} : vector<32x128xf32> to vector<32x64xf32>
    %148 = vector.extract_strided_slice %144 {offsets = [0, 0], sizes = [16, 32], strides = [1, 1]} : vector<16x64xf32> to vector<16x32xf32>
    %149 = vector.extract_strided_slice %146 {offsets = [0, 0], sizes = [32, 32], strides = [1, 1]} : vector<32x64xf32> to vector<32x32xf32>
    %150 = vector.extract_strided_slice %147 {offsets = [0, 0], sizes = [32, 32], strides = [1, 1]} : vector<32x64xf32> to vector<32x32xf32>
    %cst_56 = arith.constant dense<0.000000e+00> : vector<16x32xf32>
    %151 = tpu.matmul %148, %149, %cst_56 {dimension_numbers = #tpu.dot_dimension_numbers<[1], [1], [0], [0], [0, 0, 1, 0], [], []>} : vector<16x32xf32>, vector<32x32xf32>, vector<16x32xf32> -> vector<16x32xf32>
    %cst_57 = arith.constant 0.176776692 : f32
    %152 = vector.broadcast %cst_57 : f32 to vector<16x32xf32>
    %153 = arith.mulf %151, %152 : vector<16x32xf32>
    %154 = arith.addf %153, %75 : vector<16x32xf32>
    %cst_58 = arith.constant dense<0xFF800000> : vector<16xf32>
    %155 = vector.multi_reduction <maximumf>, %154, %cst_58 [1] : vector<16x32xf32> to vector<16xf32>
    %156 = vector.shape_cast %155 : vector<16xf32> to vector<16x1xf32>
    %157 = vector.broadcast %156 : vector<16x1xf32> to vector<16x32xf32>
    %158 = arith.subf %154, %157 : vector<16x32xf32>
    %159 = math.exp %158 : vector<16x32xf32>
    %cst_59 = arith.constant dense<0.000000e+00> : vector<16xf32>
    %160 = vector.multi_reduction <add>, %159, %cst_59 [1] : vector<16x32xf32> to vector<16xf32>
    %161 = vector.shape_cast %160 : vector<16xf32> to vector<16x1xf32>
    %162 = tpu.reciprocal %161 {approx = true} : vector<16x1xf32> -> vector<16x1xf32>
    %163 = vector.broadcast %162 : vector<16x1xf32> to vector<16x32xf32>
    %164 = arith.mulf %159, %163 : vector<16x32xf32>
    %cst_60 = arith.constant dense<0.000000e+00> : vector<16x32xf32>
    %165 = tpu.matmul %164, %150, %cst_60 {dimension_numbers = #tpu.dot_dimension_numbers<[1], [0], [0], [1], [0, 0, 1, 1], [], []>} : vector<16x32xf32>, vector<32x32xf32>, vector<16x32xf32> -> vector<16x32xf32>
    %166 = vector.extract_strided_slice %144 {offsets = [0, 32], sizes = [16, 32], strides = [1, 1]} : vector<16x64xf32> to vector<16x32xf32>
    %167 = vector.extract_strided_slice %146 {offsets = [0, 32], sizes = [32, 32], strides = [1, 1]} : vector<32x64xf32> to vector<32x32xf32>
    %168 = vector.extract_strided_slice %147 {offsets = [0, 32], sizes = [32, 32], strides = [1, 1]} : vector<32x64xf32> to vector<32x32xf32>
    %cst_61 = arith.constant dense<0.000000e+00> : vector<16x32xf32>
    %169 = tpu.matmul %166, %167, %cst_61 {dimension_numbers = #tpu.dot_dimension_numbers<[1], [1], [0], [0], [0, 0, 1, 0], [], []>} : vector<16x32xf32>, vector<32x32xf32>, vector<16x32xf32> -> vector<16x32xf32>
    %cst_62 = arith.constant 0.176776692 : f32
    %170 = vector.broadcast %cst_62 : f32 to vector<16x32xf32>
    %171 = arith.mulf %169, %170 : vector<16x32xf32>
    %172 = arith.addf %171, %75 : vector<16x32xf32>
    %cst_63 = arith.constant dense<0xFF800000> : vector<16xf32>
    %173 = vector.multi_reduction <maximumf>, %172, %cst_63 [1] : vector<16x32xf32> to vector<16xf32>
    %174 = vector.shape_cast %173 : vector<16xf32> to vector<16x1xf32>
    %175 = vector.broadcast %174 : vector<16x1xf32> to vector<16x32xf32>
    %176 = arith.subf %172, %175 : vector<16x32xf32>
    %177 = math.exp %176 : vector<16x32xf32>
    %cst_64 = arith.constant dense<0.000000e+00> : vector<16xf32>
    %178 = vector.multi_reduction <add>, %177, %cst_64 [1] : vector<16x32xf32> to vector<16xf32>
    %179 = vector.shape_cast %178 : vector<16xf32> to vector<16x1xf32>
    %180 = tpu.reciprocal %179 {approx = true} : vector<16x1xf32> -> vector<16x1xf32>
    %181 = vector.broadcast %180 : vector<16x1xf32> to vector<16x32xf32>
    %182 = arith.mulf %177, %181 : vector<16x32xf32>
    %cst_65 = arith.constant dense<0.000000e+00> : vector<16x32xf32>
    %183 = tpu.matmul %182, %168, %cst_65 {dimension_numbers = #tpu.dot_dimension_numbers<[1], [0], [0], [1], [0, 0, 1, 1], [], []>} : vector<16x32xf32>, vector<32x32xf32>, vector<16x32xf32> -> vector<16x32xf32>
    %184 = arith.addf %165, %183 : vector<16x32xf32>
    %185 = arith.addf %142, %184 : vector<16x32xf32>
    %c13 = arith.constant 13 : index
    %c0_66 = arith.constant 0 : index
    %186 = vector.load %arg2[%c13, %c0_66] : memref<32x128xf32, #tpu.memory_space<vmem>>, vector<1x32xf32>
    %c14 = arith.constant 14 : index
    %c0_67 = arith.constant 0 : index
    %187 = vector.load %arg2[%c14, %c0_67] : memref<32x128xf32, #tpu.memory_space<vmem>>, vector<1x32xf32>
    %cst_68 = arith.constant dense<0.000000e+00> : vector<16xf32>
    %188 = vector.multi_reduction <add>, %185, %cst_68 [1] : vector<16x32xf32> to vector<16xf32>
    %189 = vector.shape_cast %188 : vector<16xf32> to vector<16x1xf32>
    %cst_69 = arith.constant 3.200000e+01 : f32
    %190 = vector.broadcast %cst_69 : f32 to vector<16x1xf32>
    %191 = arith.divf %189, %190 : vector<16x1xf32>
    %192 = vector.broadcast %191 : vector<16x1xf32> to vector<16x32xf32>
    %193 = arith.subf %185, %192 : vector<16x32xf32>
    %194 = arith.mulf %193, %193 : vector<16x32xf32>
    %cst_70 = arith.constant dense<0.000000e+00> : vector<16xf32>
    %195 = vector.multi_reduction <add>, %194, %cst_70 [1] : vector<16x32xf32> to vector<16xf32>
    %196 = vector.shape_cast %195 : vector<16xf32> to vector<16x1xf32>
    %cst_71 = arith.constant 3.200000e+01 : f32
    %197 = vector.broadcast %cst_71 : f32 to vector<16x1xf32>
    %198 = arith.divf %196, %197 : vector<16x1xf32>
    %cst_72 = arith.constant 9.99999974E-6 : f32
    %199 = vector.broadcast %cst_72 : f32 to vector<16x1xf32>
    %200 = arith.addf %198, %199 : vector<16x1xf32>
    %201 = math.rsqrt %200 : vector<16x1xf32>
    %202 = vector.broadcast %201 : vector<16x1xf32> to vector<16x32xf32>
    %203 = arith.mulf %193, %202 : vector<16x32xf32>
    %204 = vector.broadcast %186 : vector<1x32xf32> to vector<16x32xf32>
    %205 = arith.mulf %203, %204 : vector<16x32xf32>
    %206 = vector.broadcast %187 : vector<1x32xf32> to vector<16x32xf32>
    %207 = arith.addf %205, %206 : vector<16x32xf32>
    %c0_73 = arith.constant 0 : index
    %c672 = arith.constant 672 : index
    %208 = vector.load %arg1[%c0_73, %c672] : memref<32x1056xf32, #tpu.memory_space<vmem>>, vector<32x32xf32>
    %cst_74 = arith.constant dense<0.000000e+00> : vector<16x32xf32>
    %209 = tpu.matmul %207, %208, %cst_74 {dimension_numbers = #tpu.dot_dimension_numbers<[1], [0], [0], [1], [0, 0, 1, 1], [], []>} : vector<16x32xf32>, vector<32x32xf32>, vector<16x32xf32> -> vector<16x32xf32>
    %c17 = arith.constant 17 : index
    %c0_75 = arith.constant 0 : index
    %210 = vector.load %arg2[%c17, %c0_75] : memref<32x128xf32, #tpu.memory_space<vmem>>, vector<1x32xf32>
    %211 = vector.broadcast %210 : vector<1x32xf32> to vector<16x32xf32>
    %212 = arith.addf %209, %211 : vector<16x32xf32>
    %cst_76 = arith.constant 0.000000e+00 : f32
    %213 = vector.broadcast %cst_76 : f32 to vector<16x32xf32>
    %214 = arith.maximumf %212, %213 : vector<16x32xf32>
    %c0_77 = arith.constant 0 : index
    %c704 = arith.constant 704 : index
    %215 = vector.load %arg1[%c0_77, %c704] : memref<32x1056xf32, #tpu.memory_space<vmem>>, vector<32x32xf32>
    %cst_78 = arith.constant dense<0.000000e+00> : vector<16x32xf32>
    %216 = tpu.matmul %214, %215, %cst_78 {dimension_numbers = #tpu.dot_dimension_numbers<[1], [0], [0], [1], [0, 0, 1, 1], [], []>} : vector<16x32xf32>, vector<32x32xf32>, vector<16x32xf32> -> vector<16x32xf32>
    %c18 = arith.constant 18 : index
    %c0_79 = arith.constant 0 : index
    %217 = vector.load %arg2[%c18, %c0_79] : memref<32x128xf32, #tpu.memory_space<vmem>>, vector<1x32xf32>
    %218 = vector.broadcast %217 : vector<1x32xf32> to vector<16x32xf32>
    %219 = arith.addf %216, %218 : vector<16x32xf32>
    %220 = arith.addf %207, %219 : vector<16x32xf32>
    %c15 = arith.constant 15 : index
    %c0_80 = arith.constant 0 : index
    %221 = vector.load %arg2[%c15, %c0_80] : memref<32x128xf32, #tpu.memory_space<vmem>>, vector<1x32xf32>
    %c16 = arith.constant 16 : index
    %c0_81 = arith.constant 0 : index
    %222 = vector.load %arg2[%c16, %c0_81] : memref<32x128xf32, #tpu.memory_space<vmem>>, vector<1x32xf32>
    %cst_82 = arith.constant dense<0.000000e+00> : vector<16xf32>
    %223 = vector.multi_reduction <add>, %220, %cst_82 [1] : vector<16x32xf32> to vector<16xf32>
    %224 = vector.shape_cast %223 : vector<16xf32> to vector<16x1xf32>
    %cst_83 = arith.constant 3.200000e+01 : f32
    %225 = vector.broadcast %cst_83 : f32 to vector<16x1xf32>
    %226 = arith.divf %224, %225 : vector<16x1xf32>
    %227 = vector.broadcast %226 : vector<16x1xf32> to vector<16x32xf32>
    %228 = arith.subf %220, %227 : vector<16x32xf32>
    %229 = arith.mulf %228, %228 : vector<16x32xf32>
    %cst_84 = arith.constant dense<0.000000e+00> : vector<16xf32>
    %230 = vector.multi_reduction <add>, %229, %cst_84 [1] : vector<16x32xf32> to vector<16xf32>
    %231 = vector.shape_cast %230 : vector<16xf32> to vector<16x1xf32>
    %cst_85 = arith.constant 3.200000e+01 : f32
    %232 = vector.broadcast %cst_85 : f32 to vector<16x1xf32>
    %233 = arith.divf %231, %232 : vector<16x1xf32>
    %cst_86 = arith.constant 9.99999974E-6 : f32
    %234 = vector.broadcast %cst_86 : f32 to vector<16x1xf32>
    %235 = arith.addf %233, %234 : vector<16x1xf32>
    %236 = math.rsqrt %235 : vector<16x1xf32>
    %237 = vector.broadcast %236 : vector<16x1xf32> to vector<16x32xf32>
    %238 = arith.mulf %228, %237 : vector<16x32xf32>
    %239 = vector.broadcast %221 : vector<1x32xf32> to vector<16x32xf32>
    %240 = arith.mulf %238, %239 : vector<16x32xf32>
    %241 = vector.broadcast %222 : vector<1x32xf32> to vector<16x32xf32>
    %242 = arith.addf %240, %241 : vector<16x32xf32>
    %c0_87 = arith.constant 0 : index
    %c736 = arith.constant 736 : index
    %243 = vector.load %arg1[%c0_87, %c736] : memref<32x1056xf32, #tpu.memory_space<vmem>>, vector<32x192xf32>
    %cst_88 = arith.constant dense<0.000000e+00> : vector<16x192xf32>
    %244 = tpu.matmul %242, %243, %cst_88 {dimension_numbers = #tpu.dot_dimension_numbers<[1], [0], [0], [1], [0, 0, 1, 1], [], []>} : vector<16x32xf32>, vector<32x192xf32>, vector<16x192xf32> -> vector<16x192xf32>
    %245 = vector.extract_strided_slice %244 {offsets = [0, 0], sizes = [16, 64], strides = [1, 1]} : vector<16x192xf32> to vector<16x64xf32>
    %246 = vector.extract_strided_slice %244 {offsets = [0, 64], sizes = [16, 64], strides = [1, 1]} : vector<16x192xf32> to vector<16x64xf32>
    %247 = vector.extract_strided_slice %244 {offsets = [0, 128], sizes = [16, 64], strides = [1, 1]} : vector<16x192xf32> to vector<16x64xf32>
    %248 = vector.extract_strided_slice %245 {offsets = [0, 0], sizes = [16, 32], strides = [1, 1]} : vector<16x64xf32> to vector<16x32xf32>
    %249 = vector.extract_strided_slice %246 {offsets = [0, 0], sizes = [16, 32], strides = [1, 1]} : vector<16x64xf32> to vector<16x32xf32>
    %250 = vector.extract_strided_slice %247 {offsets = [0, 0], sizes = [16, 32], strides = [1, 1]} : vector<16x64xf32> to vector<16x32xf32>
    %cst_89 = arith.constant dense<0.000000e+00> : vector<16x16xf32>
    %251 = tpu.matmul %248, %249, %cst_89 {dimension_numbers = #tpu.dot_dimension_numbers<[1], [1], [0], [0], [0, 0, 1, 0], [], []>} : vector<16x32xf32>, vector<16x32xf32>, vector<16x16xf32> -> vector<16x16xf32>
    %cst_90 = arith.constant 0.176776692 : f32
    %252 = vector.broadcast %cst_90 : f32 to vector<16x16xf32>
    %253 = arith.mulf %251, %252 : vector<16x16xf32>
    %254 = arith.addf %253, %64 : vector<16x16xf32>
    %cst_91 = arith.constant dense<0xFF800000> : vector<16xf32>
    %255 = vector.multi_reduction <maximumf>, %254, %cst_91 [1] : vector<16x16xf32> to vector<16xf32>
    %256 = vector.shape_cast %255 : vector<16xf32> to vector<16x1xf32>
    %257 = vector.broadcast %256 : vector<16x1xf32> to vector<16x16xf32>
    %258 = arith.subf %254, %257 : vector<16x16xf32>
    %259 = math.exp %258 : vector<16x16xf32>
    %cst_92 = arith.constant dense<0.000000e+00> : vector<16xf32>
    %260 = vector.multi_reduction <add>, %259, %cst_92 [1] : vector<16x16xf32> to vector<16xf32>
    %261 = vector.shape_cast %260 : vector<16xf32> to vector<16x1xf32>
    %262 = tpu.reciprocal %261 {approx = true} : vector<16x1xf32> -> vector<16x1xf32>
    %263 = vector.broadcast %262 : vector<16x1xf32> to vector<16x16xf32>
    %264 = arith.mulf %259, %263 : vector<16x16xf32>
    %cst_93 = arith.constant dense<0.000000e+00> : vector<16x32xf32>
    %265 = tpu.matmul %264, %250, %cst_93 {dimension_numbers = #tpu.dot_dimension_numbers<[1], [0], [0], [1], [0, 0, 1, 1], [], []>} : vector<16x16xf32>, vector<16x32xf32>, vector<16x32xf32> -> vector<16x32xf32>
    %266 = vector.extract_strided_slice %245 {offsets = [0, 32], sizes = [16, 32], strides = [1, 1]} : vector<16x64xf32> to vector<16x32xf32>
    %267 = vector.extract_strided_slice %246 {offsets = [0, 32], sizes = [16, 32], strides = [1, 1]} : vector<16x64xf32> to vector<16x32xf32>
    %268 = vector.extract_strided_slice %247 {offsets = [0, 32], sizes = [16, 32], strides = [1, 1]} : vector<16x64xf32> to vector<16x32xf32>
    %cst_94 = arith.constant dense<0.000000e+00> : vector<16x16xf32>
    %269 = tpu.matmul %266, %267, %cst_94 {dimension_numbers = #tpu.dot_dimension_numbers<[1], [1], [0], [0], [0, 0, 1, 0], [], []>} : vector<16x32xf32>, vector<16x32xf32>, vector<16x16xf32> -> vector<16x16xf32>
    %cst_95 = arith.constant 0.176776692 : f32
    %270 = vector.broadcast %cst_95 : f32 to vector<16x16xf32>
    %271 = arith.mulf %269, %270 : vector<16x16xf32>
    %272 = arith.addf %271, %64 : vector<16x16xf32>
    %cst_96 = arith.constant dense<0xFF800000> : vector<16xf32>
    %273 = vector.multi_reduction <maximumf>, %272, %cst_96 [1] : vector<16x16xf32> to vector<16xf32>
    %274 = vector.shape_cast %273 : vector<16xf32> to vector<16x1xf32>
    %275 = vector.broadcast %274 : vector<16x1xf32> to vector<16x16xf32>
    %276 = arith.subf %272, %275 : vector<16x16xf32>
    %277 = math.exp %276 : vector<16x16xf32>
    %cst_97 = arith.constant dense<0.000000e+00> : vector<16xf32>
    %278 = vector.multi_reduction <add>, %277, %cst_97 [1] : vector<16x16xf32> to vector<16xf32>
    %279 = vector.shape_cast %278 : vector<16xf32> to vector<16x1xf32>
    %280 = tpu.reciprocal %279 {approx = true} : vector<16x1xf32> -> vector<16x1xf32>
    %281 = vector.broadcast %280 : vector<16x1xf32> to vector<16x16xf32>
    %282 = arith.mulf %277, %281 : vector<16x16xf32>
    %cst_98 = arith.constant dense<0.000000e+00> : vector<16x32xf32>
    %283 = tpu.matmul %282, %268, %cst_98 {dimension_numbers = #tpu.dot_dimension_numbers<[1], [0], [0], [1], [0, 0, 1, 1], [], []>} : vector<16x16xf32>, vector<16x32xf32>, vector<16x32xf32> -> vector<16x32xf32>
    %284 = arith.addf %265, %283 : vector<16x32xf32>
    %285 = arith.addf %242, %284 : vector<16x32xf32>
    %c19 = arith.constant 19 : index
    %c0_99 = arith.constant 0 : index
    %286 = vector.load %arg2[%c19, %c0_99] : memref<32x128xf32, #tpu.memory_space<vmem>>, vector<1x32xf32>
    %c20 = arith.constant 20 : index
    %c0_100 = arith.constant 0 : index
    %287 = vector.load %arg2[%c20, %c0_100] : memref<32x128xf32, #tpu.memory_space<vmem>>, vector<1x32xf32>
    %cst_101 = arith.constant dense<0.000000e+00> : vector<16xf32>
    %288 = vector.multi_reduction <add>, %285, %cst_101 [1] : vector<16x32xf32> to vector<16xf32>
    %289 = vector.shape_cast %288 : vector<16xf32> to vector<16x1xf32>
    %cst_102 = arith.constant 3.200000e+01 : f32
    %290 = vector.broadcast %cst_102 : f32 to vector<16x1xf32>
    %291 = arith.divf %289, %290 : vector<16x1xf32>
    %292 = vector.broadcast %291 : vector<16x1xf32> to vector<16x32xf32>
    %293 = arith.subf %285, %292 : vector<16x32xf32>
    %294 = arith.mulf %293, %293 : vector<16x32xf32>
    %cst_103 = arith.constant dense<0.000000e+00> : vector<16xf32>
    %295 = vector.multi_reduction <add>, %294, %cst_103 [1] : vector<16x32xf32> to vector<16xf32>
    %296 = vector.shape_cast %295 : vector<16xf32> to vector<16x1xf32>
    %cst_104 = arith.constant 3.200000e+01 : f32
    %297 = vector.broadcast %cst_104 : f32 to vector<16x1xf32>
    %298 = arith.divf %296, %297 : vector<16x1xf32>
    %cst_105 = arith.constant 9.99999974E-6 : f32
    %299 = vector.broadcast %cst_105 : f32 to vector<16x1xf32>
    %300 = arith.addf %298, %299 : vector<16x1xf32>
    %301 = math.rsqrt %300 : vector<16x1xf32>
    %302 = vector.broadcast %301 : vector<16x1xf32> to vector<16x32xf32>
    %303 = arith.mulf %293, %302 : vector<16x32xf32>
    %304 = vector.broadcast %286 : vector<1x32xf32> to vector<16x32xf32>
    %305 = arith.mulf %303, %304 : vector<16x32xf32>
    %306 = vector.broadcast %287 : vector<1x32xf32> to vector<16x32xf32>
    %307 = arith.addf %305, %306 : vector<16x32xf32>
    %c0_106 = arith.constant 0 : index
    %c928 = arith.constant 928 : index
    %308 = vector.load %arg1[%c0_106, %c928] : memref<32x1056xf32, #tpu.memory_space<vmem>>, vector<32x64xf32>
    %cst_107 = arith.constant dense<0.000000e+00> : vector<16x64xf32>
    %309 = tpu.matmul %307, %308, %cst_107 {dimension_numbers = #tpu.dot_dimension_numbers<[1], [0], [0], [1], [0, 0, 1, 1], [], []>} : vector<16x32xf32>, vector<32x64xf32>, vector<16x64xf32> -> vector<16x64xf32>
    %310 = vector.extract_strided_slice %53 {offsets = [0, 128], sizes = [32, 128], strides = [1, 1]} : vector<32x256xf32> to vector<32x128xf32>
    %311 = vector.extract_strided_slice %310 {offsets = [0, 0], sizes = [32, 64], strides = [1, 1]} : vector<32x128xf32> to vector<32x64xf32>
    %312 = vector.extract_strided_slice %310 {offsets = [0, 64], sizes = [32, 64], strides = [1, 1]} : vector<32x128xf32> to vector<32x64xf32>
    %313 = vector.extract_strided_slice %309 {offsets = [0, 0], sizes = [16, 32], strides = [1, 1]} : vector<16x64xf32> to vector<16x32xf32>
    %314 = vector.extract_strided_slice %311 {offsets = [0, 0], sizes = [32, 32], strides = [1, 1]} : vector<32x64xf32> to vector<32x32xf32>
    %315 = vector.extract_strided_slice %312 {offsets = [0, 0], sizes = [32, 32], strides = [1, 1]} : vector<32x64xf32> to vector<32x32xf32>
    %cst_108 = arith.constant dense<0.000000e+00> : vector<16x32xf32>
    %316 = tpu.matmul %313, %314, %cst_108 {dimension_numbers = #tpu.dot_dimension_numbers<[1], [1], [0], [0], [0, 0, 1, 0], [], []>} : vector<16x32xf32>, vector<32x32xf32>, vector<16x32xf32> -> vector<16x32xf32>
    %cst_109 = arith.constant 0.176776692 : f32
    %317 = vector.broadcast %cst_109 : f32 to vector<16x32xf32>
    %318 = arith.mulf %316, %317 : vector<16x32xf32>
    %319 = arith.addf %318, %75 : vector<16x32xf32>
    %cst_110 = arith.constant dense<0xFF800000> : vector<16xf32>
    %320 = vector.multi_reduction <maximumf>, %319, %cst_110 [1] : vector<16x32xf32> to vector<16xf32>
    %321 = vector.shape_cast %320 : vector<16xf32> to vector<16x1xf32>
    %322 = vector.broadcast %321 : vector<16x1xf32> to vector<16x32xf32>
    %323 = arith.subf %319, %322 : vector<16x32xf32>
    %324 = math.exp %323 : vector<16x32xf32>
    %cst_111 = arith.constant dense<0.000000e+00> : vector<16xf32>
    %325 = vector.multi_reduction <add>, %324, %cst_111 [1] : vector<16x32xf32> to vector<16xf32>
    %326 = vector.shape_cast %325 : vector<16xf32> to vector<16x1xf32>
    %327 = tpu.reciprocal %326 {approx = true} : vector<16x1xf32> -> vector<16x1xf32>
    %328 = vector.broadcast %327 : vector<16x1xf32> to vector<16x32xf32>
    %329 = arith.mulf %324, %328 : vector<16x32xf32>
    %cst_112 = arith.constant dense<0.000000e+00> : vector<16x32xf32>
    %330 = tpu.matmul %329, %315, %cst_112 {dimension_numbers = #tpu.dot_dimension_numbers<[1], [0], [0], [1], [0, 0, 1, 1], [], []>} : vector<16x32xf32>, vector<32x32xf32>, vector<16x32xf32> -> vector<16x32xf32>
    %331 = vector.extract_strided_slice %309 {offsets = [0, 32], sizes = [16, 32], strides = [1, 1]} : vector<16x64xf32> to vector<16x32xf32>
    %332 = vector.extract_strided_slice %311 {offsets = [0, 32], sizes = [32, 32], strides = [1, 1]} : vector<32x64xf32> to vector<32x32xf32>
    %333 = vector.extract_strided_slice %312 {offsets = [0, 32], sizes = [32, 32], strides = [1, 1]} : vector<32x64xf32> to vector<32x32xf32>
    %cst_113 = arith.constant dense<0.000000e+00> : vector<16x32xf32>
    %334 = tpu.matmul %331, %332, %cst_113 {dimension_numbers = #tpu.dot_dimension_numbers<[1], [1], [0], [0], [0, 0, 1, 0], [], []>} : vector<16x32xf32>, vector<32x32xf32>, vector<16x32xf32> -> vector<16x32xf32>
    %cst_114 = arith.constant 0.176776692 : f32
    %335 = vector.broadcast %cst_114 : f32 to vector<16x32xf32>
    %336 = arith.mulf %334, %335 : vector<16x32xf32>
    %337 = arith.addf %336, %75 : vector<16x32xf32>
    %cst_115 = arith.constant dense<0xFF800000> : vector<16xf32>
    %338 = vector.multi_reduction <maximumf>, %337, %cst_115 [1] : vector<16x32xf32> to vector<16xf32>
    %339 = vector.shape_cast %338 : vector<16xf32> to vector<16x1xf32>
    %340 = vector.broadcast %339 : vector<16x1xf32> to vector<16x32xf32>
    %341 = arith.subf %337, %340 : vector<16x32xf32>
    %342 = math.exp %341 : vector<16x32xf32>
    %cst_116 = arith.constant dense<0.000000e+00> : vector<16xf32>
    %343 = vector.multi_reduction <add>, %342, %cst_116 [1] : vector<16x32xf32> to vector<16xf32>
    %344 = vector.shape_cast %343 : vector<16xf32> to vector<16x1xf32>
    %345 = tpu.reciprocal %344 {approx = true} : vector<16x1xf32> -> vector<16x1xf32>
    %346 = vector.broadcast %345 : vector<16x1xf32> to vector<16x32xf32>
    %347 = arith.mulf %342, %346 : vector<16x32xf32>
    %cst_117 = arith.constant dense<0.000000e+00> : vector<16x32xf32>
    %348 = tpu.matmul %347, %333, %cst_117 {dimension_numbers = #tpu.dot_dimension_numbers<[1], [0], [0], [1], [0, 0, 1, 1], [], []>} : vector<16x32xf32>, vector<32x32xf32>, vector<16x32xf32> -> vector<16x32xf32>
    %349 = arith.addf %330, %348 : vector<16x32xf32>
    %350 = arith.addf %307, %349 : vector<16x32xf32>
    %c21 = arith.constant 21 : index
    %c0_118 = arith.constant 0 : index
    %351 = vector.load %arg2[%c21, %c0_118] : memref<32x128xf32, #tpu.memory_space<vmem>>, vector<1x32xf32>
    %c22 = arith.constant 22 : index
    %c0_119 = arith.constant 0 : index
    %352 = vector.load %arg2[%c22, %c0_119] : memref<32x128xf32, #tpu.memory_space<vmem>>, vector<1x32xf32>
    %cst_120 = arith.constant dense<0.000000e+00> : vector<16xf32>
    %353 = vector.multi_reduction <add>, %350, %cst_120 [1] : vector<16x32xf32> to vector<16xf32>
    %354 = vector.shape_cast %353 : vector<16xf32> to vector<16x1xf32>
    %cst_121 = arith.constant 3.200000e+01 : f32
    %355 = vector.broadcast %cst_121 : f32 to vector<16x1xf32>
    %356 = arith.divf %354, %355 : vector<16x1xf32>
    %357 = vector.broadcast %356 : vector<16x1xf32> to vector<16x32xf32>
    %358 = arith.subf %350, %357 : vector<16x32xf32>
    %359 = arith.mulf %358, %358 : vector<16x32xf32>
    %cst_122 = arith.constant dense<0.000000e+00> : vector<16xf32>
    %360 = vector.multi_reduction <add>, %359, %cst_122 [1] : vector<16x32xf32> to vector<16xf32>
    %361 = vector.shape_cast %360 : vector<16xf32> to vector<16x1xf32>
    %cst_123 = arith.constant 3.200000e+01 : f32
    %362 = vector.broadcast %cst_123 : f32 to vector<16x1xf32>
    %363 = arith.divf %361, %362 : vector<16x1xf32>
    %cst_124 = arith.constant 9.99999974E-6 : f32
    %364 = vector.broadcast %cst_124 : f32 to vector<16x1xf32>
    %365 = arith.addf %363, %364 : vector<16x1xf32>
    %366 = math.rsqrt %365 : vector<16x1xf32>
    %367 = vector.broadcast %366 : vector<16x1xf32> to vector<16x32xf32>
    %368 = arith.mulf %358, %367 : vector<16x32xf32>
    %369 = vector.broadcast %351 : vector<1x32xf32> to vector<16x32xf32>
    %370 = arith.mulf %368, %369 : vector<16x32xf32>
    %371 = vector.broadcast %352 : vector<1x32xf32> to vector<16x32xf32>
    %372 = arith.addf %370, %371 : vector<16x32xf32>
    %c0_125 = arith.constant 0 : index
    %c992 = arith.constant 992 : index
    %373 = vector.load %arg1[%c0_125, %c992] : memref<32x1056xf32, #tpu.memory_space<vmem>>, vector<32x32xf32>
    %cst_126 = arith.constant dense<0.000000e+00> : vector<16x32xf32>
    %374 = tpu.matmul %372, %373, %cst_126 {dimension_numbers = #tpu.dot_dimension_numbers<[1], [0], [0], [1], [0, 0, 1, 1], [], []>} : vector<16x32xf32>, vector<32x32xf32>, vector<16x32xf32> -> vector<16x32xf32>
    %c25 = arith.constant 25 : index
    %c0_127 = arith.constant 0 : index
    %375 = vector.load %arg2[%c25, %c0_127] : memref<32x128xf32, #tpu.memory_space<vmem>>, vector<1x32xf32>
    %376 = vector.broadcast %375 : vector<1x32xf32> to vector<16x32xf32>
    %377 = arith.addf %374, %376 : vector<16x32xf32>
    %cst_128 = arith.constant 0.000000e+00 : f32
    %378 = vector.broadcast %cst_128 : f32 to vector<16x32xf32>
    %379 = arith.maximumf %377, %378 : vector<16x32xf32>
    %c0_129 = arith.constant 0 : index
    %c1024 = arith.constant 1024 : index
    %380 = vector.load %arg1[%c0_129, %c1024] : memref<32x1056xf32, #tpu.memory_space<vmem>>, vector<32x32xf32>
    %cst_130 = arith.constant dense<0.000000e+00> : vector<16x32xf32>
    %381 = tpu.matmul %379, %380, %cst_130 {dimension_numbers = #tpu.dot_dimension_numbers<[1], [0], [0], [1], [0, 0, 1, 1], [], []>} : vector<16x32xf32>, vector<32x32xf32>, vector<16x32xf32> -> vector<16x32xf32>
    %c26 = arith.constant 26 : index
    %c0_131 = arith.constant 0 : index
    %382 = vector.load %arg2[%c26, %c0_131] : memref<32x128xf32, #tpu.memory_space<vmem>>, vector<1x32xf32>
    %383 = vector.broadcast %382 : vector<1x32xf32> to vector<16x32xf32>
    %384 = arith.addf %381, %383 : vector<16x32xf32>
    %385 = arith.addf %372, %384 : vector<16x32xf32>
    %c23 = arith.constant 23 : index
    %c0_132 = arith.constant 0 : index
    %386 = vector.load %arg2[%c23, %c0_132] : memref<32x128xf32, #tpu.memory_space<vmem>>, vector<1x32xf32>
    %c24 = arith.constant 24 : index
    %c0_133 = arith.constant 0 : index
    %387 = vector.load %arg2[%c24, %c0_133] : memref<32x128xf32, #tpu.memory_space<vmem>>, vector<1x32xf32>
    %cst_134 = arith.constant dense<0.000000e+00> : vector<16xf32>
    %388 = vector.multi_reduction <add>, %385, %cst_134 [1] : vector<16x32xf32> to vector<16xf32>
    %389 = vector.shape_cast %388 : vector<16xf32> to vector<16x1xf32>
    %cst_135 = arith.constant 3.200000e+01 : f32
    %390 = vector.broadcast %cst_135 : f32 to vector<16x1xf32>
    %391 = arith.divf %389, %390 : vector<16x1xf32>
    %392 = vector.broadcast %391 : vector<16x1xf32> to vector<16x32xf32>
    %393 = arith.subf %385, %392 : vector<16x32xf32>
    %394 = arith.mulf %393, %393 : vector<16x32xf32>
    %cst_136 = arith.constant dense<0.000000e+00> : vector<16xf32>
    %395 = vector.multi_reduction <add>, %394, %cst_136 [1] : vector<16x32xf32> to vector<16xf32>
    %396 = vector.shape_cast %395 : vector<16xf32> to vector<16x1xf32>
    %cst_137 = arith.constant 3.200000e+01 : f32
    %397 = vector.broadcast %cst_137 : f32 to vector<16x1xf32>
    %398 = arith.divf %396, %397 : vector<16x1xf32>
    %cst_138 = arith.constant 9.99999974E-6 : f32
    %399 = vector.broadcast %cst_138 : f32 to vector<16x1xf32>
    %400 = arith.addf %398, %399 : vector<16x1xf32>
    %401 = math.rsqrt %400 : vector<16x1xf32>
    %402 = vector.broadcast %401 : vector<16x1xf32> to vector<16x32xf32>
    %403 = arith.mulf %393, %402 : vector<16x32xf32>
    %404 = vector.broadcast %386 : vector<1x32xf32> to vector<16x32xf32>
    %405 = arith.mulf %403, %404 : vector<16x32xf32>
    %406 = vector.broadcast %387 : vector<1x32xf32> to vector<16x32xf32>
    %407 = arith.addf %405, %406 : vector<16x32xf32>
    %408 = tpu.iota {dimensions = array<i32: 0>} : vector<2x16xi32>
    %409 = tpu.iota {dimensions = array<i32: 1>} : vector<2x16xi32>
    %c1_i32 = arith.constant 1 : i32
    %410 = vector.broadcast %c1_i32 : i32 to vector<2x16xi32>
    %411 = arith.cmpi eq, %408, %410 : vector<2x16xi32>
    %c8_i32_139 = arith.constant 8 : i32
    %412 = vector.broadcast %c8_i32_139 : i32 to vector<2x16xi32>
    %413 = arith.cmpi sge, %409, %412 : vector<2x16xi32>
    %414 = arith.xori %411, %413 : vector<2x16xi1>
    %cst_140 = arith.constant dense<true> : vector<2x16xi1>
    %415 = arith.xori %414, %cst_140 : vector<2x16xi1>
    %cst_141 = arith.constant 1.250000e-01 : f32
    %cst_142 = arith.constant 0.000000e+00 : f32
    %416 = vector.broadcast %cst_141 : f32 to vector<2x16xf32>
    %417 = vector.broadcast %cst_142 : f32 to vector<2x16xf32>
    %418 = arith.select %415, %416, %417 : vector<2x16xi1>, vector<2x16xf32>
    %cst_143 = arith.constant dense<0.000000e+00> : vector<2x32xf32>
    %419 = tpu.matmul %418, %407, %cst_143 {dimension_numbers = #tpu.dot_dimension_numbers<[1], [0], [0], [1], [0, 0, 1, 1], [], []>} : vector<2x16xf32>, vector<16x32xf32>, vector<2x32xf32> -> vector<2x32xf32>
    %c0_144 = arith.constant 0 : index
    %c256 = arith.constant 256 : index
    %420 = vector.load %arg1[%c0_144, %c256] : memref<32x1056xf32, #tpu.memory_space<vmem>>, vector<32x128xf32>
    %cst_145 = arith.constant dense<0.000000e+00> : vector<2x128xf32>
    %421 = tpu.matmul %419, %420, %cst_145 {dimension_numbers = #tpu.dot_dimension_numbers<[1], [0], [0], [1], [0, 0, 1, 1], [], []>} : vector<2x32xf32>, vector<32x128xf32>, vector<2x128xf32> -> vector<2x128xf32>
    %c10 = arith.constant 10 : index
    %c0_146 = arith.constant 0 : index
    %422 = vector.load %arg2[%c10, %c0_146] : memref<32x128xf32, #tpu.memory_space<vmem>>, vector<1x128xf32>
    %423 = vector.broadcast %422 : vector<1x128xf32> to vector<2x128xf32>
    %424 = arith.addf %421, %423 : vector<2x128xf32>
    %c0_147 = arith.constant 0 : index
    %c0_148 = arith.constant 0 : index
    %425 = vector.load %arg3[%c0_147, %c0_148] : memref<2x128xf32, #tpu.memory_space<vmem>>, vector<2x128xf32>
    tpu.vector_store %arg3[%c0_147, %c0_148], %424 {strides = array<i32>} : memref<2x128xf32, #tpu.memory_space<vmem>>, vector<2x128xf32>,
    return
  }
}

</mosaic_0001>

<bundles_post_ra>
// kernel: flexible_transformer_decoder_forward.1
= control target key start
LH: loop header
LB: loop body
LE: loop exit
PB: predicated region body
PF: predicated region fallthrough
CT: control target
= control target key end

     0   :  { %8 = vsyncpa [#allocation4], 0  ;;  %s5395_s0 = inlined_call_operand.vmem [shape: f32[32,5], index: 0, kind: input, shape index: {}]   ;;  %s5396_s1 = inlined_call_operand.hbm [shape: f32[32,1056], index: 1, kind: input, shape index: {}]   ;;  %s5397_s2 = inlined_call_operand.vmem [shape: f32[32,128], index: 2, kind: input, shape index: {}]   ;;  %s5398_s3 = inlined_call_operand.hbm [shape: f32[2,128], index: 3, kind: output, shape index: {}]  }
   0x1   :  { %9 = vsyncpa [#allocation5], 0  ;;  %s4368_s12 = smov [#allocation3]  }
   0x2   :  { %s17_s13 = sshll.u32 %s4368_s12, 4  ;;  %s18_s13 = int_to_ptr.vmem [resolvable:$true] %s17_s13 }
   0x3   :  { %s4332_s14 = scalar_lea.vmem %s18_s13, 4608  ;;  %p4337_p1 = scmp.lt.s32.totalorder %s18_s13, %s18_s13 }
   0x4   :  { %p4333_p0 = scmp.ne.s32.totalorder %s18_s13, %s4332_s14  ;;  %p4338_p2 = scmp.lt.s32.totalorder %s4332_s14, %s4332_s14 }
   0x6   :  { %p4339_p3 = por %p4338_p2, %p4337_p1 }
   0x8   :  { %p4340_p4 = pnand %p4339_p3, %p4333_p0 }
   0xa   :  { %4343 = shalt.err (!%p4340_p4)
}
   0xb   :  { %s4369_s15 = smov 1152   ;;  %s4370_s16 = smov 72  }
   0xc   :  { %23 = dma.hbm_to_vmem [thread:$0]  %s5396_s1, 4608, %s18_s13, [#allocation4], %s4369_s15, %s4369_s15, %s4370_s16  }
   0xd   :  { %4364 = dma.done.wait [#allocation4], 4608  }
   0xe   :  { %4365 = vsyncadd [#allocation4], 4294962688  ;;  %v4371_v0 = vmov 0   ;;  %v4372_v1 = vmov 1   ;;  %v4373_v2 = vmov 0.0   ;;  %v30_v3 = vld [vmem:[%s5395_s0 + $0x8] sm:$0xff]  ;;  %v33_v25 = vlaneseq }
   0xf   :  { %4212 = vset.pattern.permute.xlu1 %v4371_v0  ;;  %4214 = vset.pattern.permute.xlu0 %v4372_v1  ;;  %v29_v4 = vld [vmem:[%s5395_s0] sm:$0xff]  ;;  %v4374_v6 = vmov 2   ;;  %v65_v7 = vadd.f32 5.0, %v30_v3  ;;  %v608_v9 = vld [vmem:[#allocation3 + $0xa8] sm:$0xff]  ;;  %v4375_v10 = vmov 3   ;;  %v31_v12 = vld [vmem:[%s5395_s0 + $0x10] sm:$0xff] }
  0x10   :  { %792 = vmatprep.mubr.f32.mxu1 %v4373_v2  ;;  %43 = vperm.xlu1 %4212, %v30_v3   ;;  %v64_v5 = vadd.f32 5.0, %v29_v4  ;;  %v609_v8 = vld [vmem:[#allocation3 + $0xf0] sm:$0xff]  ;;  %v32_v11 = vld [vmem:[%s5395_s0 + $0x18] sm:$0xff]  ;;  %v607_v13 = vld [vmem:[#allocation3 + $0x60] sm:$0xff]  ;;  %v66_v16 = vadd.f32 5.0, %v31_v12  ;;  %v4376_v17 = vmov 4  }
  0x11   :  { %3940 = vmatprep.subr.mxu0 %v609_v8  ;;  %v67_v14 = vadd.f32 5.0, %v32_v11  ;;  %v606_v15 = vld [vmem:[#allocation3 + $0x18] sm:$0xff]  ;;  %s4377_s0 = smov 96   ;;  %v715_v19 = vld [vmem:[#allocation3 + $0xe0] sm:$0xff]  ;;  %v842_v21 = vld [vmem:[#allocation3 + $0xb0] sm:$0xff]  ;;  %v4436_v28 = vand.u32 127, %v33_v25 }
  0x12   :  { %70 = vperm.xlu0 %4214, %v64_v5   ;;  %3941 = vmatpush3.msra.mxu0 %v609_v8  ;;  %v844_v18 = vld [vmem:[#allocation3 + $0xf8] sm:$0xff]  ;;  %v840_v23 = vld [vmem:[#allocation3 + $0x68] sm:$0xff]  ;;  %v838_v24 = vld [vmem:[#allocation3 + $0x20] sm:$0xff]  ;;  %vm610_vm7 = vcmask 261120   ;;  %s4385_s5 = smov 32   ;;  %s4386_s6 = smov 64  }
  0x13   :  { %3942 = vmatprep.subr.mxu0 %v608_v9  ;;  %v714_v20 = vld [vmem:[#allocation3 + $0xd8] sm:$0xff]  ;;  %752 = vmatprep.subr.mxu1 %v715_v19  ;;  %v4439_v30 = vcvt.s32.f32 %v4436_v28  ;;  %s4389_s12 = smov [#allocation6]  }
  0x14   :  { %4213 = vset.pattern.permute.xlu1 %v4374_v6  ;;  %3943 = vmatpush3.msra.mxu0 %v608_v9  ;;  %v713_v22 = vld [vmem:[#allocation3 + $0x98] sm:$0xff]  ;;  %s3697_s13 = sshll.u32 %s4389_s12, 4  ;;  %s3698_s13 = int_to_ptr.vmem [resolvable:$true] %s3697_s13 }
  0x15   :  { %102 = vperm.xlu1 %4213, %v29_v4   ;;  %3944 = vmatprep.subr.mxu0 %v607_v13  ;;  %vm100_vm3 = vcmp.eq.f32.partialorder %v4439_v30, 12.0  ;;  %vm125_vm5 = vcmp.eq.f32.partialorder %v4439_v30, 13.0  ;;  %vm150_vm6 = vcmp.eq.f32.partialorder %v4439_v30, 14.0  ;;  %v3706_v61 = vld [vmem:[%s5397_s2 + $0x8] ss:$0 sm:$0xff]  ;;  %s4344_s14 = scalar_lea.vmem %s3698_s13, 32  ;;  %p4349_p6 = scmp.lt.s32.totalorder %s3698_s13, %s3698_s13 }
  0x16   :  { %4215 = vset.pattern.permute.xlu0 %v4374_v6  ;;  %3945 = vmatpush3.msra.mxu0 %v607_v13  ;;  %v151_v46 = vsel %vm150_vm6, 1.0, %v4373_v2  ;;  %v3707_v5 = vld [vmem:[%s5397_s2 + $0x9] ss:$0 sm:$0xff]  ;;  %p4345_p5 = scmp.ne.s32.totalorder %s3698_s13, %s4344_s14  ;;  %p4350_p7 = scmp.lt.s32.totalorder %s4344_s14, %s4344_s14 }
  0x17   :  { %106 = vperm.xlu0 %4215, %v30_v3   ;;  %3946 = vmatprep.subr.mxu0 %v606_v15 }
  0x18   :  { %3947 = vmatpush3.msra.mxu0 %v606_v15  ;;  %753 = vmatpush1.msra.mxu1 %v714_v20  ;;  %p4351_p8 = por %p4350_p7, %p4349_p6 }
  0x19   :  { %4217 = vset.pattern.permute.xlu1 %v4372_v1  ;;  %3954 = vmatprep.subr.mxu0 %v4373_v2 }
  0x1a   :  { %75 = vperm.xlu1 %4217, %v65_v7   ;;  %754 = vmatprep.subr.mxu1 %v713_v22  ;;  %p4352_p9 = pnand %p4351_p8, %p4345_p5 }
  0x1b   :  { %4216 = vset.pattern.permute.xlu0 %v4371_v0 }
  0x1c   :  { %38 = vperm.xlu0 %4216, %v29_v4  }
  0x1e   :  { %4218 = vset.pattern.permute.xlu1 %v4375_v10 }
  0x1f   :  { %127 = vperm.xlu1 %4218, %v29_v4  }
  0x20   :  { %48 = vperm.xlu0 %4216, %v31_v12  }
  0x23   :  { %131 = vperm.xlu1 %4218, %v30_v3  }
  0x24   :  { %4221 = vset.pattern.permute.xlu0 %v4372_v1 }
  0x25   :  { %85 = vperm.xlu0 %4221, %v67_v14  }
  0x27   :  { %4219 = vset.pattern.permute.xlu1 %v4372_v1 }
  0x28   :  { %80 = vperm.xlu1 %4219, %v66_v16  }
  0x29   :  { %4223 = vset.pattern.permute.xlu0 %v4375_v10 }
  0x2a   :  { %135 = vperm.xlu0 %4223, %v31_v12  }
  0x2c   :  { %4220 = vset.pattern.permute.xlu1 %v4371_v0 }
  0x2d   :  { %53 = vperm.xlu1 %4220, %v32_v11  }
  0x2e   :  { %4226 = vset.pattern.permute.xlu0 %v4376_v17 }
  0x2f   :  { %162 = vperm.xlu0 %4226, %v30_v3  }
  0x31   :  { %4222 = vset.pattern.permute.xlu1 %v4374_v6 }
  0x32   :  { %110 = vperm.xlu1 %4222, %v31_v12  }
  0x33   :  { %865 = vrot.lane.b32.xlu0 %v609_v8, %s4377_s0 }
  0x36   :  { %114 = vperm.xlu1 %4222, %v32_v11  }
  0x37   :  { %861 = vrot.lane.b32.xlu0 %v608_v9, %s4377_s0 }
  0x3a   :  { %4224 = vset.pattern.permute.xlu1 %v4375_v10 }
  0x3b   :  { %139 = vperm.xlu1 %4224, %v32_v11   ;;  %857 = vrot.lane.b32.xlu0 %v607_v13, %s4377_s0 }
  0x3f   :  { %4225 = vset.pattern.permute.xlu1 %v4376_v17  ;;  %853 = vrot.lane.b32.xlu0 %v606_v15, %s4377_s0 }
  0x40   :  { %158 = vperm.xlu1 %4225, %v29_v4  }
  0x44   :  { %166 = vperm.xlu1 %4225, %v31_v12  }
  0x48   :  { %170 = vperm.xlu1 %4225, %v32_v11  }
  0x4c   :  { %867 = vrot.lane.b32.xlu1 %v844_v18, %s4377_s0 }
  0x50   :  { %863 = vrot.lane.b32.xlu1 %v842_v21, %s4377_s0 }
  0x54   :  { %859 = vrot.lane.b32.xlu1 %v840_v23, %s4377_s0 }
  0x58   :  { %855 = vrot.lane.b32.xlu1 %v838_v24, %s4377_s0 }
  0x8b   :  { %v44_v26 = vpop.permute.xlu1 %43 }
  0x8c   :  { %vm57_vm1 = vcmp.eq.f32.partialorder %v4439_v30, %v44_v26 }
  0x8d   :  { %v71_v27 = vpop.permute.xlu0 %70  ;;  %v61_v36 = vsel %vm57_vm1, 1.0, %v4373_v2 }
  0x8e   :  { %vm88_vm0 = vcmp.eq.f32.partialorder %v4439_v30, %v71_v27 }
  0x8f   :  { %v92_v33 = vsel %vm88_vm0, 1.0, %v4373_v2 }
  0x90   :  { %v103_v29 = vpop.permute.xlu1 %102 }
  0x91   :  { %v117_v41 = vsel %vm100_vm3, %v103_v29, 0.0 }
  0x92   :  { %v107_v31 = vpop.permute.xlu0 %106 }
  0x93   :  { %v118_v42 = vsel %vm100_vm3, %v107_v31, 0.0 }
  0x95   :  { %v76_v32 = vpop.permute.xlu1 %75 }
  0x96   :  { %vm89_vm2 = vcmp.eq.f32.partialorder %v4439_v30, %v76_v32 }
  0x97   :  { %v93_v34 = vsel %vm89_vm2, 1.0, %v4373_v2  ;;  %v39_v35 = vpop.permute.xlu0 %38 }
  0x98   :  { %vm56_vm4 = vcmp.eq.f32.partialorder %v4439_v30, %v39_v35  ;;  %v97_v38 = vadd.f32 %v93_v34, %v61_v36 }
  0x99   :  { %v60_v37 = vsel %vm56_vm4, 1.0, %v4373_v2 }
  0x9a   :  { %v96_v39 = vadd.f32 %v92_v33, %v60_v37  ;;  %v128_v40 = vpop.permute.xlu1 %127  ;;  %v122_v49 = vadd.f32 %v118_v42, %v97_v38 }
  0x9b   :  { %v49_v44 = vpop.permute.xlu0 %48  ;;  %v142_v45 = vsel %vm125_vm5, %v128_v40, 0.0  ;;  %v4378_v40 = vmov 2102212464  }
  0x9c   :  { %v121_v43 = vadd.f32 %v117_v41, %v96_v39  ;;  %vm58_vm9 = vcmp.eq.f32.partialorder %v4439_v30, %v49_v44 }
  0x9d   :  { %v62_v59 = vsel %vm58_vm9, 1.0, %v4373_v2 }
  0x9e   :  { %v146_v47 = vadd.f32 %v142_v45, %v121_v43  ;;  %v132_v48 = vpop.permute.xlu1 %131  ;;  %v4379_v43 = vmov 920167782  }
  0x9f   :  { %v143_v50 = vsel %vm125_vm5, %v132_v48, 0.0 }
  0xa0   :  { %v147_v51 = vadd.f32 %v143_v50, %v122_v49  ;;  %v152_v52 = vadd.f32 %v151_v46, %v146_v47  ;;  %v86_v54 = vpop.permute.xlu0 %85 }
  0xa1   :  { %vm91_vm11 = vcmp.eq.f32.partialorder %v4439_v30, %v86_v54  ;;  %v4382_v54 = vmov 2475754826  }
  0xa2   :  { %v153_v53 = vadd.f32 %v151_v46, %v147_v51  ;;  %3948 = vmatprep.mubr.msk.f32.mxu0 %vm610_vm7, %v152_v52  ;;  %v95_v7 = vsel %vm91_vm11, 1.0, %v4373_v2  ;;  %v4381_v52 = vmov 683565275  }
  0xa3   :  { %v81_v55 = vpop.permute.xlu1 %80 }
  0xa4   :  { %3949 = vmatmul.mubr.msk.f32.vlgmr.msra.gmra.mxu0 %vm610_vm7, %v153_v53  ;;  %vm90_vm8 = vcmp.eq.f32.partialorder %v4439_v30, %v81_v55 }
  0xa5   :  { %v136_v56 = vpop.permute.xlu0 %135  ;;  %v94_v58 = vsel %vm90_vm8, 1.0, %v4373_v2 }
  0xa6   :  { %v98_v62 = vadd.f32 %v94_v58, %v62_v59  ;;  %v144_v3 = vsel %vm125_vm5, %v136_v56, 0.0 }
  0xa8   :  { %v54_v57 = vpop.permute.xlu1 %53 }
  0xa9   :  { %vm59_vm10 = vcmp.eq.f32.partialorder %v4439_v30, %v54_v57  ;;  %v4383_v57 = vmov 2131351028  }
  0xaa   :  { %v163_v60 = vpop.permute.xlu0 %162  ;;  %v63_v6 = vsel %vm59_vm10, 1.0, %v4373_v2 }
  0xab   :  { %v178_v0 = vmul.f32 %v3706_v61, %v163_v60  ;;  %v99_v13 = vadd.f32 %v95_v7, %v63_v6 }
  0xad   :  { %v111_v63 = vpop.permute.xlu1 %110  ;;  %v4481_v10 = vadd.f32 %v3707_v5, %v178_v0 }
  0xae   :  { %v119_v1 = vsel %vm100_vm3, %v111_v63, 0.0 }
  0xaf   :  { %v123_v4 = vadd.f32 %v119_v1, %v98_v62  ;;  %v297_v14 = vand.u32 2139095040, %v4481_v10  ;;  %v294_v49 = vand.u32 2147483647, %v4481_v10 }
  0xb1   :  { %v148_v8 = vadd.f32 %v144_v3, %v123_v4  ;;  %v115_v9 = vpop.permute.xlu1 %114  ;;  %v298_v19 = vshrl.u32 %v297_v14, 23  ;;  %v301_v3 = vand.u32 8388607, %v294_v49 }
  0xb2   :  { %v120_v12 = vsel %vm100_vm3, %v115_v9, 0.0 }
  0xb3   :  { %v154_v11 = vadd.f32 %v151_v46, %v148_v8  ;;  %v124_v15 = vadd.f32 %v120_v12, %v99_v13  ;;  %v3712_v23 = vadd.s32 4294967169, %v298_v19 }
  0xb5   :  { %3951 = vmatprep.mubr.msk.f32.mxu0 %vm610_vm7, %v154_v11  ;;  %v304_v27 = vadd.s32 1, %v3712_v23 }
  0xb6   :  { %v140_v16 = vpop.permute.xlu1 %139 }
  0xb7   :  { %v145_v17 = vsel %vm125_vm5, %v140_v16, 0.0  ;;  %vm305_vm12 = vcmp.gt.s32.totalorder %v304_v27, 0 }
  0xb8   :  { %v149_v18 = vadd.f32 %v145_v17, %v124_v15  ;;  %v306_v33 = vsel %vm305_vm12, %v304_v27, 0 }
  0xb9   :  { %v308_v34 = vand.u32 31, %v306_v33  ;;  %v4501_v48 = vshrl.u32 %v306_v33, 5 }
  0xba   :  { %v155_v20 = vadd.f32 %v151_v46, %v149_v18  ;;  %v4380_v46 = vmov 1326507024  }
  0xbb   :  { %v159_v21 = vpop.permute.xlu1 %158  ;;  %v4493_v36 = vsub.s32 32, %v308_v34  ;;  %v320_v41 = vshll.u32 %v4378_v40, %v308_v34  ;;  %v323_v45 = vshll.u32 %v4379_v43, %v308_v34  ;;  %v311_v53 = vshll.u32 %v4381_v52, %v308_v34 }
  0xbc   :  { %3952 = vmatmul.mubr.msk.f32.gmra.mxu0 %vm610_vm7, %v155_v20  ;;  %v177_v22 = vmul.f32 %v3706_v61, %v159_v21  ;;  %v314_v55 = vshll.u32 %v4382_v54, %v308_v34  ;;  %v317_v59 = vshll.u32 %v4383_v57, %v308_v34  ;;  %vm329_vm14 = vcmp.lt.s32.totalorder %v4501_v48, 4 }
  0xbd   :  { %v321_v44 = vshrl.u32 %v4379_v43, %v4493_v36  ;;  %v324_v47 = vshrl.u32 %v4380_v46, %v4493_v36  ;;  %v312_v56 = vshrl.u32 %v4382_v54, %v4493_v36  ;;  %v315_v58 = vshrl.u32 %v4383_v57, %v4493_v36 }
  0xbe   :  { %v4490_v24 = vadd.f32 %v3707_v5, %v177_v22  ;;  %v318_v60 = vshrl.u32 %v4378_v40, %v4493_v36  ;;  %vm326_vm15 = vcmp.lt.s32.totalorder %v4501_v48, 1  ;;  %vm328_vm0 = vcmp.lt.s32.totalorder %v4501_v48, 3 }
  0xbf   :  { %v167_v32 = vpop.permute.xlu1 %166  ;;  %v322_v62 = vor.u32 %v321_v44, %v320_v41  ;;  %v325_v63 = vor.u32 %v324_v47, %v323_v45  ;;  %v4525_v4 = vor.u32 %v312_v56, %v311_v53  ;;  %vm327_vm1 = vcmp.lt.s32.totalorder %v4501_v48, 2  ;;  %v712_v44 = vld [vmem:[#allocation3 + $0x90] sm:$0xff] }
  0xc0   :  { %v193_v26 = vand.u32 2139095040, %v4490_v24  ;;  %v179_v38 = vmul.f32 %v3706_v61, %v167_v32  ;;  %v4529_v6 = vor.u32 %v318_v60, %v317_v59  ;;  %v190_v13 = vand.u32 2147483647, %v4490_v24  ;;  %755 = vmatpush1.msra.mxu1 %v712_v44  ;;  %v711_v53 = vld [vmem:[#allocation3 + $0x50] sm:$0xff] }
  0xc1   :  { %v335_v7 = vsel %vm329_vm14, %v322_v62, 920167782  ;;  %v339_v8 = vsel %vm329_vm14, %v325_v63, 1326507024  ;;  %v310_v59 = vshrl.u32 %v4381_v52, %v4493_v36  ;;  %756 = vmatprep.subr.mxu1 %v711_v53 }
  0xc2   :  { %v194_v29 = vshrl.u32 %v193_v26, 23  ;;  %v4504_v50 = vadd.f32 %v3707_v5, %v179_v38  ;;  %v302_v26 = vor.u32 8388608, %v301_v3  ;;  %v709_v3 = vld [vmem:[#allocation3 + $0x8] sm:$0xff] }
  0xc3   :  { %v171_v35 = vpop.permute.xlu1 %170 }
  0xc4   :  { %v3708_v31 = vadd.s32 4294967169, %v194_v29  ;;  %v180_v39 = vmul.f32 %v3706_v61, %v171_v35  ;;  %v401_v0 = vand.u32 2139095040, %v4504_v50  ;;  %v340_v35 = vsel %vm328_vm0, %v322_v62, %v339_v8  ;;  %v710_v62 = vld [vmem:[#allocation3 + $0x48] sm:$0xff] }
  0xc5   :  { %757 = vmatpush1.msra.mxu1 %v710_v62 }
  0xc6   :  { %v200_v30 = vadd.s32 1, %v3708_v31  ;;  %v4506_v51 = vadd.f32 %v3707_v5, %v180_v39  ;;  %v4527_v5 = vor.u32 %v315_v58, %v314_v55  ;;  %v402_v16 = vshrl.u32 %v401_v0, 23  ;;  %758 = vmatprep.subr.mxu1 %v709_v3 }
  0xc7   :  { %v197_v31 = vand.u32 8388607, %v190_v13 }
  0xc8   :  { %vm201_vm13 = vcmp.gt.s32.totalorder %v200_v30, 0  ;;  %v505_v1 = vand.u32 2139095040, %v4506_v51  ;;  %v334_v29 = vsel %vm326_vm15, %v4525_v4, %v4527_v5  ;;  %v338_v34 = vsel %vm326_vm15, %v4527_v5, %v4529_v6 }
  0xc9   :  { %v202_v37 = vsel %vm201_vm13, %v200_v30, 0  ;;  %v336_v30 = vsel %vm328_vm0, %v4529_v6, %v335_v7  ;;  %v198_v55 = vor.u32 8388608, %v197_v31  ;;  %v341_v60 = vsel %vm327_vm1, %v338_v34, %v340_v35 }
  0xca   :  { %v204_v42 = vand.u32 31, %v202_v37  ;;  %v4539_v12 = vshrl.u32 %v202_v37, 5  ;;  %v506_v17 = vshrl.u32 %v505_v1, 23  ;;  %v3716_v37 = vadd.s32 4294967169, %v402_v16 }
  0xcb   :  { %v337_v47 = vsel %vm327_vm1, %v334_v29, %v336_v30  ;;  %v4603_v16 = vshll.u32 %v198_v55, 8  ;;  %v502_v48 = vand.u32 2147483647, %v4506_v51 }
  0xcc   :  { %v4517_v61 = vsub.s32 32, %v204_v42  ;;  %v216_v9 = vshll.u32 %v4378_v40, %v204_v42  ;;  %v219_v14 = vshll.u32 %v4379_v43, %v204_v42  ;;  %v207_v18 = vshll.u32 %v4381_v52, %v204_v42 }
  0xcd   :  { %v210_v19 = vshll.u32 %v4382_v54, %v204_v42  ;;  %v213_v22 = vshll.u32 %v4383_v57, %v204_v42  ;;  %vm225_vm2 = vcmp.lt.s32.totalorder %v4539_v12, 4  ;;  %v3720_v33 = vadd.s32 4294967169, %v506_v17 }
  0xce   :  { %v217_v11 = vshrl.u32 %v4379_v43, %v4517_v61  ;;  %v220_v15 = vshrl.u32 %v4380_v46, %v4517_v61  ;;  %v208_v20 = vshrl.u32 %v4382_v54, %v4517_v61  ;;  %v211_v21 = vshrl.u32 %v4383_v57, %v4517_v61 }
  0xcf   :  { %v214_v23 = vshrl.u32 %v4378_v40, %v4517_v61  ;;  %v4571_v42 = vshll.u32 %v302_v26, 8  ;;  %vm222_vm3 = vcmp.lt.s32.totalorder %v4539_v12, 1  ;;  %vm224_vm4 = vcmp.lt.s32.totalorder %v4539_v12, 3 }
  0xd0   :  { %v218_v27 = vor.u32 %v217_v11, %v216_v9  ;;  %v221_v32 = vor.u32 %v220_v15, %v219_v14  ;;  %v209_v38 = vor.u32 %v208_v20, %v207_v18  ;;  %v212_v39 = vor.u32 %v211_v21, %v210_v19  ;;  %v708_v11 = vld [vmem:[#allocation3] sm:$0xff] }
  0xd1   :  { %v215_v41 = vor.u32 %v214_v23, %v213_v22  ;;  %v512_v58 = vadd.s32 1, %v3720_v33  ;;  %v408_v63 = vadd.s32 1, %v3716_v37  ;;  %vm223_vm5 = vcmp.lt.s32.totalorder %v4539_v12, 2  ;;  %759 = vmatpush1.msra.mxu1 %v708_v11 }
  0xd2   :  { %v231_v45 = vsel %vm225_vm2, %v218_v27, 920167782  ;;  %v235_v56 = vsel %vm225_vm2, %v221_v32, 1326507024  ;;  %v230_v0 = vsel %vm222_vm3, %v209_v38, %v212_v39  ;;  %v331_v17 = vsel %vm329_vm14, %v4529_v6, 2102212464  ;;  %v4629_v32 = vpop.permute.xlu1 %867 }
  0xd3   :  { %v232_v1 = vsel %vm224_vm4, %v215_v41, %v231_v45  ;;  %v4591_v7 = vmul.u32.u64.low %v4571_v42, %v337_v47  ;;  %v4592_v8 = vmul.u32.u64.high %v4571_v42, %v337_v47, %v4591_v7  ;;  %v234_v36 = vsel %vm222_vm3, %v212_v39, %v215_v41  ;;  %909 = vmatprep.subr.mxu1 %v4629_v32 }
  0xd4   :  { %v236_v9 = vsel %vm224_vm4, %v218_v27, %v235_v56  ;;  %v4600_v14 = vmul.u32.u64.low %v4571_v42, %v341_v60  ;;  %v4601_v15 = vmul.u32.u64.high %v4571_v42, %v341_v60, %v4600_v14  ;;  %vm513_vm6 = vcmp.gt.s32.totalorder %v512_v58, 0 }
  0xd5   :  { %v233_v18 = vsel %vm223_vm5, %v230_v0, %v232_v1  ;;  %vm409_vm8 = vcmp.gt.s32.totalorder %v408_v63, 0  ;;  %v237_v19 = vsel %vm223_vm5, %v234_v36, %v236_v9  ;;  %v330_v20 = vsel %vm326_vm15, %v310_v59, %v4525_v4 }
  0xd6   :  { %v514_v21 = vsel %vm513_vm6, %v512_v58, 0  ;;  %v332_v22 = vsel %vm328_vm0, %v4527_v5, %v331_v17  ;;  %v4619_v23 = vmul.u32.u64.low %v4603_v16, %v233_v18  ;;  %v4620_v26 = vmul.u32.u64.high %v4603_v16, %v233_v18, %v4619_v23 }
  0xd7   :  { %v410_v6 = vsel %vm409_vm8, %v408_v63, 0  ;;  %v206_v27 = vshrl.u32 %v4381_v52, %v4517_v61  ;;  %v4626_v29 = vmul.u32.u64.low %v4603_v16, %v237_v19  ;;  %v4627_v31 = vmul.u32.u64.high %v4603_v16, %v237_v19, %v4626_v29 }
  0xd8   :  { %v227_v4 = vsel %vm225_vm2, %v215_v41, 2102212464  ;;  %v516_v5 = vand.u32 31, %v514_v21  ;;  %v333_v33 = vsel %vm327_vm1, %v330_v20, %v332_v22  ;;  %v352_v30 = vadd.s32 1, %v4592_v8 }
  0xd9   :  { %v412_v34 = vand.u32 31, %v410_v6  ;;  %vm351_vm9 = vc.u32 %v4601_v15, %v4591_v7  ;;  %v226_v61 = vsel %vm222_vm3, %v206_v27, %v209_v38  ;;  %v228_v35 = vsel %vm224_vm4, %v212_v39, %v227_v4 }
  0xda   :  { %v349_v37 = vmul.u32 %v4571_v42, %v333_v33  ;;  %v4644_v41 = vsub.s32 32, %v516_v5  ;;  %v353_v44 = vsel %vm351_vm9, %v352_v30, %v4592_v8  ;;  %v229_v47 = vsel %vm223_vm5, %v226_v61, %v228_v35 }
  0xdb   :  { %v4648_v45 = vsub.s32 32, %v412_v34  ;;  %v248_v53 = vadd.s32 1, %v4620_v26  ;;  %vm247_vm10 = vc.u32 %v4627_v31, %v4619_v23  ;;  %v4655_v38 = vshrl.u32 %v410_v6, 5 }
  0xdc   :  { %v4657_v39 = vshrl.u32 %v514_v21, 5  ;;  %v4659_v42 = vadd.s32 %v353_v44, %v349_v37  ;;  %v245_v55 = vmul.u32 %v4603_v16, %v229_v47  ;;  %v4664_v56 = vand.u32 8388607, %v502_v48 }
  0xdd   :  { %v519_v12 = vshll.u32 %v4381_v52, %v516_v5  ;;  %v520_v58 = vshrl.u32 %v4382_v54, %v4644_v41  ;;  %v249_v59 = vsel %vm247_vm10, %v248_v53, %v4620_v26  ;;  %v398_v60 = vand.u32 2147483647, %v4504_v50 }
  0xde   :  { %v424_v62 = vshll.u32 %v4378_v40, %v412_v34  ;;  %v425_v63 = vshrl.u32 %v4379_v43, %v4648_v45  ;;  %v415_v0 = vshll.u32 %v4381_v52, %v412_v34  ;;  %v416_v1 = vshrl.u32 %v4382_v54, %v4648_v45 }
  0xdf   :  { %v418_v3 = vshll.u32 %v4382_v54, %v412_v34  ;;  %v419_v8 = vshrl.u32 %v4383_v57, %v4648_v45  ;;  %v421_v36 = vshll.u32 %v4383_v57, %v412_v34  ;;  %v422_v9 = vshrl.u32 %v4378_v40, %v4648_v45 }
  0xe0   :  { %v427_v11 = vshll.u32 %v4379_v43, %v412_v34  ;;  %v428_v14 = vshrl.u32 %v4380_v46, %v4648_v45  ;;  %v522_v16 = vshll.u32 %v4382_v54, %v516_v5  ;;  %v528_v17 = vshll.u32 %v4378_v40, %v516_v5 }
  0xe1   :  { %v529_v18 = vshrl.u32 %v4379_v43, %v4644_v41  ;;  %v426_v19 = vor.u32 %v425_v63, %v424_v62  ;;  %v531_v20 = vshll.u32 %v4379_v43, %v516_v5  ;;  %v532_v21 = vshrl.u32 %v4380_v46, %v4644_v41 }
  0xe2   :  { %v405_v22 = vand.u32 8388607, %v398_v60  ;;  %vm433_vm11 = vcmp.lt.s32.totalorder %v4655_v38, 4  ;;  %v250_v26 = vadd.s32 %v249_v59, %v245_v55  ;;  %v523_v54 = vshrl.u32 %v4383_v57, %v4644_v41 }
  0xe3   :  { %v525_v6 = vshll.u32 %v4383_v57, %v516_v5  ;;  %v526_v27 = vshrl.u32 %v4378_v40, %v4644_v41  ;;  %v417_v29 = vor.u32 %v416_v1, %v415_v0  ;;  %v420_v4 = vor.u32 %v419_v8, %v418_v3 }
  0xe4   :  { %v423_v43 = vor.u32 %v422_v9, %v421_v36  ;;  %v429_v33 = vor.u32 %v428_v14, %v427_v11  ;;  %v530_v30 = vor.u32 %v529_v18, %v528_v17  ;;  %vm430_vm12 = vcmp.lt.s32.totalorder %v4655_v38, 1 }
  0xe5   :  { %vm432_vm13 = vcmp.lt.s32.totalorder %v4655_v38, 3  ;;  %v439_v46 = vsel %vm433_vm11, %v426_v19, 920167782  ;;  %v521_v34 = vor.u32 %v520_v58, %v519_v12  ;;  %v533_v61 = vor.u32 %v532_v21, %v531_v20 }
  0xe6   :  { %vm537_vm14 = vcmp.lt.s32.totalorder %v4657_v39, 4  ;;  %v406_v57 = vor.u32 8388608, %v405_v22  ;;  %v251_v5 = vadd.s32 536870912, %v250_v26  ;;  %v524_v35 = vor.u32 %v523_v54, %v522_v16 }
  0xe7   :  { %v527_v40 = vor.u32 %v526_v27, %v525_v6  ;;  %vm534_vm15 = vcmp.lt.s32.totalorder %v4657_v39, 1  ;;  %vm431_vm0 = vcmp.lt.s32.totalorder %v4655_v38, 2  ;;  %v438_v37 = vsel %vm430_vm12, %v417_v29, %v420_v4 }
  0xe8   :  { %v440_v44 = vsel %vm432_vm13, %v423_v43, %v439_v46  ;;  %v443_v47 = vsel %vm433_vm11, %v429_v33, 1326507024  ;;  %vm536_vm1 = vcmp.lt.s32.totalorder %v4657_v39, 3  ;;  %v543_v53 = vsel %vm537_vm14, %v530_v30, 920167782 }
  0xe9   :  { %v442_v55 = vsel %vm430_vm12, %v420_v4, %v423_v43  ;;  %v444_v12 = vsel %vm432_vm13, %v426_v19, %v443_v47  ;;  %v510_v58 = vor.u32 8388608, %v4664_v56  ;;  %v547_v59 = vsel %vm537_vm14, %v533_v61, 1326507024 }
  0xea   :  { %v446_v62 = vshll.u32 %v406_v57, 8  ;;  %v355_v63 = vadd.s32 536870912, %v4659_v42  ;;  %vm535_vm2 = vcmp.lt.s32.totalorder %v4657_v39, 2  ;;  %v441_v0 = vsel %vm431_vm0, %v438_v37, %v440_v44 }
  0xeb   :  { %v4728_v1 = vshrl.u32 %v251_v5, 30  ;;  %v542_v3 = vsel %vm534_vm15, %v521_v34, %v524_v35  ;;  %v544_v8 = vsel %vm536_vm1, %v527_v40, %v543_v53  ;;  %v445_v56 = vsel %vm431_vm0, %v442_v55, %v444_v12 }
  0xec   :  { %v546_v36 = vsel %vm534_vm15, %v524_v35, %v527_v40  ;;  %v548_v9 = vsel %vm536_vm1, %v530_v30, %v547_v59  ;;  %v550_v11 = vshll.u32 %v510_v58, 8  ;;  %v545_v17 = vsel %vm535_vm2, %v542_v3, %v544_v8 }
  0xed   :  { %v4740_v14 = vmul.u32.u64.low %v446_v62, %v441_v0  ;;  %v4741_v16 = vmul.u32.u64.high %v446_v62, %v441_v0, %v4740_v14  ;;  %v414_v18 = vshrl.u32 %v4381_v52, %v4648_v45  ;;  %v4751_v21 = vshrl.u32 %v355_v63, 30 }
  0xee   :  { %v4748_v19 = vmul.u32.u64.low %v446_v62, %v445_v56  ;;  %v4749_v20 = vmul.u32.u64.high %v446_v62, %v445_v56, %v4748_v19  ;;  %v253_v22 = vshll.u32 %v4728_v1, 30  ;;  %v549_v54 = vsel %vm535_vm2, %v546_v36, %v548_v9 }
  0xef   :  { %v435_v6 = vsel %vm433_vm11, %v423_v43, 2102212464  ;;  %v518_v27 = vshrl.u32 %v4381_v52, %v4644_v41  ;;  %v4760_v33 = vmul.u32.u64.low %v550_v11, %v545_v17  ;;  %v4761_v30 = vmul.u32.u64.high %v550_v11, %v545_v17, %v4760_v33 }
  0xf0   :  { %v4764_v45 = vmul.u32.u64.low %v550_v11, %v549_v54  ;;  %v4765_v46 = vmul.u32.u64.high %v550_v11, %v549_v54, %v4764_v45  ;;  %v434_v61 = vsel %vm430_vm12, %v414_v18, %v417_v29  ;;  %v436_v57 = vsel %vm432_vm13, %v420_v4, %v435_v6 }
  0xf1   :  { %v357_v5 = vshll.u32 %v4751_v21, 30  ;;  %v254_v37 = vsub.s32 %v250_v26, %v253_v22  ;;  %v539_v43 = vsel %vm537_vm14, %v527_v40, 2102212464  ;;  %v437_v52 = vsel %vm431_vm0, %v434_v61, %v436_v57 }
  0xf2   :  { %v456_v41 = vadd.s32 1, %v4741_v16  ;;  %v538_v44 = vsel %vm534_vm15, %v518_v27, %v521_v34  ;;  %v540_v29 = vsel %vm536_vm1, %v524_v35, %v539_v43  ;;  %vm455_vm3 = vc.u32 %v4749_v20, %v4740_v14 }
  0xf3   :  { %v358_v4 = vsub.s32 %v4659_v42, %v357_v5  ;;  %v256_v26 = vsub.s32 0, %v254_v37  ;;  %v453_v47 = vmul.u32 %v446_v62, %v437_v52  ;;  %v541_v40 = vsel %vm535_vm2, %v538_v44, %v540_v29 }
  0xf4   :  { %v560_v38 = vadd.s32 1, %v4761_v30  ;;  %v457_v53 = vsel %vm455_vm3, %v456_v41, %v4741_v16  ;;  %vm559_vm4 = vc.u32 %v4765_v46, %v4760_v33  ;;  %v557_v35 = vmul.u32 %v550_v11, %v541_v40 }
  0xf5   :  { %v360_v34 = vsub.s32 0, %v358_v4  ;;  %v3709_v55 = vmin.u32 %v256_v26, %v254_v37  ;;  %v458_v12 = vadd.s32 %v457_v53, %v453_v47  ;;  %v246_v27 = vadd.s32 %v4619_v23, %v4627_v31 }
  0xf6   :  { %v561_v58 = vsel %vm559_vm4, %v560_v38, %v4761_v30  ;;  %v350_v61 = vadd.s32 %v4591_v7, %v4601_v15  ;;  %vm192_vm10 = vcmp.lt.s32.totalorder %v4490_v24, 0  ;;  %vm296_vm11 = vcmp.lt.s32.totalorder %v4481_v10, 0 }
  0xf7   :  { %v3713_v59 = vmin.u32 %v360_v34, %v358_v4  ;;  %v258_v42 = vclz %v3709_v55  ;;  %v562_v63 = vadd.s32 %v561_v58, %v557_v35  ;;  %v459_v62 = vadd.s32 536870912, %v458_v12 }
  0xf8   :  { %vm4813_vm12 = vcmp.le.f32.partialorder %v190_v13, 0.7853982  ;;  %vm4823_vm13 = vcmp.le.f32.partialorder %v294_v49, 0.7853982  ;;  %v276_v13 = vsub.s32 4, %v4728_v1  ;;  %vm400_vm14 = vcmp.lt.s32.totalorder %v4504_v50, 0 }
  0xf9   :  { %v362_v0 = vclz %v3713_v59  ;;  %v3710_v39 = vadd.s32 4294967294, %v258_v42  ;;  %v563_v3 = vadd.s32 536870912, %v562_v63  ;;  %v4791_v8 = vshrl.u32 %v459_v62, 30 }
  0xfa   :  { %vm4854_vm1 = vcmp.le.f32.partialorder %v398_v60, 0.7853982  ;;  %vm504_vm2 = vcmp.lt.s32.totalorder %v4506_v51, 0 }
  0xfb   :  { %v3714_v56 = vadd.s32 4294967294, %v362_v0  ;;  %vm3711_vm5 = vcmp.lt.s32.totalorder %v3710_v39, 0  ;;  %v4793_v36 = vshrl.u32 %v563_v3, 30  ;;  %v461_v9 = vshll.u32 %v4791_v8, 30 }
  0xfc   :  { %v261_v16 = vsel %vm3711_vm5, 0, %v3710_v39 }
  0xfd   :  { %vm3715_vm6 = vcmp.lt.s32.totalorder %v3714_v56, 0  ;;  %v565_v11 = vshll.u32 %v4793_v36, 30  ;;  %v4797_v17 = vsub.s32 %v458_v12, %v461_v9  ;;  %v266_v18 = vsub.s32 4294967266, %v261_v16 }
  0xfe   :  { %v365_v19 = vsel %vm3715_vm6, 0, %v3714_v56  ;;  %v262_v30 = vsub.s32 32, %v261_v16  ;;  %v263_v41 = vshll.u32 %v254_v37, %v261_v16  ;;  %vm4866_vm6 = vcmp.le.f32.partialorder %v502_v48, 0.7853982 }
  0xff   :  { %v4799_v22 = vsub.s32 %v562_v63, %v565_v11  ;;  %v464_v54 = vsub.s32 0, %v4797_v17  ;;  %v370_v6 = vsub.s32 4294967266, %v365_v19  ;;  %v267_v45 = vadd.s32 127, %v266_v18 }
 0x100   :  { %v366_v57 = vsub.s32 32, %v365_v19  ;;  %v264_v44 = vshrl.u32 %v246_v27, %v262_v30  ;;  %v367_v26 = vshll.u32 %v358_v4, %v365_v19  ;;  %v454_v11 = vadd.s32 %v4740_v14, %v4749_v20 }
 0x101   :  { %v568_v5 = vsub.s32 0, %v4799_v22  ;;  %v3717_v43 = vmin.u32 %v464_v54, %v4797_v17  ;;  %v371_v52 = vadd.s32 127, %v370_v6  ;;  %v268_v29 = vshll.u32 %v267_v45, 23 }
 0x102   :  { %v368_v38 = vshrl.u32 %v350_v61, %v366_v57  ;;  %v265_v31 = vor.u32 %v264_v44, %v263_v41  ;;  %v558_v14 = vadd.s32 %v4760_v33, %v4765_v46 }
 0x103   :  { %v3721_v47 = vmin.u32 %v568_v5, %v4799_v22  ;;  %v466_v40 = vclz %v3717_v43  ;;  %v372_v23 = vshll.u32 %v371_v52, 23  ;;  %v269_v53 = vor.u32 4788187, %v268_v29 }
 0x104   :  { %v369_v7 = vor.u32 %v368_v38, %v367_v26  ;;  %v272_v12 = vcvt.s32.f32 %v265_v31  ;;  %v277_v5 = vsel %vm192_vm10, %v276_v13, %v4728_v1  ;;  %v484_v13 = vsub.s32 4, %v4791_v8 }
 0x105   :  { %v570_v34 = vclz %v3721_v47  ;;  %v3718_v55 = vadd.s32 4294967294, %v466_v40  ;;  %v373_v15 = vor.u32 4788187, %v372_v23  ;;  %v270_v35 = vand.u32 2147483647, %v269_v53 }
 0x106   :  { %v376_v37 = vcvt.s32.f32 %v369_v7  ;;  %v279_v44 = vsel %vm4813_vm12, 0, %v277_v5 }
 0x107   :  { %v3722_v58 = vadd.s32 4294967294, %v570_v34  ;;  %vm3719_vm8 = vcmp.lt.s32.totalorder %v3718_v55, 0  ;;  %v374_v59 = vand.u32 2147483647, %v373_v15  ;;  %v273_v42 = vmul.f32 %v272_v12, %v270_v35  ;;  %v866_v15 = vpop.permute.xlu0 %865 }
 0x108   :  { %v469_v63 = vsel %vm3719_vm8, 0, %v3718_v55 }
 0x109   :  { %vm3723_vm9 = vcmp.lt.s32.totalorder %v3722_v58, 0  ;;  %v377_v4 = vmul.f32 %v376_v37, %v374_v59  ;;  %v274_v62 = vxor.u32 2147483648, %v273_v42  ;;  %v474_v0 = vsub.s32 4294967266, %v469_v63 }
 0x10a   :  { %v573_v39 = vsel %vm3723_vm9, 0, %v3722_v58  ;;  %v470_v18 = vsub.s32 32, %v469_v63  ;;  %v471_v45 = vshll.u32 %v4797_v17, %v469_v63  ;;  %v380_v17 = vsub.s32 4, %v4751_v21 }
 0x10b   :  { %v378_v3 = vxor.u32 2147483648, %v377_v4  ;;  %v275_v9 = vsel %vm192_vm10, %v274_v62, %v273_v42  ;;  %v578_v16 = vsub.s32 4294967266, %v573_v39  ;;  %v475_v19 = vadd.s32 127, %v474_v0  ;;  %v864_v62 = vpop.permute.xlu1 %863 }
 0x10c   :  { %v278_v27 = vsel %vm4813_vm12, %v4490_v24, %v275_v9  ;;  %v574_v20 = vsub.s32 32, %v573_v39  ;;  %v472_v49 = vshrl.u32 %v454_v11, %v470_v18  ;;  %v575_v43 = vshll.u32 %v4799_v22, %v573_v39 }
 0x10d   :  { %v379_v6 = vsel %vm296_vm11, %v378_v3, %v377_v4  ;;  %v579_v30 = vadd.s32 127, %v578_v16  ;;  %v476_v61 = vshll.u32 %v475_v19, 23  ;;  %4227 = vcosq.f32 %v278_v27  ;;  %v862_v3 = vpop.permute.xlu0 %861 }
 0x10e   :  { %v382_v57 = vsel %vm4823_vm13, %v4481_v10, %v379_v6  ;;  %4229 = vsinq.f32 %v278_v27  ;;  %v576_v52 = vshrl.u32 %v558_v14, %v574_v20  ;;  %v473_v46 = vor.u32 %v472_v49, %v471_v45 }
 0x10f   :  { %v580_v33 = vshll.u32 %v579_v30, 23  ;;  %v477_v41 = vor.u32 4788187, %v476_v61  ;;  %4231 = vcosq.f32 %v382_v57  ;;  %v381_v1 = vsel %vm296_vm11, %v380_v17, %v4751_v21  ;;  %v860_v6 = vpop.permute.xlu1 %859 }
 0x110   :  { %4233 = vsinq.f32 %v382_v57  ;;  %v577_v29 = vor.u32 %v576_v52, %v575_v43  ;;  %v480_v40 = vcvt.s32.f32 %v473_v46  ;;  %v283_v22 = vadd.s32 3, %v279_v44 }
 0x111   :  { %v581_v26 = vor.u32 4788187, %v580_v33  ;;  %v478_v47 = vand.u32 2147483647, %v477_v41  ;;  %v383_v38 = vsel %vm4823_vm13, 0, %v381_v1  ;;  %vm282_vm9 = vweird.f32 %v4490_v24  ;;  %v858_v30 = vpop.permute.xlu0 %857 }
 0x112   :  { %v584_v31 = vcvt.s32.f32 %v577_v29  ;;  %v387_v55 = vadd.s32 3, %v383_v38  ;;  %v284_v7 = vand.u32 3, %v283_v22  ;;  %vm869_vm10 = vcmask 785408  }
 0x113   :  { %v582_v23 = vand.u32 2147483647, %v581_v26  ;;  %v481_v53 = vmul.f32 %v480_v40, %v478_v47  ;;  %vm386_vm11 = vweird.f32 %v4481_v10  ;;  %v873_v24 = vsel %vm869_vm10, %v866_v15, %v4629_v32  ;;  %v856_v33 = vpop.permute.xlu1 %855 }
 0x114   :  { %v388_v37 = vand.u32 3, %v387_v55  ;;  %vm286_vm15 = vcmp.eq.s32.totalorder %v284_v7, 0  ;;  %vm289_vm0 = vcmp.eq.s32.totalorder %v284_v7, 2  ;;  %vm285_vm3 = vcmp.lt.s32.totalorder %v284_v7, 2 }
 0x115   :  { %v585_v12 = vmul.f32 %v584_v31, %v582_v23  ;;  %v482_v58 = vxor.u32 2147483648, %v481_v53  ;;  %v588_v61 = vsub.s32 4, %v4793_v36  ;;  %v485_v43 = vsel %vm400_vm14, %v484_v13, %v4791_v8  ;;  %v854_v46 = vpop.permute.xlu0 %853 }
 0x116   :  { %vm390_vm4 = vcmp.eq.s32.totalorder %v388_v37, 0  ;;  %vm393_vm5 = vcmp.eq.s32.totalorder %v388_v37, 2  ;;  %vm389_vm8 = vcmp.lt.s32.totalorder %v388_v37, 2  ;;  %v872_v10 = vsel %vm869_vm10, %v862_v3, %v864_v62 }
 0x117   :  { %v586_v4 = vxor.u32 2147483648, %v585_v12  ;;  %v483_v39 = vsel %vm400_vm14, %v482_v58, %v481_v53  ;;  %v487_v32 = vsel %vm4854_vm1, 0, %v485_v43  ;;  %v589_v17 = vsel %vm504_vm2, %v588_v61, %v4793_v36 }
 0x118   :  { %v486_v18 = vsel %vm4854_vm1, %v4504_v50, %v483_v39  ;;  %v871_v8 = vsel %vm869_vm10, %v858_v30, %v860_v6  ;;  %v491_v44 = vadd.s32 3, %v487_v32  ;;  %v870_v29 = vsel %vm869_vm10, %v854_v46, %v856_v33 }
 0x119   :  { %v587_v19 = vsel %vm504_vm2, %v586_v4, %v585_v12  ;;  %4235 = vcosq.f32 %v486_v18  ;;  %v591_v26 = vsel %vm4866_vm6, 0, %v589_v17  ;;  %vm490_vm1 = vweird.f32 %v4504_v50  ;;  %v4909_v50 = vld [vmem:[%s5397_s2] sm:$0xff] }
 0x11a   :  { %v4228_v34 = vpop.eup %4227  ;;  %v590_v48 = vsel %vm4866_vm6, %v4506_v51, %v587_v19  ;;  %4237 = vsinq.f32 %v486_v18  ;;  %v595_v40 = vadd.s32 3, %v591_v26  ;;  %v492_v1 = vand.u32 3, %v491_v44  ;;  %v4321_v17 = vld [vmem:[#allocation3 + $0xb0] sm:$0xff]  ;;  %v4323_v44 = vld [vmem:[#allocation3 + $0x20] sm:$0xff] }
 0x11b   :  { %v4230_v35 = vpop.eup %4229  ;;  %v290_v42 = vxor.u32 2147483648, %v4228_v34  ;;  %4239 = vcosq.f32 %v590_v48  ;;  %vm829_vm6 = vcmp.ge.s32.totalorder %v4436_v28, 16 }
 0x11c   :  { %v4232_v59 = vpop.eup %4231  ;;  %v287_v21 = vxor.u32 2147483648, %v4230_v35  ;;  %4241 = vsinq.f32 %v590_v48  ;;  %v596_v53 = vand.u32 3, %v595_v40  ;;  %vm494_vm12 = vcmp.eq.s32.totalorder %v492_v1, 0 }
 0x11d   :  { %v4234_v63 = vpop.eup %4233  ;;  %v394_v56 = vxor.u32 2147483648, %v4232_v59  ;;  %v291_v11 = vsel %vm289_vm0, %v290_v42, %v4230_v35  ;;  %vm497_vm13 = vcmp.eq.s32.totalorder %v492_v1, 2  ;;  %vm493_vm14 = vcmp.lt.s32.totalorder %v492_v1, 2 }
 0x11e   :  { %v391_v9 = vxor.u32 2147483648, %v4234_v63  ;;  %v288_v16 = vsel %vm286_vm15, %v4228_v34, %v287_v21  ;;  %vm598_vm15 = vcmp.eq.s32.totalorder %v596_v53, 0  ;;  %vm601_vm0 = vcmp.eq.s32.totalorder %v596_v53, 2 }
 0x11f   :  { %v292_v54 = vsel %vm285_vm3, %v288_v16, %v291_v11  ;;  %v395_v14 = vsel %vm393_vm5, %v394_v56, %v4234_v63  ;;  %vm597_vm2 = vcmp.lt.s32.totalorder %v596_v53, 2  ;;  %vm594_vm3 = vweird.f32 %v4506_v51 }
 0x120   :  { %v392_v27 = vsel %vm390_vm4, %v4232_v59, %v391_v9  ;;  %v293_v45 = vsel %vm282_vm9, nan, %v292_v54  ;;  %vm4384_vm4 = vmmov 0   ;;  %vm1034_vm5 = vcmask 64512  }
 0x121   :  { %v396_v57 = vsel %vm389_vm8, %v392_v27, %v395_v14  ;;  %3956 = vmatprep.mubr.msk.f32.mxu0 %vm4384_vm4, %v4373_v2  ;;  %vm4387_vm8 = vmmov 1  }
 0x122   :  { %v397_v52 = vsel %vm386_vm11, nan, %v396_v57  ;;  %vm831_vm9 = vmxor %vm4387_vm8, %vm829_vm6 }
 0x123   :  { %vm832_vm10 = vmxor %vm829_vm6, %vm4387_vm8 }
 0x124   :  { %vm833_vm11 = vmxor %vm831_vm9, %vm4387_vm8 }
 0x126   :  { %v4236_v47 = vpop.eup %4235 }
 0x127   :  { %v4238_v36 = vpop.eup %4237  ;;  %v498_v23 = vxor.u32 2147483648, %v4236_v47 }
 0x128   :  { %v4240_v22 = vpop.eup %4239  ;;  %v495_v38 = vxor.u32 2147483648, %v4238_v36 }
 0x129   :  { %v4242_v31 = vpop.eup %4241  ;;  %v602_v55 = vxor.u32 2147483648, %v4240_v22  ;;  %v499_v15 = vsel %vm497_vm13, %v498_v23, %v4238_v36 }
 0x12a   :  { %v599_v34 = vxor.u32 2147483648, %v4242_v31  ;;  %v496_v7 = vsel %vm494_vm12, %v4236_v47, %v495_v38  ;;  %vm822_vm12 = vcmp.ge.s32.totalorder %v4436_v28, 8  ;;  %v3610_v28 = vld [vmem:[#allocation3 + $0xa0] sm:$0xff] }
 0x12b   :  { %v500_v35 = vsel %vm493_vm14, %v496_v7, %v499_v15  ;;  %v603_v58 = vsel %vm601_vm0, %v602_v55, %v4242_v31  ;;  %v1323_v15 = vld [vmem:[#allocation3 + $0xf8] sm:$0xff]  ;;  %vm824_vm13 = vmxor %vm4387_vm8, %vm822_vm12  ;;  %vm2390_vm0 = vcmask 130048  }
 0x12c   :  { %v600_v12 = vsel %vm598_vm15, %v4240_v22, %v599_v34  ;;  %v501_v37 = vsel %vm490_vm1, nan, %v500_v35  ;;  %vm825_vm14 = vmxor %vm822_vm12, %vm4387_vm8 }
 0x12d   :  { %v604_v42 = vsel %vm597_vm2, %v600_v12, %v603_v58  ;;  %vm826_vm15 = vmxor %vm824_vm13, %vm4387_vm8 }
 0x12e   :  { %v605_v4 = vsel %vm594_vm3, nan, %v604_v42 }
 0x164   :  { %v3950_v20 = vpop.f32.mrf.mxu0 }
 0x165   :  { %v695_v41 = vadd.f32 %v3950_v20, %v397_v52 }
 0x166   :  { %v689_v49 = vpop.f32.mrf.mxu0 }
 0x167   :  { %v690_v5 = vadd.f32 %v689_v49, %v293_v45 }
 0x169   :  { %3728 = vmatmul.mubr.msk.f32.vlgmr.msra.gmra.mxu1 %vm610_vm7, %v690_v5 }
 0x16a   :  { %798 = vmatprep.mubr.f32.mxu1 %v4373_v2  ;;  %910 = vmatpush1.msra.mxu1 %v873_v24 }
 0x16b   :  { %911 = vmatprep.subr.mxu1 %v864_v62 }
 0x16c   :  { %912 = vmatpush1.msra.mxu1 %v872_v10 }
 0x16d   :  { %3729 = vmatmul.mubr.msk.f32.gmra.mxu1 %vm610_vm7, %v695_v41  ;;  %913 = vmatprep.subr.mxu1 %v860_v6  ;;  %v4953_v41 = vld [vmem:[#allocation3 + $0x100] sm:$0xff] }
 0x16e   :  { %804 = vmatprep.mubr.f32.mxu1 %v4373_v2  ;;  %914 = vmatpush1.msra.mxu1 %v871_v8  ;;  %v4322_v8 = vld [vmem:[#allocation3 + $0x68] sm:$0xff] }
 0x16f   :  { %915 = vmatprep.subr.mxu1 %v856_v33 }
 0x170   :  { %916 = vmatpush1.msra.mxu1 %v870_v29 }
 0x171   :  { %3964 = vmatprep.subr.mxu1 %v4373_v2 }
 0x17c   :  { %v3953_v59 = vpop.f32.mrf.mxu0 }
 0x17d   :  { %v705_v62 = vadd.f32 %v3953_v59, %v605_v4  ;;  %v4985_v4 = vld [vmem:[#allocation3 + $0xb8] sm:$0xff] }
 0x17e   :  { %v699_v21 = vpop.f32.mrf.mxu0 }
 0x17f   :  { %v700_v63 = vadd.f32 %v699_v21, %v501_v37 }
 0x181   :  { %3730 = vmatmul.mubr.msk.f32.gmra.mxu1 %vm610_vm7, %v700_v63 }
 0x182   :  { %810 = vmatprep.mubr.f32.mxu1 %v4373_v2 }
 0x185   :  { %3731 = vmatmul.mubr.msk.f32.gmra.mxu1 %vm610_vm7, %v705_v62  ;;  %v4989_v62 = vld [vmem:[#allocation3 + $0x70] sm:$0xff] }
 0x186   :  { %949 = vmatprep.mubr.f32.mxu1 %v4373_v2 }
 0x189   :  { %3732 = vmatmul.mubr.msk.f32.vlgmr.msra.gmra.mxu1 %vm610_vm7, %v4909_v50 }
 0x18a   :  { %3966 = vmatprep.mubr.msk.f32.mxu1 %vm4384_vm4, %v4373_v2 }
 0x229   :  { %v4913_v51 = vpop.f32.mrf.mxu1 }
 0x22b   :  { %v4915_v0 = vpop.f32.mrf.mxu1 }
 0x22d   :  { %v4917_v39 = vpop.f32.mrf.mxu1 }
 0x22f   :  { %v4923_v3 = vpop.f32.mrf.mxu1 }
 0x241   :  { %v4925_v56 = vpop.f32.mrf.mxu1 }
 0x243   :  { %v4927_v9 = vpop.f32.mrf.mxu1 }
 0x245   :  { %v4929_v16 = vpop.f32.mrf.mxu1 }
 0x247   :  { %v4931_v11 = vpop.f32.mrf.mxu1 }
 0x249   :  { %v951_v18 = vpop.f32.mrf.mxu1 }
 0x24a   :  { %1048 = vrot.lane.b32.xlu1 %v951_v18, %s4385_s5  ;;  %957 = vrot.lane.b32.xlu0 %v951_v18, %s4386_s6 }
 0x24b   :  { %v953_v13 = vpop.f32.mrf.mxu1 }
 0x24e   :  { %1046 = vrot.lane.b32.xlu0 %v951_v18, %s4377_s0 }
 0x2bc   :  { %v958_v60 = vpop.permute.xlu0 %957  ;;  %v1049_v19 = vpop.permute.xlu1 %1048 }
 0x2bd   :  { %3955 = vmatpush3.xpose.msk.msra.mxu0 %vm610_vm7, %v958_v60 }
 0x2be   :  { %3959 = vmatprep.subr.mxu0 %v4373_v2 }
 0x2c0   :  { %3957 = vmatmul.mubr.msk.f32.vlgmr.msra.gmra.mxu0 %vm610_vm7, %v951_v18  ;;  %v1047_v54 = vpop.permute.xlu0 %1046 }
 0x2c1   :  { %3960 = vmatpush3.xpose.msk.msra.mxu0 %vm610_vm7, %v1049_v19  ;;  %3961 = vmatprep.mubr.msk.f32.mxu0 %vm4384_vm4, %v4373_v2 }
 0x2c2   :  { %3969 = vmatprep.subr.mxu0 %v4373_v2 }
 0x2c4   :  { %3962 = vmatmul.mubr.msk.f32.vlgmr.msra.gmra.mxu0 %vm610_vm7, %v1047_v54 }
 0x2c5   :  { %3970 = vmatpush3.msra.mxu0 %v953_v13  ;;  %3971 = vmatprep.mubr.msk.f32.mxu0 %vm4384_vm4, %v4373_v2 }
 0x2c6   :  { %3985 = vmatprep.subr.msk.mxu0 %vm610_vm7, %v4929_v16 }
 0x380   :  { %v1029_v6 = vpop.f32.mrf.mxu0 }
 0x381   :  { %v1033_v27 = vmul.f32 0.17677669, %v1029_v6 }
 0x382   :  { %v3958_v14 = vpop.f32.mrf.mxu0 }
 0x383   :  { %v1035_v20 = vsel %vm1034_vm5, %v1033_v27, -inf }
 0x384   :  { %1036 = vmax.xlane.f32.xlu1 %v1035_v20  ;;  %v1120_v48 = vpop.f32.mrf.mxu0 }
 0x385   :  { %v1124_v30 = vmul.f32 0.17677669, %v1120_v48 }
 0x386   :  { %v3963_v45 = vpop.f32.mrf.mxu0 }
 0x387   :  { %v1125_v49 = vsel %vm1034_vm5, %v1124_v30, -inf }
 0x388   :  { %1126 = vmax.xlane.f32.xlu0 %v1125_v49 }
 0x40d   :  { %v1037_v24 = vpop.xlane.xlu1 %1036 }
 0x40e   :  { %v1038_v61 = vsub.f32 %v1033_v27, %v1037_v24 }
 0x410   :  { %v1039_v57 = vmul.f32 1.442695, %v1038_v61  ;;  %v3739_v61 = vld [vmem:[%s5397_s2 + $0xb] ss:$0 sm:$0xff] }
 0x411   :  { %v1127_v5 = vpop.xlane.xlu0 %1126 }
 0x412   :  { %4243 = vpow2.f32 %v1039_v57  ;;  %v1128_v43 = vsub.f32 %v1124_v30, %v1127_v5  ;;  %v3740_v5 = vld [vmem:[%s5397_s2 + $0xc] ss:$0 sm:$0xff] }
 0x414   :  { %v1129_v10 = vmul.f32 1.442695, %v1128_v43 }
 0x416   :  { %4245 = vpow2.f32 %v1129_v10 }
 0x41f   :  { %v4244_v52 = vpop.eup %4243 }
 0x420   :  { %v1041_v32 = vsel %vm1034_vm5, %v4244_v52, 0.0 }
 0x421   :  { %1042 = vadd.xlane.f32.xlu0 %v1041_v32 }
 0x423   :  { %v4246_v33 = vpop.eup %4245 }
 0x424   :  { %v1131_v46 = vsel %vm1034_vm5, %v4246_v33, 0.0 }
 0x425   :  { %1132 = vadd.xlane.f32.xlu1 %v1131_v46 }
 0x437   :  { %1137 = vrot.lane.b32.xlu0 %v953_v13, %s4377_s0 }
 0x43b   :  { %1347 = vrot.lane.b32.xlu0 %v4953_v41, %s4385_s5 }
 0x43f   :  { %1341 = vrot.lane.b32.xlu0 %v4321_v17, %s4385_s5 }
 0x443   :  { %1337 = vrot.lane.b32.xlu0 %v4322_v8, %s4385_s5 }
 0x447   :  { %1333 = vrot.lane.b32.xlu0 %v4323_v44, %s4385_s5 }
 0x44b   :  { %1567 = vrot.lane.b32.xlu0 %v4929_v16, %s4377_s0 }
 0x44f   :  { %1563 = vrot.lane.b32.xlu0 %v4917_v39, %s4377_s0 }
 0x4aa   :  { %v1043_v29 = vpop.xlane.xlu0 %1042 }
 0x4ab   :  { %4247 = vrcp.f32 %v1043_v29 }
 0x4ae   :  { %v1133_v26 = vpop.xlane.xlu1 %1132  ;;  %v1138_v47 = vpop.permute.xlu0 %1137 }
 0x4af   :  { %4249 = vrcp.f32 %v1133_v26  ;;  %3965 = vmatpush3.msra.mxu1 %v1138_v47 }
 0x4b2   :  { %v1348_v59 = vpop.permute.xlu0 %1347 }
 0x4b6   :  { %v1342_v18 = vpop.permute.xlu0 %1341 }
 0x4b8   :  { %v4248_v36 = vpop.eup %4247 }
 0x4b9   :  { %v1045_v40 = vmul.f32 %v4248_v36, %v4244_v52 }
 0x4ba   :  { %v1338_v54 = vpop.permute.xlu0 %1337 }
 0x4bb   :  { %3972 = vmatmul.mubr.msk.f32.vlgmr.msra.gmra.mxu0 %vm1034_vm5, %v1045_v40  ;;  %v4388_v40 = vmov -1e+30  }
 0x4bc   :  { %v4250_v1 = vpop.eup %4249  ;;  %3986 = vmatpush3.xpose.msk.msra.mxu0 %vm610_vm7, %v4929_v16 }
 0x4bd   :  { %3987 = vmatprep.subr.msk.mxu0 %vm610_vm7, %v4925_v56  ;;  %v1135_v22 = vmul.f32 %v4250_v1, %v4246_v33  ;;  %v5039_v1 = vsel %vm832_vm10, 0.0, %v4388_v40 }
 0x4be   :  { %v1334_v20 = vpop.permute.xlu0 %1333 }
 0x4bf   :  { %3967 = vmatmul.mubr.msk.f32.vlgmr.msra.gmra.mxu1 %vm1034_vm5, %v1135_v22 }
 0x4c0   :  { %3988 = vmatpush3.xpose.msk.msra.mxu0 %vm610_vm7, %v4925_v56 }
 0x4c1   :  { %3989 = vmatprep.subr.msk.mxu0 %vm610_vm7, %v4917_v39 }
 0x4c2   :  { %v1568_v49 = vpop.permute.xlu0 %1567 }
 0x4c4   :  { %3990 = vmatpush3.xpose.msk.msra.mxu0 %vm610_vm7, %v4917_v39 }
 0x4c5   :  { %3991 = vmatprep.subr.msk.mxu0 %vm610_vm7, %v4913_v51 }
 0x4c6   :  { %v1564_v46 = vpop.permute.xlu0 %1563 }
 0x4c8   :  { %3992 = vmatpush3.xpose.msk.msra.mxu0 %vm610_vm7, %v4913_v51 }
 0x57b   :  { %v1282_v38 = vpop.f32.mrf.mxu0 }
 0x57d   :  { %v3973_v23 = vpop.f32.mrf.mxu0 }
 0x57e   :  { %v5042_v23 = vsel %vm833_vm11, 0.0, %v4388_v40 }
 0x57f   :  { %v1209_v31 = vpop.f32.mrf.mxu1 }
 0x580   :  { %v1283_v53 = vadd.f32 %v1282_v38, %v1209_v31 }
 0x581   :  { %v3968_v34 = vpop.f32.mrf.mxu1 }
 0x582   :  { %v1286_v55 = vadd.f32 %v1283_v53, %v4909_v50  ;;  %v4993_v50 = vld [vmem:[#allocation3 + $0x28] sm:$0xff] }
 0x584   :  { %v1289_v7 = vsel %vm610_vm7, %v1286_v55, 0.0 }
 0x585   :  { %1290 = vadd.xlane.f32.xlu1 %v1289_v7 }
 0x596   :  { %1345 = vrot.lane.b32.xlu1 %v1323_v15, %s4385_s5 }
 0x60e   :  { %v1291_v35 = vpop.xlane.xlu1 %1290 }
 0x60f   :  { %v1293_v12 = vmul.f32 0.03125, %v1291_v35 }
 0x611   :  { %v1294_v58 = vsub.f32 %v1286_v55, %v1293_v12 }
 0x612   :  { %v1346_v37 = vpop.permute.xlu1 %1345 }
 0x613   :  { %v1295_v21 = vmul.f32 %v1294_v58, %v1294_v58  ;;  %v1352_v42 = vsel %vm610_vm7, %v1346_v37, %v1348_v59 }
 0x614   :  { %3974 = vmatprep.subr.mxu1 %v1352_v42 }
 0x615   :  { %v1296_v63 = vsel %vm610_vm7, %v1295_v21, 0.0  ;;  %3975 = vmatpush3.msra.mxu1 %v1352_v42 }
 0x616   :  { %1297 = vadd.xlane.f32.xlu1 %v1296_v63 }
 0x627   :  { %1343 = vrot.lane.b32.xlu1 %v4985_v4, %s4385_s5 }
 0x62b   :  { %1339 = vrot.lane.b32.xlu1 %v4989_v62, %s4385_s5 }
 0x62f   :  { %1335 = vrot.lane.b32.xlu1 %v4993_v50, %s4385_s5 }
 0x633   :  { %1565 = vrot.lane.b32.xlu1 %v4925_v56, %s4377_s0 }
 0x637   :  { %1561 = vrot.lane.b32.xlu1 %v4913_v51, %s4377_s0 }
 0x69f   :  { %v1298_v60 = vpop.xlane.xlu1 %1297 }
 0x6a0   :  { %v1299_v19 = vmul.f32 0.03125, %v1298_v60 }
 0x6a2   :  { %v1300_v13 = vadd.f32 1e-05, %v1299_v19 }
 0x6a3   :  { %v1344_v6 = vpop.permute.xlu1 %1343 }
 0x6a4   :  { %4251 = vrsqrt.f32 %v1300_v13  ;;  %v1351_v27 = vsel %vm610_vm7, %v1342_v18, %v1344_v6 }
 0x6a5   :  { %3976 = vmatprep.subr.mxu1 %v1351_v27 }
 0x6a6   :  { %3977 = vmatpush3.msra.mxu1 %v1351_v27 }
 0x6a7   :  { %v1340_v14 = vpop.permute.xlu1 %1339 }
 0x6a8   :  { %v1350_v48 = vsel %vm610_vm7, %v1338_v54, %v1340_v14 }
 0x6a9   :  { %3978 = vmatprep.subr.mxu1 %v1350_v48 }
 0x6aa   :  { %3979 = vmatpush3.msra.mxu1 %v1350_v48 }
 0x6ab   :  { %v1336_v30 = vpop.permute.xlu1 %1335 }
 0x6ac   :  { %v1349_v45 = vsel %vm610_vm7, %v1334_v20, %v1336_v30 }
 0x6ad   :  { %3980 = vmatprep.subr.mxu1 %v1349_v45 }
 0x6ae   :  { %3981 = vmatpush3.msra.mxu1 %v1349_v45 }
 0x6af   :  { %3996 = vmatprep.subr.msk.mxu1 %vm610_vm7, %v1568_v49  ;;  %v1566_v33 = vpop.permute.xlu1 %1565 }
 0x6b1   :  { %v4252_v24 = vpop.eup %4251 }
 0x6b2   :  { %v1302_v57 = vmul.f32 %v4252_v24, %v1294_v58 }
 0x6b3   :  { %v1562_v17 = vpop.permute.xlu1 %1561 }
 0x6b4   :  { %v1307_v43 = vmul.f32 %v3739_v61, %v1302_v57 }
 0x6b6   :  { %v1312_v10 = vadd.f32 %v3740_v5, %v1307_v43 }
 0x6b8   :  { %1313 = vst.msk [vmem:[#allocation2] sm:$0xff] %vm610_vm7, %v1312_v10  ;;  %1314 = vst.msk [vmem:[#allocation2 + $0x8] sm:$0xff] %vm610_vm7, %v1312_v10 }
 0x6bf   :  { %v5013_v52 = vld [vmem:[#allocation2] sm:$0xff]  ;;  %v5015_v32 = vld [vmem:[#allocation2 + $0x8] sm:$0xff] }
 0x6c0   :  { %3982 = vmatprep.mubr.msk.f32.mxu1 %vm610_vm7, %v5013_v52 }
 0x6c1   :  { %3983 = vmatmul.mubr.msk.f32.vlgmr.msra.gmra.mxu1 %vm610_vm7, %v5015_v32 }
 0x6c2   :  { %3997 = vmatpush3.xpose.msk.msra.mxu1 %vm610_vm7, %v1568_v49 }
 0x6c3   :  { %3998 = vmatprep.subr.msk.mxu1 %vm610_vm7, %v1566_v33 }
 0x6c6   :  { %3999 = vmatpush3.xpose.msk.msra.mxu1 %vm610_vm7, %v1566_v33 }
 0x6c7   :  { %4000 = vmatprep.subr.msk.mxu1 %vm610_vm7, %v1564_v46 }
 0x6ca   :  { %4001 = vmatpush3.xpose.msk.msra.mxu1 %vm610_vm7, %v1564_v46 }
 0x6cb   :  { %4002 = vmatprep.subr.msk.mxu1 %vm610_vm7, %v1562_v17 }
 0x6ce   :  { %4003 = vmatpush3.xpose.msk.msra.mxu1 %vm610_vm7, %v1562_v17 }
 0x781   :  { %v3984_v8 = vpop.f32.mrf.mxu1 }
 0x782   :  { %1559 = vrot.lane.b32.xlu1 %v3984_v8, %s4377_s0 }
 0x783   :  { %v1429_v44 = vpop.f32.mrf.mxu1 }
 0x784   :  { %1557 = vrot.lane.b32.xlu0 %v1429_v44, %s4377_s0  ;;  %3993 = vmatprep.mubr.msk.f32.mxu0 %vm610_vm7, %v1429_v44 }
 0x785   :  { %3994 = vmatmul.mubr.msk.f32.vlgmr.msra.gmra.mxu0 %vm610_vm7, %v3984_v8 }
 0x7f4   :  { %v1560_v26 = vpop.permute.xlu1 %1559 }
 0x7f6   :  { %v1558_v29 = vpop.permute.xlu0 %1557 }
 0x7f7   :  { %4004 = vmatprep.mubr.msk.f32.mxu1 %vm610_vm7, %v1558_v29 }
 0x7f8   :  { %4005 = vmatmul.mubr.msk.f32.vlgmr.msra.gmra.mxu1 %vm610_vm7, %v1560_v26 }
 0x845   :  { %v3995_v47 = vpop.f32.mrf.mxu0 }
 0x846   :  { %v1532_v22 = vmul.f32 0.17677669, %v3995_v47 }
 0x847   :  { %v1522_v36 = vpop.f32.mrf.mxu0 }
 0x848   :  { %v1531_v38 = vmul.f32 0.17677669, %v1522_v36  ;;  %v1534_v34 = vadd.f32 %v1532_v22, %v5042_v23 }
 0x84a   :  { %v1533_v31 = vadd.f32 %v1531_v38, %v5039_v1  ;;  %v1538_v55 = vsel %vm610_vm7, %v1534_v34, -inf }
 0x84c   :  { %v1535_v53 = vsel %vm610_vm7, %v1533_v31, -inf }
 0x84d   :  { %1536 = vmax.xlane.f32.xlu0 %v1535_v53 }
 0x851   :  { %1539 = vmax.xlane.f32.xlu0 %v1538_v55 }
 0x8b8   :  { %v4006_v7 = vpop.f32.mrf.mxu1 }
 0x8b9   :  { %v1657_v15 = vmul.f32 0.17677669, %v4006_v7 }
 0x8ba   :  { %v1647_v35 = vpop.f32.mrf.mxu1 }
 0x8bb   :  { %v1656_v12 = vmul.f32 0.17677669, %v1647_v35  ;;  %v1659_v58 = vadd.f32 %v1657_v15, %v5042_v23 }
 0x8bd   :  { %v1663_v59 = vsel %vm610_vm7, %v1659_v58, -inf  ;;  %v1658_v37 = vadd.f32 %v1656_v12, %v5039_v1 }
 0x8be   :  { %1664 = vmax.xlane.f32.xlu0 %v1663_v59 }
 0x8bf   :  { %v1660_v21 = vsel %vm610_vm7, %v1658_v37, -inf }
 0x8c0   :  { %1661 = vmax.xlane.f32.xlu1 %v1660_v21 }
 0x8d1   :  { %1688 = vrot.lane.b32.xlu1 %v4929_v16, %s4385_s5 }
 0x8d4   :  { %1781 = vrot.lane.b32.xlu0 %v4929_v16, %s4386_s6 }
 0x8d5   :  { %1686 = vrot.lane.b32.xlu1 %v4925_v56, %s4385_s5 }
 0x8d6   :  { %v1537_v42 = vpop.xlane.xlu0 %1536 }
 0x8d7   :  { %v1541_v60 = vsub.f32 %v1533_v31, %v1537_v42 }
 0x8d8   :  { %1684 = vrot.lane.b32.xlu0 %v4917_v39, %s4385_s5 }
 0x8d9   :  { %1779 = vrot.lane.b32.xlu1 %v4925_v56, %s4386_s6  ;;  %v1543_v54 = vmul.f32 1.442695, %v1541_v60 }
 0x8da   :  { %v1540_v63 = vpop.xlane.xlu0 %1539 }
 0x8db   :  { %v1542_v18 = vsub.f32 %v1534_v34, %v1540_v63 }
 0x8dd   :  { %1777 = vrot.lane.b32.xlu1 %v4917_v39, %s4386_s6  ;;  %v1545_v19 = vmul.f32 1.442695, %v1542_v18 }
 0x8df   :  { %4253 = vpow2.f32 %v1545_v19 }
 0x8e0   :  { %4255 = vpow2.f32 %v1543_v54 }
 0x8ec   :  { %v4254_v16 = vpop.eup %4253 }
 0x8ed   :  { %v1550_v13 = vsel %vm610_vm7, %v4254_v16, 0.0  ;;  %v4256_v6 = vpop.eup %4255 }
 0x8ee   :  { %v1547_v27 = vsel %vm610_vm7, %v4256_v6, 0.0 }
 0x901   :  { %1551 = vadd.xlane.f32.xlu1 %v1550_v13 }
 0x905   :  { %1548 = vadd.xlane.f32.xlu1 %v1547_v27 }
 0x916   :  { %1775 = vrot.lane.b32.xlu1 %v4913_v51, %s4386_s6 }
 0x947   :  { %v1665_v39 = vpop.xlane.xlu0 %1664 }
 0x948   :  { %v1667_v56 = vsub.f32 %v1659_v58, %v1665_v39 }
 0x949   :  { %v1662_v14 = vpop.xlane.xlu1 %1661 }
 0x94a   :  { %v1670_v20 = vmul.f32 1.442695, %v1667_v56  ;;  %v1666_v48 = vsub.f32 %v1658_v37, %v1662_v14 }
 0x94b   :  { %v1782_v30 = vpop.permute.xlu0 %1781 }
 0x94c   :  { %4257 = vpow2.f32 %v1670_v20  ;;  %v1668_v45 = vmul.f32 1.442695, %v1666_v48  ;;  %4018 = vmatprep.subr.mxu1 %v1782_v30 }
 0x94d   :  { %v1689_v49 = vpop.permute.xlu1 %1688  ;;  %4019 = vmatpush3.msra.mxu1 %v1782_v30 }
 0x94e   :  { %4259 = vpow2.f32 %v1668_v45  ;;  %4007 = vmatprep.subr.mxu0 %v1689_v49 }
 0x94f   :  { %4008 = vmatpush3.msra.mxu0 %v1689_v49  ;;  %v1685_v61 = vpop.permute.xlu0 %1684 }
 0x951   :  { %v1687_v24 = vpop.permute.xlu1 %1686 }
 0x952   :  { %4009 = vmatprep.subr.mxu0 %v1687_v24 }
 0x953   :  { %4010 = vmatpush3.msra.mxu0 %v1687_v24 }
 0x954   :  { %4011 = vmatprep.subr.mxu0 %v1685_v61 }
 0x955   :  { %v1780_v57 = vpop.permute.xlu1 %1779  ;;  %4012 = vmatpush3.msra.mxu0 %v1685_v61 }
 0x956   :  { %4020 = vmatprep.subr.mxu1 %v1780_v57 }
 0x957   :  { %4021 = vmatpush3.msra.mxu1 %v1780_v57 }
 0x959   :  { %v4258_v5 = vpop.eup %4257  ;;  %v1778_v43 = vpop.permute.xlu1 %1777 }
 0x95a   :  { %4022 = vmatprep.subr.mxu1 %v1778_v43  ;;  %v1675_v10 = vsel %vm610_vm7, %v4258_v5, 0.0 }
 0x95b   :  { %v4260_v33 = vpop.eup %4259  ;;  %1676 = vadd.xlane.f32.xlu0 %v1675_v10  ;;  %4023 = vmatpush3.msra.mxu1 %v1778_v43  ;;  %v3759_v10 = vld [vmem:[%s5397_s2 + $0xd] ss:$0 sm:$0xff] }
 0x95c   :  { %v1672_v46 = vsel %vm610_vm7, %v4260_v33, 0.0 }
 0x95f   :  { %1673 = vadd.xlane.f32.xlu0 %v1672_v46 }
 0x975   :  { %1682 = vrot.lane.b32.xlu0 %v4913_v51, %s4385_s5 }
 0x98a   :  { %v1552_v17 = vpop.xlane.xlu1 %1551 }
 0x98b   :  { %4261 = vrcp.f32 %v1552_v17 }
 0x98e   :  { %v1549_v8 = vpop.xlane.xlu1 %1548 }
 0x98f   :  { %4263 = vrcp.f32 %v1549_v8  ;;  %v3760_v8 = vld [vmem:[%s5397_s2 + $0xe] ss:$0 sm:$0xff] }
 0x992   :  { %v1776_v44 = vpop.permute.xlu1 %1775 }
 0x993   :  { %4024 = vmatprep.subr.mxu1 %v1776_v44 }
 0x994   :  { %4025 = vmatpush3.msra.mxu1 %v1776_v44 }
 0x998   :  { %v4262_v29 = vpop.eup %4261 }
 0x999   :  { %v1556_v36 = vmul.f32 %v4262_v29, %v4254_v16 }
 0x99c   :  { %v4264_v26 = vpop.eup %4263 }
 0x99d   :  { %v1555_v47 = vmul.f32 %v4264_v26, %v4256_v6 }
 0x99f   :  { %4026 = vmatprep.mubr.msk.f32.mxu1 %vm610_vm7, %v1555_v47 }
 0x9a0   :  { %4027 = vmatmul.mubr.msk.f32.vlgmr.msra.gmra.mxu1 %vm610_vm7, %v1556_v36 }
 0x9e4   :  { %v1677_v22 = vpop.xlane.xlu0 %1676 }
 0x9e5   :  { %4265 = vrcp.f32 %v1677_v22 }
 0x9e8   :  { %v1674_v38 = vpop.xlane.xlu0 %1673 }
 0x9e9   :  { %4267 = vrcp.f32 %v1674_v38  ;;  %v3761_v38 = vld [vmem:[%s5397_s2 + $0x11] ss:$0 sm:$0xff] }
 0x9ec   :  { %v1683_v51 = vpop.permute.xlu0 %1682 }
 0x9ed   :  { %4013 = vmatprep.subr.mxu0 %v1683_v51 }
 0x9ee   :  { %4014 = vmatpush3.msra.mxu0 %v1683_v51 }
 0x9f2   :  { %v4266_v31 = vpop.eup %4265 }
 0x9f3   :  { %v1681_v55 = vmul.f32 %v4266_v31, %v4258_v5 }
 0x9f6   :  { %v4268_v53 = vpop.eup %4267 }
 0x9f7   :  { %v1680_v34 = vmul.f32 %v4268_v53, %v4260_v33 }
 0x9f9   :  { %4015 = vmatprep.mubr.msk.f32.mxu0 %vm610_vm7, %v1680_v34 }
 0x9fa   :  { %4016 = vmatmul.mubr.msk.f32.vlgmr.msra.gmra.mxu0 %vm610_vm7, %v1681_v55 }
 0xa60   :  { %v4028_v7 = vpop.f32.mrf.mxu1 }
 0xa62   :  { %v1859_v12 = vpop.f32.mrf.mxu1 }
 0xaba   :  { %v4017_v15 = vpop.f32.mrf.mxu0 }
 0xabb   :  { %v1865_v35 = vadd.f32 %v4028_v7, %v4017_v15  ;;  %v3764_v15 = vld [vmem:[%s5397_s2 + $0x12] ss:$0 sm:$0xff] }
 0xabc   :  { %v1766_v58 = vpop.f32.mrf.mxu0 }
 0xabd   :  { %v1860_v59 = vadd.f32 %v1859_v12, %v1766_v58  ;;  %v1869_v37 = vadd.f32 %v1865_v35, %v5015_v32 }
 0xabf   :  { %v1875_v21 = vsel %vm610_vm7, %v1869_v37, 0.0  ;;  %v1868_v42 = vadd.f32 %v1860_v59, %v5013_v52 }
 0xac0   :  { %1876 = vadd.xlane.f32.xlu1 %v1875_v21 }
 0xac1   :  { %v1872_v63 = vsel %vm610_vm7, %v1868_v42, 0.0 }
 0xac2   :  { %1873 = vadd.xlane.f32.xlu0 %v1872_v63 }
 0xad1   :  { %1921 = vrot.lane.b32.xlu1 %v4953_v41, %s4377_s0 }
 0xad5   :  { %1917 = vrot.lane.b32.xlu1 %v4989_v62, %s4377_s0 }
 0xad9   :  { %1915 = vrot.lane.b32.xlu1 %v4993_v50, %s4377_s0 }
 0xadd   :  { %2019 = vrot.lane.b32.xlu1 %v4985_v4, %s4386_s6 }
 0xae1   :  { %2015 = vrot.lane.b32.xlu1 %v4993_v50, %s4386_s6 }
 0xb49   :  { %v1877_v52 = vpop.xlane.xlu1 %1876 }
 0xb4a   :  { %v1879_v32 = vmul.f32 0.03125, %v1877_v52  ;;  %v2160_v52 = vld [vmem:[#allocation3 + $0x108] sm:$0xff] }
 0xb4b   :  { %v1874_v18 = vpop.xlane.xlu0 %1873 }
 0xb4c   :  { %v1881_v60 = vsub.f32 %v1869_v37, %v1879_v32  ;;  %v1878_v19 = vmul.f32 0.03125, %v1874_v18  ;;  %v5120_v32 = vld [vmem:[#allocation3 + $0x110] sm:$0xff]  ;;  %v2157_v18 = vld [vmem:[#allocation3 + $0xc0] sm:$0xff] }
 0xb4d   :  { %v1922_v39 = vpop.permute.xlu1 %1921 }
 0xb4e   :  { %v1880_v54 = vsub.f32 %v1868_v42, %v1878_v19  ;;  %v1883_v16 = vmul.f32 %v1881_v60, %v1881_v60  ;;  %4029 = vmatprep.subr.mxu0 %v1922_v39  ;;  %v2154_v19 = vld [vmem:[#allocation3 + $0x78] sm:$0xff] }
 0xb4f   :  { %4030 = vmatpush3.msra.mxu0 %v1922_v39 }
 0xb50   :  { %v1887_v13 = vsel %vm610_vm7, %v1883_v16, 0.0  ;;  %v1882_v6 = vmul.f32 %v1880_v54, %v1880_v54 }
 0xb51   :  { %1888 = vadd.xlane.f32.xlu0 %v1887_v13  ;;  %v1918_v30 = vpop.permute.xlu1 %1917 }
 0xb52   :  { %v1884_v27 = vsel %vm610_vm7, %v1882_v6, 0.0 }
 0xb55   :  { %1885 = vadd.xlane.f32.xlu0 %v1884_v27  ;;  %v1916_v61 = vpop.permute.xlu1 %1915 }
 0xb59   :  { %v2020_v47 = vpop.permute.xlu1 %2019 }
 0xb5d   :  { %v2016_v22 = vpop.permute.xlu1 %2015 }
 0xb6b   :  { %1919 = vrot.lane.b32.xlu0 %v4985_v4, %s4377_s0 }
 0xb6f   :  { %2021 = vrot.lane.b32.xlu0 %v4953_v41, %s4386_s6 }
 0xb73   :  { %2017 = vrot.lane.b32.xlu0 %v4989_v62, %s4386_s6 }
 0xbda   :  { %v1889_v56 = vpop.xlane.xlu0 %1888 }
 0xbdb   :  { %v1891_v14 = vmul.f32 0.03125, %v1889_v56 }
 0xbdd   :  { %v1893_v20 = vadd.f32 1e-05, %v1891_v14 }
 0xbde   :  { %v1886_v48 = vpop.xlane.xlu0 %1885 }
 0xbdf   :  { %4269 = vrsqrt.f32 %v1893_v20  ;;  %v1890_v45 = vmul.f32 0.03125, %v1886_v48 }
 0xbe1   :  { %v1892_v49 = vadd.f32 1e-05, %v1890_v45 }
 0xbe2   :  { %v1920_v24 = vpop.permute.xlu0 %1919 }
 0xbe3   :  { %4271 = vrsqrt.f32 %v1892_v49  ;;  %4031 = vmatprep.subr.mxu0 %v1920_v24 }
 0xbe4   :  { %4032 = vmatpush3.msra.mxu0 %v1920_v24 }
 0xbe5   :  { %4033 = vmatprep.subr.mxu0 %v1918_v30 }
 0xbe6   :  { %4034 = vmatpush3.msra.mxu0 %v1918_v30  ;;  %v2022_v57 = vpop.permute.xlu0 %2021 }
 0xbe7   :  { %4035 = vmatprep.subr.mxu0 %v1916_v61  ;;  %4040 = vmatprep.subr.mxu1 %v2022_v57 }
 0xbe8   :  { %4036 = vmatpush3.msra.mxu0 %v1916_v61  ;;  %4041 = vmatpush3.msra.mxu1 %v2022_v57 }
 0xbe9   :  { %4042 = vmatprep.subr.mxu1 %v2020_v47 }
 0xbea   :  { %4043 = vmatpush3.msra.mxu1 %v2020_v47  ;;  %v2018_v36 = vpop.permute.xlu0 %2017 }
 0xbeb   :  { %4044 = vmatprep.subr.mxu1 %v2018_v36 }
 0xbec   :  { %v4270_v5 = vpop.eup %4269  ;;  %4045 = vmatpush3.msra.mxu1 %v2018_v36 }
 0xbed   :  { %v1897_v43 = vmul.f32 %v4270_v5, %v1881_v60  ;;  %4046 = vmatprep.subr.mxu1 %v2016_v22  ;;  %v5125_v60 = vld [vmem:[#allocation3 + $0xc8] sm:$0xff] }
 0xbee   :  { %4047 = vmatpush3.msra.mxu1 %v2016_v22 }
 0xbef   :  { %v1903_v17 = vmul.f32 %v3759_v10, %v1897_v43 }
 0xbf0   :  { %v4272_v33 = vpop.eup %4271 }
 0xbf1   :  { %v1896_v46 = vmul.f32 %v4272_v33, %v1880_v54  ;;  %v1909_v26 = vadd.f32 %v3760_v8, %v1903_v17  ;;  %v5131_v54 = vld [vmem:[#allocation3 + $0x80] sm:$0xff] }
 0xbf3   :  { %v1902_v44 = vmul.f32 %v3759_v10, %v1896_v46 }
 0xbf5   :  { %v1908_v29 = vadd.f32 %v3760_v8, %v1902_v44  ;;  %v5157_v8 = vld [vmem:[#allocation3 + $0x38] sm:$0xff] }
 0xbf7   :  { %4037 = vmatprep.mubr.msk.f32.mxu0 %vm610_vm7, %v1908_v29 }
 0xbf8   :  { %4038 = vmatmul.mubr.msk.f32.vlgmr.msra.gmra.mxu0 %vm610_vm7, %v1909_v26 }
 0xbf9   :  { %2284 = vmatprep.mubr.f32.mxu0 %v4373_v2 }
 0xcb8   :  { %v4039_v51 = vpop.f32.mrf.mxu0 }
 0xcb9   :  { %v2005_v31 = vadd.f32 %v4039_v51, %v3761_v38 }
 0xcba   :  { %v1999_v53 = vpop.f32.mrf.mxu0 }
 0xcbb   :  { %v2000_v34 = vadd.f32 %v3761_v38, %v1999_v53  ;;  %v2009_v7 = vmax.f32 %v2005_v31, 0.0 }
 0xcbd   :  { %v2008_v55 = vmax.f32 %v2000_v34, 0.0 }
 0xcbf   :  { %4048 = vmatprep.mubr.msk.f32.mxu1 %vm610_vm7, %v2008_v55 }
 0xcc0   :  { %4049 = vmatmul.mubr.msk.f32.vlgmr.msra.gmra.mxu1 %vm610_vm7, %v2009_v7 }
 0xd80   :  { %v4050_v35 = vpop.f32.mrf.mxu1 }
 0xd81   :  { %v2105_v12 = vadd.f32 %v4050_v35, %v3764_v15 }
 0xd82   :  { %v2099_v58 = vpop.f32.mrf.mxu1 }
 0xd83   :  { %v2100_v59 = vadd.f32 %v3764_v15, %v2099_v58  ;;  %v2109_v37 = vadd.f32 %v2105_v12, %v1909_v26  ;;  %v3767_v58 = vld [vmem:[%s5397_s2 + $0xf] ss:$0 sm:$0xff] }
 0xd85   :  { %v2115_v21 = vsel %vm610_vm7, %v2109_v37, 0.0  ;;  %v2108_v42 = vadd.f32 %v2100_v59, %v1908_v29 }
 0xd86   :  { %2116 = vadd.xlane.f32.xlu1 %v2115_v21 }
 0xd87   :  { %v2112_v63 = vsel %vm610_vm7, %v2108_v42, 0.0 }
 0xd88   :  { %2113 = vadd.xlane.f32.xlu0 %v2112_v63 }
 0xd97   :  { %2194 = vrot.lane.b32.xlu1 %v2160_v52, %s4385_s5 }
 0xd9b   :  { %2192 = vrot.lane.b32.xlu1 %v4953_v41, %s4385_s5  ;;  %v2151_v41 = vld [vmem:[#allocation3 + $0x30] sm:$0xff] }
 0xd9e   :  { %2196 = vrot.lane.b32.xlu0 %v5120_v32, %s4385_s5 }
 0xd9f   :  { %2188 = vrot.lane.b32.xlu1 %v2157_v18, %s4385_s5 }
 0xda2   :  { %2190 = vrot.lane.b32.xlu0 %v5125_v60, %s4385_s5 }
 0xda3   :  { %2186 = vrot.lane.b32.xlu1 %v4985_v4, %s4385_s5 }
 0xda6   :  { %2182 = vrot.lane.b32.xlu0 %v2154_v19, %s4385_s5 }
 0xda7   :  { %2184 = vrot.lane.b32.xlu1 %v5131_v54, %s4385_s5 }
 0xdab   :  { %2176 = vrot.lane.b32.xlu1 %v2151_v41, %s4385_s5 }
 0xdaf   :  { %2174 = vrot.lane.b32.xlu1 %v4993_v50, %s4385_s5 }
 0xe0f   :  { %v2117_v16 = vpop.xlane.xlu1 %2116 }
 0xe10   :  { %v2119_v13 = vmul.f32 0.03125, %v2117_v16 }
 0xe11   :  { %v2114_v6 = vpop.xlane.xlu0 %2113 }
 0xe12   :  { %v2121_v27 = vsub.f32 %v2109_v37, %v2119_v13  ;;  %v2118_v39 = vmul.f32 0.03125, %v2114_v6  ;;  %v3768_v37 = vld [vmem:[%s5397_s2 + $0x10] ss:$0 sm:$0xff] }
 0xe13   :  { %v2195_v4 = vpop.permute.xlu1 %2194 }
 0xe14   :  { %v2120_v56 = vsub.f32 %v2108_v42, %v2118_v39  ;;  %v2123_v14 = vmul.f32 %v2121_v27, %v2121_v27 }
 0xe15   :  { %v5139_v20 = vpop.permute.xlu0 %2196 }
 0xe16   :  { %v2127_v48 = vsel %vm610_vm7, %v2123_v14, 0.0  ;;  %v2122_v30 = vmul.f32 %v2120_v56, %v2120_v56  ;;  %v2205_v45 = vsel %vm610_vm7, %v2195_v4, %v5139_v20 }
 0xe17   :  { %2128 = vadd.xlane.f32.xlu0 %v2127_v48  ;;  %v2193_v49 = vpop.permute.xlu1 %2192  ;;  %2244 = vmatprep.subr.mxu0 %v2205_v45 }
 0xe18   :  { %v2204_v50 = vsel %vm610_vm7, %v2193_v49, %v2195_v4  ;;  %v2124_v61 = vsel %vm610_vm7, %v2122_v30, 0.0  ;;  %v827_v30 = vsel %vm825_vm14, 0.0, %v4388_v40 }
 0xe19   :  { %v5145_v24 = vpop.permute.xlu0 %2190  ;;  %2245 = vmatpush1.msra.mxu0 %v2204_v50 }
 0xe1b   :  { %2125 = vadd.xlane.f32.xlu0 %v2124_v61  ;;  %v2189_v57 = vpop.permute.xlu1 %2188  ;;  %v828_v61 = vsel %vm826_vm15, 0.0, %v4388_v40 }
 0xe1c   :  { %v2203_v5 = vsel %vm610_vm7, %v2189_v57, %v5145_v24 }
 0xe1d   :  { %2246 = vmatprep.subr.mxu0 %v2203_v5  ;;  %v2183_v33 = vpop.permute.xlu0 %2182 }
 0xe1f   :  { %v2187_v43 = vpop.permute.xlu1 %2186 }
 0xe20   :  { %v2202_v10 = vsel %vm610_vm7, %v2187_v43, %v2189_v57 }
 0xe21   :  { %2247 = vmatpush1.msra.mxu0 %v2202_v10 }
 0xe23   :  { %v5151_v46 = vpop.permute.xlu1 %2184 }
 0xe24   :  { %v2201_v17 = vsel %vm610_vm7, %v2183_v33, %v5151_v46 }
 0xe25   :  { %2248 = vmatprep.subr.mxu0 %v2201_v17 }
 0xe27   :  { %v2177_v47 = vpop.permute.xlu1 %2176 }
 0xe2b   :  { %v2175_v53 = vpop.permute.xlu1 %2174 }
 0xe2c   :  { %v2198_v34 = vsel %vm610_vm7, %v2175_v53, %v2177_v47 }
 0xe31   :  { %2180 = vrot.lane.b32.xlu0 %v4989_v62, %s4385_s5 }
 0xe35   :  { %2178 = vrot.lane.b32.xlu0 %v5157_v8, %s4385_s5 }
 0xea0   :  { %v2129_v44 = vpop.xlane.xlu0 %2128 }
 0xea1   :  { %v2131_v29 = vmul.f32 0.03125, %v2129_v44 }
 0xea3   :  { %v2133_v26 = vadd.f32 1e-05, %v2131_v29 }
 0xea4   :  { %v2126_v36 = vpop.xlane.xlu0 %2125 }
 0xea5   :  { %v2130_v22 = vmul.f32 0.03125, %v2126_v36  ;;  %4273 = vrsqrt.f32 %v2133_v26 }
 0xea7   :  { %v2132_v38 = vadd.f32 1e-05, %v2130_v22 }
 0xea8   :  { %v2181_v51 = vpop.permute.xlu0 %2180 }
 0xea9   :  { %4275 = vrsqrt.f32 %v2132_v38  ;;  %v2200_v31 = vsel %vm610_vm7, %v2181_v51, %v2183_v33 }
 0xeaa   :  { %2249 = vmatpush1.msra.mxu0 %v2200_v31 }
 0xeac   :  { %v5162_v62 = vpop.permute.xlu0 %2178 }
 0xead   :  { %v2199_v55 = vsel %vm610_vm7, %v2177_v47, %v5162_v62 }
 0xeae   :  { %2250 = vmatprep.subr.mxu0 %v2199_v55 }
 0xeaf   :  { %2251 = vmatpush1.msra.mxu0 %v2198_v34 }
 0xeb2   :  { %v4274_v7 = vpop.eup %4273 }
 0xeb3   :  { %v2137_v12 = vmul.f32 %v4274_v7, %v2121_v27 }
 0xeb5   :  { %v2143_v42 = vmul.f32 %v3767_v58, %v2137_v12 }
 0xeb6   :  { %v4276_v15 = vpop.eup %4275 }
 0xeb7   :  { %v2136_v35 = vmul.f32 %v4276_v15, %v2120_v56  ;;  %v5178_v63 = vadd.f32 %v3768_v37, %v2143_v42 }
 0xeb9   :  { %v2142_v59 = vmul.f32 %v3767_v58, %v2136_v35 }
 0xebb   :  { %v5173_v21 = vadd.f32 %v3768_v37, %v2142_v59 }
 0xebd   :  { %3769 = vmatmul.mubr.msk.f32.vlgmr.msra.gmra.mxu0 %vm610_vm7, %v5173_v21 }
 0xebe   :  { %2290 = vmatprep.mubr.f32.mxu0 %v4373_v2 }
 0xec1   :  { %3770 = vmatmul.mubr.msk.f32.gmra.mxu0 %vm610_vm7, %v5178_v63 }
 0xf7d   :  { %v2286_v52 = vpop.f32.mrf.mxu0 }
 0xf7e   :  { %4055 = vmatprep.mubr.msk.f32.mxu1 %vm610_vm7, %v2286_v52 }
 0xf7f   :  { %v5183_v18 = vpop.f32.mrf.mxu0 }
 0xf81   :  { %v2292_v19 = vpop.f32.mrf.mxu0 }
 0xf82   :  { %2419 = vrot.lane.b32.xlu1 %v2292_v19, %s4385_s5  ;;  %2301 = vrot.lane.b32.xlu0 %v2292_v19, %s4386_s6 }
 0xf83   :  { %v5197_v27 = vpop.f32.mrf.mxu0 }
 0xf86   :  { %2417 = vrot.lane.b32.xlu1 %v2286_v52, %s4385_s5  ;;  %2299 = vrot.lane.b32.xlu0 %v2286_v52, %s4386_s6 }
 0xf8a   :  { %2415 = vrot.lane.b32.xlu1 %v2292_v19, %s4377_s0  ;;  %2413 = vrot.lane.b32.xlu0 %v2286_v52, %s4377_s0 }
 0xff4   :  { %v2420_v41 = vpop.permute.xlu1 %2419  ;;  %v2302_v16 = vpop.permute.xlu0 %2301 }
 0xff5   :  { %4051 = vmatprep.subr.msk.mxu1 %vm610_vm7, %v2302_v16  ;;  %4058 = vmatprep.subr.msk.mxu0 %vm610_vm7, %v2420_v41 }
 0xff6   :  { %4052 = vmatpush3.xpose.msk.msra.mxu1 %vm610_vm7, %v2302_v16  ;;  %4059 = vmatpush3.xpose.msk.msra.mxu0 %vm610_vm7, %v2420_v41 }
 0xff8   :  { %v2418_v13 = vpop.permute.xlu1 %2417  ;;  %v2300_v6 = vpop.permute.xlu0 %2299 }
 0xff9   :  { %4053 = vmatprep.subr.msk.mxu1 %vm610_vm7, %v2300_v6  ;;  %4060 = vmatprep.subr.msk.mxu0 %vm610_vm7, %v2418_v13 }
 0xffa   :  { %4054 = vmatpush3.xpose.msk.msra.mxu1 %vm610_vm7, %v2300_v6  ;;  %4061 = vmatpush3.xpose.msk.msra.mxu0 %vm610_vm7, %v2418_v13 }
 0xffb   :  { %4072 = vmatprep.subr.mxu0 %v5197_v27 }
 0xffc   :  { %v2416_v39 = vpop.permute.xlu1 %2415  ;;  %v2414_v4 = vpop.permute.xlu0 %2413 }
 0xffd   :  { %4056 = vmatmul.mubr.msk.f32.vlgmr.msra.gmra.mxu1 %vm610_vm7, %v2292_v19  ;;  %4062 = vmatprep.mubr.msk.f32.mxu0 %vm610_vm7, %v2414_v4 }
 0xffe   :  { %4063 = vmatmul.mubr.msk.f32.vlgmr.msra.gmra.mxu0 %vm610_vm7, %v2416_v39 }
 0xfff   :  { %4073 = vmatpush3.msra.mxu0 %v5197_v27 }
0x1000   :  { %4074 = vmatprep.subr.mxu0 %v5183_v18 }
0x1001   :  { %4075 = vmatpush3.msra.mxu0 %v5183_v18 }
0x1002   :  { %4090 = vmatprep.subr.msk.mxu0 %vm610_vm7, %v4931_v11 }
0x10bd   :  { %v4057_v56 = vpop.f32.mrf.mxu1 }
0x10be   :  { %v4064_v14 = vpop.f32.mrf.mxu0  ;;  %v2387_v45 = vmul.f32 0.17677669, %v4057_v56 }
0x10bf   :  { %v2377_v48 = vpop.f32.mrf.mxu1  ;;  %v2505_v33 = vmul.f32 0.17677669, %v4064_v14 }
0x10c0   :  { %v2386_v49 = vmul.f32 0.17677669, %v2377_v48  ;;  %v2495_v50 = vpop.f32.mrf.mxu0  ;;  %v2389_v10 = vadd.f32 %v2387_v45, %v828_v61 }
0x10c1   :  { %v2504_v57 = vmul.f32 0.17677669, %v2495_v50  ;;  %v2507_v29 = vadd.f32 %v2505_v33, %v828_v61 }
0x10c2   :  { %v2388_v5 = vadd.f32 %v2386_v49, %v827_v30  ;;  %v2394_v26 = vsel %vm2390_vm0, %v2389_v10, -inf }
0x10c3   :  { %v2506_v43 = vadd.f32 %v2504_v57, %v827_v30  ;;  %v2511_v47 = vsel %vm2390_vm0, %v2507_v29, -inf }
0x10c4   :  { %v2391_v17 = vsel %vm2390_vm0, %v2388_v5, -inf }
0x10c5   :  { %2392 = vmax.xlane.f32.xlu0 %v2391_v17  ;;  %v2508_v44 = vsel %vm2390_vm0, %v2506_v43, -inf }
0x10c6   :  { %2509 = vmax.xlane.f32.xlu1 %v2508_v44 }
0x10c9   :  { %2395 = vmax.xlane.f32.xlu0 %v2394_v26 }
0x10cd   :  { %2512 = vmax.xlane.f32.xlu0 %v2511_v47 }
0x114e   :  { %v2393_v40 = vpop.xlane.xlu0 %2392 }
0x114f   :  { %v2397_v36 = vsub.f32 %v2388_v5, %v2393_v40  ;;  %v2510_v22 = vpop.xlane.xlu1 %2509 }
0x1150   :  { %v2514_v53 = vsub.f32 %v2506_v43, %v2510_v22 }
0x1151   :  { %v2399_v31 = vmul.f32 1.442695, %v2397_v36 }
0x1152   :  { %v2396_v38 = vpop.xlane.xlu0 %2395  ;;  %v2516_v15 = vmul.f32 1.442695, %v2514_v53 }
0x1153   :  { %v2398_v51 = vsub.f32 %v2389_v10, %v2396_v38 }
0x1155   :  { %v2401_v34 = vmul.f32 1.442695, %v2398_v51 }
0x1156   :  { %v2513_v55 = vpop.xlane.xlu0 %2512 }
0x1157   :  { %4277 = vpow2.f32 %v2401_v34  ;;  %v2515_v7 = vsub.f32 %v2507_v29, %v2513_v55 }
0x1158   :  { %4279 = vpow2.f32 %v2399_v31 }
0x1159   :  { %v2518_v35 = vmul.f32 1.442695, %v2515_v7 }
0x115b   :  { %4281 = vpow2.f32 %v2518_v35 }
0x115c   :  { %4283 = vpow2.f32 %v2516_v15 }
0x1164   :  { %v4278_v12 = vpop.eup %4277 }
0x1165   :  { %v2406_v58 = vsel %vm2390_vm0, %v4278_v12, 0.0  ;;  %v4280_v59 = vpop.eup %4279 }
0x1166   :  { %2407 = vadd.xlane.f32.xlu1 %v2406_v58  ;;  %v2403_v52 = vsel %vm2390_vm0, %v4280_v59, 0.0 }
0x1168   :  { %v4282_v37 = vpop.eup %4281 }
0x1169   :  { %v2523_v42 = vsel %vm2390_vm0, %v4282_v37, 0.0  ;;  %v4284_v19 = vpop.eup %4283 }
0x116a   :  { %2524 = vadd.xlane.f32.xlu0 %v2523_v42  ;;  %2404 = vadd.xlane.f32.xlu1 %v2403_v52  ;;  %v2520_v41 = vsel %vm2390_vm0, %v4284_v19, 0.0 }
0x116e   :  { %2521 = vadd.xlane.f32.xlu0 %v2520_v41 }
0x117b   :  { %2534 = vrot.lane.b32.xlu1 %v5197_v27, %s4377_s0 }
0x1184   :  { %2532 = vrot.lane.b32.xlu0 %v5183_v18, %s4377_s0 }
0x11ef   :  { %v2408_v16 = vpop.xlane.xlu1 %2407 }
0x11f0   :  { %4285 = vrcp.f32 %v2408_v16  ;;  %v3784_v16 = vld [vmem:[%s5397_s2 + $0x14] ss:$0 sm:$0xff] }
0x11f3   :  { %v2525_v13 = vpop.xlane.xlu0 %2524  ;;  %v2405_v6 = vpop.xlane.xlu1 %2404 }
0x11f4   :  { %4287 = vrcp.f32 %v2405_v6 }
0x11f5   :  { %4289 = vrcp.f32 %v2525_v13 }
0x11f7   :  { %v2522_v39 = vpop.xlane.xlu0 %2521  ;;  %v2535_v4 = vpop.permute.xlu1 %2534 }
0x11f8   :  { %4291 = vrcp.f32 %v2522_v39  ;;  %4065 = vmatprep.subr.mxu1 %v2535_v4 }
0x11f9   :  { %4066 = vmatpush3.msra.mxu1 %v2535_v4 }
0x11fb   :  { %v2533_v56 = vpop.permute.xlu0 %2532 }
0x11fc   :  { %4067 = vmatprep.subr.mxu1 %v2533_v56 }
0x11fd   :  { %4068 = vmatpush3.msra.mxu1 %v2533_v56  ;;  %v4286_v14 = vpop.eup %4285 }
0x11fe   :  { %v2412_v45 = vmul.f32 %v4286_v14, %v4278_v12 }
0x1201   :  { %v4288_v48 = vpop.eup %4287 }
0x1202   :  { %v2411_v27 = vmul.f32 %v4288_v48, %v4280_v59  ;;  %v4290_v30 = vpop.eup %4289 }
0x1203   :  { %v2529_v50 = vmul.f32 %v4290_v30, %v4282_v37  ;;  %v3783_v37 = vld [vmem:[%s5397_s2 + $0x13] ss:$0 sm:$0xff] }
0x1204   :  { %4076 = vmatprep.mubr.msk.f32.mxu0 %vm2390_vm0, %v2411_v27 }
0x1205   :  { %v4292_v18 = vpop.eup %4291  ;;  %4077 = vmatmul.mubr.msk.f32.vlgmr.msra.gmra.mxu0 %vm2390_vm0, %v2412_v45 }
0x1206   :  { %v2528_v49 = vmul.f32 %v4292_v18, %v4284_v19  ;;  %4091 = vmatpush3.xpose.msk.msra.mxu0 %vm610_vm7, %v4931_v11 }
0x1207   :  { %4092 = vmatprep.subr.msk.mxu0 %vm610_vm7, %v4927_v9 }
0x1208   :  { %4069 = vmatprep.mubr.msk.f32.mxu1 %vm2390_vm0, %v2528_v49 }
0x1209   :  { %4070 = vmatmul.mubr.msk.f32.vlgmr.msra.gmra.mxu1 %vm2390_vm0, %v2529_v50 }
0x120a   :  { %4093 = vmatpush3.xpose.msk.msra.mxu0 %vm610_vm7, %v4927_v9 }
0x120b   :  { %4094 = vmatprep.subr.msk.mxu0 %vm610_vm7, %v4923_v3 }
0x120e   :  { %4095 = vmatpush3.xpose.msk.msra.mxu0 %vm610_vm7, %v4923_v3 }
0x120f   :  { %4096 = vmatprep.subr.msk.mxu0 %vm610_vm7, %v4915_v0 }
0x1212   :  { %4097 = vmatpush3.xpose.msk.msra.mxu0 %vm610_vm7, %v4915_v0 }
0x12c5   :  { %v4078_v61 = vpop.f32.mrf.mxu0 }
0x12c7   :  { %v2691_v43 = vpop.f32.mrf.mxu0 }
0x12c9   :  { %v4071_v57 = vpop.f32.mrf.mxu1 }
0x12ca   :  { %v2697_v5 = vadd.f32 %v4078_v61, %v4071_v57 }
0x12cb   :  { %v2610_v10 = vpop.f32.mrf.mxu1 }
0x12cc   :  { %v2701_v33 = vadd.f32 %v2697_v5, %v5178_v63  ;;  %v2692_v17 = vadd.f32 %v2691_v43, %v2610_v10 }
0x12ce   :  { %v2700_v44 = vadd.f32 %v2692_v17, %v5173_v21  ;;  %v2707_v29 = vsel %vm610_vm7, %v2701_v33, 0.0 }
0x12cf   :  { %2708 = vadd.xlane.f32.xlu0 %v2707_v29 }
0x12d0   :  { %v2704_v26 = vsel %vm610_vm7, %v2700_v44, 0.0 }
0x12d1   :  { %2705 = vadd.xlane.f32.xlu1 %v2704_v26 }
0x12e2   :  { %2748 = vrot.lane.b32.xlu1 %v5120_v32, %s4377_s0 }
0x12e6   :  { %2744 = vrot.lane.b32.xlu1 %v5131_v54, %s4377_s0 }
0x1358   :  { %v2709_v47 = vpop.xlane.xlu0 %2708 }
0x1359   :  { %v2711_v40 = vmul.f32 0.03125, %v2709_v47 }
0x135a   :  { %v2706_v36 = vpop.xlane.xlu1 %2705 }
0x135b   :  { %v2713_v22 = vsub.f32 %v2701_v33, %v2711_v40  ;;  %v2710_v63 = vmul.f32 0.03125, %v2706_v36 }
0x135d   :  { %v2712_v38 = vsub.f32 %v2700_v44, %v2710_v63  ;;  %v2715_v51 = vmul.f32 %v2713_v22, %v2713_v22 }
0x135e   :  { %v2749_v21 = vpop.permute.xlu1 %2748 }
0x135f   :  { %v2719_v31 = vsel %vm610_vm7, %v2715_v51, 0.0  ;;  %v2714_v53 = vmul.f32 %v2712_v38, %v2712_v38  ;;  %4079 = vmatprep.subr.mxu1 %v2749_v21 }
0x1360   :  { %2720 = vadd.xlane.f32.xlu0 %v2719_v31  ;;  %4080 = vmatpush3.msra.mxu1 %v2749_v21 }
0x1361   :  { %v2716_v34 = vsel %vm610_vm7, %v2714_v53, 0.0 }
0x1362   :  { %2717 = vadd.xlane.f32.xlu1 %v2716_v34  ;;  %v2745_v32 = vpop.permute.xlu1 %2744 }
0x1373   :  { %2742 = vrot.lane.b32.xlu1 %v5157_v8, %s4377_s0 }
0x1376   :  { %2746 = vrot.lane.b32.xlu0 %v5125_v60, %s4377_s0 }
0x1377   :  { %2962 = vrot.lane.b32.xlu1 %v4927_v9, %s4377_s0 }
0x137a   :  { %2964 = vrot.lane.b32.xlu0 %v4931_v11, %s4377_s0 }
0x137b   :  { %2958 = vrot.lane.b32.xlu1 %v4915_v0, %s4377_s0 }
0x137e   :  { %2960 = vrot.lane.b32.xlu0 %v4923_v3, %s4377_s0 }
0x13e9   :  { %v2721_v54 = vpop.xlane.xlu0 %2720 }
0x13ea   :  { %v2723_v55 = vmul.f32 0.03125, %v2721_v54 }
0x13eb   :  { %v2718_v7 = vpop.xlane.xlu1 %2717 }
0x13ec   :  { %v2725_v8 = vadd.f32 1e-05, %v2723_v55  ;;  %v2722_v15 = vmul.f32 0.03125, %v2718_v7 }
0x13ed   :  { %v2747_v35 = vpop.permute.xlu0 %2746 }
0x13ee   :  { %4293 = vrsqrt.f32 %v2725_v8  ;;  %v2724_v60 = vadd.f32 1e-05, %v2722_v15  ;;  %4081 = vmatprep.subr.mxu1 %v2747_v35 }
0x13ef   :  { %4082 = vmatpush3.msra.mxu1 %v2747_v35  ;;  %v2743_v12 = vpop.permute.xlu1 %2742 }
0x13f0   :  { %4295 = vrsqrt.f32 %v2724_v60  ;;  %4083 = vmatprep.subr.mxu1 %v2745_v32 }
0x13f1   :  { %4084 = vmatpush3.msra.mxu1 %v2745_v32  ;;  %v2965_v58 = vpop.permute.xlu0 %2964 }
0x13f2   :  { %4085 = vmatprep.subr.mxu1 %v2743_v12 }
0x13f3   :  { %4086 = vmatpush3.msra.mxu1 %v2743_v12  ;;  %v2963_v4 = vpop.permute.xlu1 %2962 }
0x13f4   :  { %4101 = vmatprep.subr.msk.mxu1 %vm610_vm7, %v2965_v58 }
0x13f5   :  { %v2961_v56 = vpop.permute.xlu0 %2960 }
0x13f7   :  { %v2959_v14 = vpop.permute.xlu1 %2958 }
0x13fb   :  { %v4294_v59 = vpop.eup %4293 }
0x13fc   :  { %v2729_v42 = vmul.f32 %v4294_v59, %v2713_v22 }
0x13fd   :  { %v4296_v52 = vpop.eup %4295 }
0x13fe   :  { %v2728_v19 = vmul.f32 %v4296_v52, %v2712_v38  ;;  %v2735_v41 = vmul.f32 %v3783_v37, %v2729_v42 }
0x1400   :  { %v2734_v13 = vmul.f32 %v3783_v37, %v2728_v19  ;;  %v5281_v39 = vadd.f32 %v3784_v16, %v2735_v41 }
0x1402   :  { %v5279_v6 = vadd.f32 %v3784_v16, %v2734_v13 }
0x1404   :  { %4087 = vmatprep.mubr.msk.f32.mxu1 %vm610_vm7, %v5279_v6 }
0x1405   :  { %4088 = vmatmul.mubr.msk.f32.vlgmr.msra.gmra.mxu1 %vm610_vm7, %v5281_v39 }
0x1406   :  { %4102 = vmatpush3.xpose.msk.msra.mxu1 %vm610_vm7, %v2965_v58 }
0x1407   :  { %4103 = vmatprep.subr.msk.mxu1 %vm610_vm7, %v2963_v4 }
0x140a   :  { %4104 = vmatpush3.xpose.msk.msra.mxu1 %vm610_vm7, %v2963_v4 }
0x140b   :  { %4105 = vmatprep.subr.msk.mxu1 %vm610_vm7, %v2961_v56 }
0x140e   :  { %4106 = vmatpush3.xpose.msk.msra.mxu1 %vm610_vm7, %v2961_v56 }
0x140f   :  { %4107 = vmatprep.subr.msk.mxu1 %vm610_vm7, %v2959_v14 }
0x1412   :  { %4108 = vmatpush3.xpose.msk.msra.mxu1 %vm610_vm7, %v2959_v14 }
0x14c5   :  { %v4089_v48 = vpop.f32.mrf.mxu1 }
0x14c6   :  { %2956 = vrot.lane.b32.xlu1 %v4089_v48, %s4377_s0 }
0x14c7   :  { %v2826_v27 = vpop.f32.mrf.mxu1 }
0x14c8   :  { %2954 = vrot.lane.b32.xlu0 %v2826_v27, %s4377_s0  ;;  %4098 = vmatprep.mubr.msk.f32.mxu0 %vm610_vm7, %v2826_v27 }
0x14c9   :  { %4099 = vmatmul.mubr.msk.f32.vlgmr.msra.gmra.mxu0 %vm610_vm7, %v4089_v48 }
0x1538   :  { %v2957_v45 = vpop.permute.xlu1 %2956 }
0x153a   :  { %v2955_v30 = vpop.permute.xlu0 %2954 }
0x153b   :  { %4109 = vmatprep.mubr.msk.f32.mxu1 %vm610_vm7, %v2955_v30 }
0x153c   :  { %4110 = vmatmul.mubr.msk.f32.vlgmr.msra.gmra.mxu1 %vm610_vm7, %v2957_v45 }
0x1589   :  { %v4100_v18 = vpop.f32.mrf.mxu0 }
0x158a   :  { %v2929_v50 = vmul.f32 0.17677669, %v4100_v18 }
0x158b   :  { %v2919_v49 = vpop.f32.mrf.mxu0 }
0x158c   :  { %v2928_v61 = vmul.f32 0.17677669, %v2919_v49  ;;  %v2931_v5 = vadd.f32 %v2929_v50, %v5042_v23 }
0x158e   :  { %v2930_v57 = vadd.f32 %v2928_v61, %v5039_v1  ;;  %v2935_v10 = vsel %vm610_vm7, %v2931_v5, -inf }
0x1590   :  { %v2932_v43 = vsel %vm610_vm7, %v2930_v57, -inf }
0x1591   :  { %2933 = vmax.xlane.f32.xlu0 %v2932_v43 }
0x1595   :  { %2936 = vmax.xlane.f32.xlu0 %v2935_v10 }
0x15fc   :  { %v4111_v33 = vpop.f32.mrf.mxu1 }
0x15fd   :  { %v3054_v17 = vmul.f32 0.17677669, %v4111_v33 }
0x15fe   :  { %v3044_v44 = vpop.f32.mrf.mxu1 }
0x15ff   :  { %v3056_v29 = vadd.f32 %v3054_v17, %v5042_v23  ;;  %v3053_v26 = vmul.f32 0.17677669, %v3044_v44 }
0x1601   :  { %v3055_v47 = vadd.f32 %v3053_v26, %v5039_v1  ;;  %v3060_v40 = vsel %vm610_vm7, %v3056_v29, -inf }
0x1602   :  { %3061 = vmax.xlane.f32.xlu0 %v3060_v40 }
0x1603   :  { %v3057_v36 = vsel %vm610_vm7, %v3055_v47, -inf }
0x1604   :  { %3058 = vmax.xlane.f32.xlu1 %v3057_v36 }
0x1615   :  { %3085 = vrot.lane.b32.xlu1 %v4931_v11, %s4385_s5 }
0x1618   :  { %3178 = vrot.lane.b32.xlu0 %v4931_v11, %s4386_s6 }
0x1619   :  { %3083 = vrot.lane.b32.xlu1 %v4927_v9, %s4385_s5 }
0x161a   :  { %v2934_v1 = vpop.xlane.xlu0 %2933 }
0x161b   :  { %v2938_v63 = vsub.f32 %v2930_v57, %v2934_v1 }
0x161c   :  { %3081 = vrot.lane.b32.xlu0 %v4923_v3, %s4385_s5 }
0x161d   :  { %3176 = vrot.lane.b32.xlu1 %v4927_v9, %s4386_s6  ;;  %v2940_v51 = vmul.f32 1.442695, %v2938_v63 }
0x161e   :  { %v2937_v23 = vpop.xlane.xlu0 %2936 }
0x161f   :  { %v2939_v22 = vsub.f32 %v2931_v5, %v2937_v23 }
0x1621   :  { %3174 = vrot.lane.b32.xlu1 %v4923_v3, %s4386_s6  ;;  %v2942_v38 = vmul.f32 1.442695, %v2939_v22 }
0x1623   :  { %4297 = vpow2.f32 %v2942_v38 }
0x1624   :  { %4299 = vpow2.f32 %v2940_v51 }
0x1630   :  { %v4298_v11 = vpop.eup %4297 }
0x1631   :  { %v2947_v21 = vsel %vm610_vm7, %v4298_v11, 0.0  ;;  %v4300_v31 = vpop.eup %4299 }
0x1632   :  { %v2944_v53 = vsel %vm610_vm7, %v4300_v31, 0.0 }
0x1645   :  { %2948 = vadd.xlane.f32.xlu1 %v2947_v21 }
0x1649   :  { %2945 = vadd.xlane.f32.xlu1 %v2944_v53 }
0x165a   :  { %3172 = vrot.lane.b32.xlu1 %v4915_v0, %s4386_s6 }
0x168b   :  { %v3062_v3 = vpop.xlane.xlu0 %3061 }
0x168c   :  { %v3064_v9 = vsub.f32 %v3056_v29, %v3062_v3 }
0x168d   :  { %v3059_v34 = vpop.xlane.xlu1 %3058 }
0x168e   :  { %v3067_v32 = vmul.f32 1.442695, %v3064_v9  ;;  %v3063_v54 = vsub.f32 %v3055_v47, %v3059_v34 }
0x168f   :  { %v3179_v55 = vpop.permute.xlu0 %3178 }
0x1690   :  { %4301 = vpow2.f32 %v3067_v32  ;;  %v3065_v7 = vmul.f32 1.442695, %v3063_v54  ;;  %4123 = vmatprep.subr.mxu1 %v3179_v55 }
0x1691   :  { %4124 = vmatpush3.msra.mxu1 %v3179_v55  ;;  %v3086_v8 = vpop.permute.xlu1 %3085  ;;  %v3402_v55 = vld [vmem:[#allocation3 + $0x118] sm:$0xff] }
0x1692   :  { %4303 = vpow2.f32 %v3065_v7  ;;  %4112 = vmatprep.subr.mxu0 %v3086_v8  ;;  %v3401_v7 = vld [vmem:[#allocation3 + $0xd0] sm:$0xff] }
0x1693   :  { %4113 = vmatpush3.msra.mxu0 %v3086_v8  ;;  %v3082_v35 = vpop.permute.xlu0 %3081  ;;  %v3400_v8 = vld [vmem:[#allocation3 + $0x88] sm:$0xff] }
0x1695   :  { %v3084_v15 = vpop.permute.xlu1 %3083 }
0x1696   :  { %4114 = vmatprep.subr.mxu0 %v3084_v15 }
0x1697   :  { %4115 = vmatpush3.msra.mxu0 %v3084_v15  ;;  %v3399_v15 = vld [vmem:[#allocation3 + $0x40] sm:$0xff] }
0x1698   :  { %4116 = vmatprep.subr.mxu0 %v3082_v35 }
0x1699   :  { %4117 = vmatpush3.msra.mxu0 %v3082_v35  ;;  %v3177_v60 = vpop.permute.xlu1 %3176  ;;  %v3805_v35 = vld [vmem:[%s5397_s2 + $0x19] ss:$0 sm:$0xff] }
0x169a   :  { %4125 = vmatprep.subr.mxu1 %v3177_v60 }
0x169b   :  { %4126 = vmatpush3.msra.mxu1 %v3177_v60 }
0x169d   :  { %v4302_v12 = vpop.eup %4301  ;;  %v3175_v58 = vpop.permute.xlu1 %3174 }
0x169e   :  { %4127 = vmatprep.subr.mxu1 %v3175_v58  ;;  %v3072_v59 = vsel %vm610_vm7, %v4302_v12, 0.0 }
0x169f   :  { %v4304_v37 = vpop.eup %4303  ;;  %3073 = vadd.xlane.f32.xlu0 %v3072_v59  ;;  %4128 = vmatpush3.msra.mxu1 %v3175_v58 }
0x16a0   :  { %v3069_v42 = vsel %vm610_vm7, %v4304_v37, 0.0 }
0x16a3   :  { %3070 = vadd.xlane.f32.xlu0 %v3069_v42 }
0x16b9   :  { %3079 = vrot.lane.b32.xlu0 %v4915_v0, %s4385_s5 }
0x16ce   :  { %v2949_v52 = vpop.xlane.xlu1 %2948 }
0x16cf   :  { %4305 = vrcp.f32 %v2949_v52  ;;  %v3808_v52 = vld [vmem:[%s5397_s2 + $0x1a] ss:$0 sm:$0xff] }
0x16d2   :  { %v2946_v19 = vpop.xlane.xlu1 %2945 }
0x16d3   :  { %4307 = vrcp.f32 %v2946_v19 }
0x16d6   :  { %v3173_v41 = vpop.permute.xlu1 %3172 }
0x16d7   :  { %4129 = vmatprep.subr.mxu1 %v3173_v41 }
0x16d8   :  { %4130 = vmatpush3.msra.mxu1 %v3173_v41 }
0x16d9   :  { %4145 = vmatprep.subr.mxu1 %v3402_v55 }
0x16dc   :  { %v4306_v16 = vpop.eup %4305 }
0x16dd   :  { %v2953_v56 = vmul.f32 %v4306_v16, %v4298_v11  ;;  %v3803_v11 = vld [vmem:[%s5397_s2 + $0x15] ss:$0 sm:$0xff] }
0x16e0   :  { %v4308_v13 = vpop.eup %4307 }
0x16e1   :  { %v2952_v4 = vmul.f32 %v4308_v13, %v4300_v31  ;;  %v3804_v31 = vld [vmem:[%s5397_s2 + $0x16] ss:$0 sm:$0xff] }
0x16e3   :  { %4131 = vmatprep.mubr.msk.f32.mxu1 %vm610_vm7, %v2952_v4 }
0x16e4   :  { %4132 = vmatmul.mubr.msk.f32.vlgmr.msra.gmra.mxu1 %vm610_vm7, %v2953_v56 }
0x16e5   :  { %4146 = vmatpush3.msra.mxu1 %v3402_v55 }
0x16e6   :  { %4147 = vmatprep.subr.mxu1 %v3401_v7 }
0x16e7   :  { %4148 = vmatpush3.msra.mxu1 %v3401_v7 }
0x16e8   :  { %4149 = vmatprep.subr.mxu1 %v3400_v8 }
0x16e9   :  { %4150 = vmatpush3.msra.mxu1 %v3400_v8 }
0x16ea   :  { %4151 = vmatprep.subr.mxu1 %v3399_v15 }
0x16eb   :  { %4152 = vmatpush3.msra.mxu1 %v3399_v15 }
0x1728   :  { %v3074_v14 = vpop.xlane.xlu0 %3073 }
0x1729   :  { %4309 = vrcp.f32 %v3074_v14 }
0x172c   :  { %v3071_v48 = vpop.xlane.xlu0 %3070 }
0x172d   :  { %4311 = vrcp.f32 %v3071_v48 }
0x1730   :  { %v3080_v0 = vpop.permute.xlu0 %3079 }
0x1731   :  { %4118 = vmatprep.subr.mxu0 %v3080_v0 }
0x1732   :  { %4119 = vmatpush3.msra.mxu0 %v3080_v0 }
0x1733   :  { %4134 = vmatprep.subr.mxu0 %v5139_v20 }
0x1736   :  { %v4310_v27 = vpop.eup %4309 }
0x1737   :  { %v3078_v18 = vmul.f32 %v4310_v27, %v4302_v12 }
0x173a   :  { %v4312_v30 = vpop.eup %4311 }
0x173b   :  { %v3077_v45 = vmul.f32 %v4312_v30, %v4304_v37 }
0x173d   :  { %4120 = vmatprep.mubr.msk.f32.mxu0 %vm610_vm7, %v3077_v45 }
0x173e   :  { %4121 = vmatmul.mubr.msk.f32.vlgmr.msra.gmra.mxu0 %vm610_vm7, %v3078_v18 }
0x173f   :  { %4135 = vmatpush3.msra.mxu0 %v5139_v20 }
0x1740   :  { %4136 = vmatprep.subr.mxu0 %v5145_v24 }
0x1741   :  { %4137 = vmatpush3.msra.mxu0 %v5145_v24 }
0x1742   :  { %4138 = vmatprep.subr.mxu0 %v5151_v46 }
0x1743   :  { %4139 = vmatpush3.msra.mxu0 %v5151_v46 }
0x1744   :  { %4140 = vmatprep.subr.mxu0 %v5162_v62 }
0x1745   :  { %4141 = vmatpush3.msra.mxu0 %v5162_v62 }
0x1746   :  { %4156 = vmatprep.subr.mxu0 %v4373_v2 }
0x17a4   :  { %v4133_v49 = vpop.f32.mrf.mxu1 }
0x17a6   :  { %v3256_v57 = vpop.f32.mrf.mxu1 }
0x17fe   :  { %v4122_v50 = vpop.f32.mrf.mxu0 }
0x17ff   :  { %v3262_v61 = vadd.f32 %v4133_v49, %v4122_v50 }
0x1800   :  { %v3163_v5 = vpop.f32.mrf.mxu0 }
0x1801   :  { %v3266_v20 = vadd.f32 %v3262_v61, %v5281_v39  ;;  %v3257_v43 = vadd.f32 %v3256_v57, %v3163_v5 }
0x1803   :  { %v3265_v24 = vadd.f32 %v3257_v43, %v5279_v6  ;;  %v3272_v10 = vsel %vm610_vm7, %v3266_v20, 0.0 }
0x1804   :  { %3273 = vadd.xlane.f32.xlu1 %v3272_v10 }
0x1805   :  { %v3269_v46 = vsel %vm610_vm7, %v3265_v24, 0.0 }
0x1806   :  { %3270 = vadd.xlane.f32.xlu0 %v3269_v46 }
0x188d   :  { %v3274_v33 = vpop.xlane.xlu1 %3273 }
0x188e   :  { %v3276_v62 = vmul.f32 0.03125, %v3274_v33 }
0x188f   :  { %v3271_v17 = vpop.xlane.xlu0 %3270 }
0x1890   :  { %v3275_v44 = vmul.f32 0.03125, %v3271_v17  ;;  %v3278_v29 = vsub.f32 %v3266_v20, %v3276_v62  ;;  %v818_v62 = vshrl.u32 %v33_v25, 7 }
0x1892   :  { %v3277_v26 = vsub.f32 %v3265_v24, %v3275_v44  ;;  %v3280_v36 = vmul.f32 %v3278_v29, %v3278_v29  ;;  %vm3531_vm1 = vcmp.eq.s32.totalorder %v818_v62, 1  ;;  %v3811_v44 = vld [vmem:[%s5397_s2 + $0x17] ss:$0 sm:$0xff] }
0x1893   :  { %vm3532_vm2 = vmxor %vm3531_vm1, %vm822_vm12 }
0x1894   :  { %v3279_v47 = vmul.f32 %v3277_v26, %v3277_v26  ;;  %v3284_v39 = vsel %vm610_vm7, %v3280_v36, 0.0  ;;  %vm3533_vm3 = vmxor %vm3532_vm2, %vm4387_vm8 }
0x1896   :  { %v3281_v40 = vsel %vm610_vm7, %v3279_v47, 0.0  ;;  %v3812_v47 = vld [vmem:[%s5397_s2 + $0x18] ss:$0 sm:$0xff] }
0x1897   :  { %3282 = vadd.xlane.f32.xlu0 %v3281_v40 }
0x189b   :  { %3285 = vadd.xlane.f32.xlu0 %v3284_v39 }
0x1920   :  { %v3283_v6 = vpop.xlane.xlu0 %3282 }
0x1921   :  { %v3287_v1 = vmul.f32 0.03125, %v3283_v6 }
0x1923   :  { %v3289_v23 = vadd.f32 1e-05, %v3287_v1  ;;  %v3534_v1 = vsel %vm3533_vm3, 0.125, %v4373_v2 }
0x1924   :  { %v3286_v22 = vpop.xlane.xlu0 %3285 }
0x1925   :  { %4313 = vrsqrt.f32 %v3289_v23  ;;  %v3288_v63 = vmul.f32 0.03125, %v3286_v22  ;;  %v3611_v23 = vld [vmem:[#allocation3 + $0xe8] sm:$0xff]  ;;  %v3609_v22 = vld [vmem:[#allocation3 + $0x58] sm:$0xff] }
0x1927   :  { %v3290_v38 = vadd.f32 1e-05, %v3288_v63  ;;  %v3608_v63 = vld [vmem:[#allocation3 + $0x10] sm:$0xff] }
0x1929   :  { %4315 = vrsqrt.f32 %v3290_v38 }
0x1932   :  { %v4314_v51 = vpop.eup %4313 }
0x1933   :  { %v3293_v21 = vmul.f32 %v4314_v51, %v3277_v26 }
0x1935   :  { %v3299_v53 = vmul.f32 %v3803_v11, %v3293_v21 }
0x1936   :  { %v4316_v3 = vpop.eup %4315 }
0x1937   :  { %v3294_v9 = vmul.f32 %v4316_v3, %v3278_v29  ;;  %v3305_v34 = vadd.f32 %v3804_v31, %v3299_v53 }
0x1939   :  { %v3300_v32 = vmul.f32 %v3803_v11, %v3294_v9  ;;  %4142 = vmatprep.mubr.msk.f32.mxu0 %vm610_vm7, %v3305_v34  ;;  %v3814_v11 = vld [vmem:[%s5397_s2 + $0xa] ss:$0 sm:$0xff] }
0x193b   :  { %v3306_v54 = vadd.f32 %v3804_v31, %v3300_v32 }
0x193d   :  { %4143 = vmatmul.mubr.msk.f32.vlgmr.msra.gmra.mxu0 %vm610_vm7, %v3306_v54 }
0x193e   :  { %4160 = vmatprep.mubr.msk.f32.mxu0 %vm4384_vm4, %v4373_v2 }
0x19fd   :  { %v4144_v60 = vpop.f32.mrf.mxu0 }
0x19fe   :  { %v3394_v12 = vadd.f32 %v4144_v60, %v3805_v35 }
0x19ff   :  { %v3388_v58 = vpop.f32.mrf.mxu0 }
0x1a00   :  { %v3389_v59 = vadd.f32 %v3805_v35, %v3388_v58  ;;  %v3398_v42 = vmax.f32 %v3394_v12, 0.0 }
0x1a02   :  { %v3397_v37 = vmax.f32 %v3389_v59, 0.0 }
0x1a04   :  { %4153 = vmatprep.mubr.msk.f32.mxu1 %vm610_vm7, %v3397_v37 }
0x1a05   :  { %4154 = vmatmul.mubr.msk.f32.vlgmr.msra.gmra.mxu1 %vm610_vm7, %v3398_v42 }
0x1ac5   :  { %v4155_v19 = vpop.f32.mrf.mxu1 }
0x1ac6   :  { %v3486_v41 = vadd.f32 %v4155_v19, %v3808_v52 }
0x1ac7   :  { %v3480_v16 = vpop.f32.mrf.mxu1 }
0x1ac8   :  { %v3490_v13 = vadd.f32 %v3486_v41, %v3306_v54  ;;  %v3481_v4 = vadd.f32 %v3808_v52, %v3480_v16 }
0x1aca   :  { %v3489_v56 = vadd.f32 %v3481_v4, %v3305_v34  ;;  %v3496_v14 = vsel %vm610_vm7, %v3490_v13, 0.0 }
0x1acb   :  { %3497 = vadd.xlane.f32.xlu1 %v3496_v14 }
0x1acc   :  { %v3493_v48 = vsel %vm610_vm7, %v3489_v56, 0.0 }
0x1acd   :  { %3494 = vadd.xlane.f32.xlu0 %v3493_v48 }
0x1b54   :  { %v3498_v0 = vpop.xlane.xlu1 %3497 }
0x1b55   :  { %v3500_v27 = vmul.f32 0.03125, %v3498_v0 }
0x1b56   :  { %v3495_v30 = vpop.xlane.xlu0 %3494 }
0x1b57   :  { %v3502_v45 = vsub.f32 %v3490_v13, %v3500_v27  ;;  %v3499_v18 = vmul.f32 0.03125, %v3495_v30 }
0x1b59   :  { %v3501_v49 = vsub.f32 %v3489_v56, %v3499_v18  ;;  %v3504_v50 = vmul.f32 %v3502_v45, %v3502_v45 }
0x1b5b   :  { %v3508_v61 = vsel %vm610_vm7, %v3504_v50, 0.0  ;;  %v3503_v57 = vmul.f32 %v3501_v49, %v3501_v49 }
0x1b5c   :  { %3509 = vadd.xlane.f32.xlu1 %v3508_v61 }
0x1b5d   :  { %v3505_v5 = vsel %vm610_vm7, %v3503_v57, 0.0 }
0x1b5e   :  { %3506 = vadd.xlane.f32.xlu0 %v3505_v5 }
0x1be5   :  { %v3510_v20 = vpop.xlane.xlu1 %3509 }
0x1be6   :  { %v3512_v43 = vmul.f32 0.03125, %v3510_v20 }
0x1be7   :  { %v3507_v24 = vpop.xlane.xlu0 %3506 }
0x1be8   :  { %v3514_v10 = vadd.f32 1e-05, %v3512_v43  ;;  %v3511_v46 = vmul.f32 0.03125, %v3507_v24 }
0x1bea   :  { %4317 = vrsqrt.f32 %v3514_v10  ;;  %v3513_v33 = vadd.f32 1e-05, %v3511_v46 }
0x1bec   :  { %4319 = vrsqrt.f32 %v3513_v33 }
0x1bf7   :  { %v4318_v17 = vpop.eup %4317 }
0x1bf8   :  { %v3518_v29 = vmul.f32 %v4318_v17, %v3502_v45 }
0x1bf9   :  { %v4320_v26 = vpop.eup %4319 }
0x1bfa   :  { %v3524_v40 = vmul.f32 %v3811_v44, %v3518_v29  ;;  %v3517_v36 = vmul.f32 %v4320_v26, %v3501_v49 }
0x1bfc   :  { %v3530_v25 = vadd.f32 %v3812_v47, %v3524_v40  ;;  %v3523_v39 = vmul.f32 %v3811_v44, %v3517_v36 }
0x1bfe   :  { %4157 = vmatpush3.msra.mxu0 %v3530_v25  ;;  %v3529_v6 = vadd.f32 %v3812_v47, %v3523_v39 }
0x1bff   :  { %4158 = vmatprep.subr.mxu0 %v4373_v2 }
0x1c00   :  { %4159 = vmatpush3.msra.mxu0 %v3529_v6 }
0x1c01   :  { %4161 = vmatmul.mubr.msk.f32.vlgmr.msra.gmra.mxu0 %vm2390_vm0, %v3534_v1  ;;  %4163 = vmatprep.subr.mxu0 %v4373_v2 }
0x1c02   :  { %4164 = vmatpush3.msra.mxu0 %v3611_v23  ;;  %4171 = vmatprep.mubr.msk.f32.mxu0 %vm4384_vm4, %v4373_v2 }
0x1c03   :  { %4165 = vmatprep.subr.mxu0 %v4373_v2 }
0x1c04   :  { %4166 = vmatpush3.msra.mxu0 %v3610_v28 }
0x1c05   :  { %4167 = vmatprep.subr.mxu0 %v4373_v2 }
0x1c06   :  { %4168 = vmatpush3.msra.mxu0 %v3609_v22 }
0x1c07   :  { %4169 = vmatprep.subr.mxu0 %v4373_v2 }
0x1c08   :  { %4170 = vmatpush3.msra.mxu0 %v3608_v63 }
0x1cc1   :  { %v3604_v38 = vpop.f32.mrf.mxu0 }
0x1cc2   :  { %4172 = vmatmul.mubr.msk.f32.vlgmr.msra.gmra.mxu0 %vm610_vm7, %v3604_v38 }
0x1cc3   :  { %v4162_v51 = vpop.f32.mrf.mxu0 }
0x1d82   :  { %v3686_v21 = vpop.f32.mrf.mxu0 }
0x1d83   :  { %v3687_v31 = vadd.f32 %v3814_v11, %v3686_v21 }
0x1d84   :  { %v4173_v53 = vpop.f32.mrf.mxu0 }
0x1d85   :  { %3690 = vst [vmem:[#allocation6] sm:$0x3] %v3687_v31 }
0x1d86   :  { %4355 = shalt.err (!%p4352_p9)
}
0x1d87   :  { %3700 = dma.vmem_to_hbm [thread:$0]  %s3698_s13, 32, %s5398_s3, [#allocation5]  }
0x1d88   :  { %4366 = dma.done.wait [#allocation5], 32  }
0x1d89   :  { %4367 = vsyncadd [#allocation5], 4294967264 }
0x1d8a   :  { %3704 = vsyncpa [#allocation4], 1 }
0x1d8b   :  { %3705 = vsyncpa [#allocation5], 1 }

</bundles_post_ra>
